<compile_context>
chip_gen: v7x
topology: tpu7x:2x2x1
jax: 0.10.0
libtpu: 0.0.40
codegen_flags: <defaults>
</compile_context>

<pallas_src>
import jax
import jax.numpy as jnp
import numpy as np
from jax.experimental import pallas as pl
from jax.experimental.pallas import tpu as pltpu

# ---- hyperparameters fixed by the PyTorch module ----
INPUT_DIM = 12 * 51   # 612
NUM_HEADS = 4
FFN_DIM = 128
NUM_LAYERS = 4
DW_KERNEL = 15
LN_EPS = 1e-5
BN_EPS = 1e-5

GLU_PAD = 640         # 5*128: lane-aligned offset for the GLU gate half

# Row layout of the packed per-layer vector slab (L, NUM_VEC_ROWS, D).
(R_FFN1_LN_W, R_FFN1_LN_B, R_FFN1_B1, R_FFN1_B2,
 R_ATTN_LN_W, R_ATTN_LN_B, R_ATTN_B,
 R_CONV_LN_W, R_CONV_LN_B, R_CONV_A_B, R_CONV_G_B,
 R_CONV_SCALE, R_CONV_BIAS, R_CONV_PW2_B,
 R_FFN2_LN_W, R_FFN2_LN_B, R_FFN2_B1, R_FFN2_B2,
 R_FINAL_LN_W, R_FINAL_LN_B) = range(20)
NUM_VEC_ROWS = 24     # padded to a multiple of 8 sublanes

WEIGHT_ORDER = ["ffn1_w1", "ffn1_w2", "attn_w", "conv_pw1_w", "conv_pw2_w",
                "ffn2_w1", "ffn2_w2"]


# --------------------------------------------------------------------------
# Pallas kernel: grid = (batch tiles, layers).  The output block is resident
# in VMEM across the layer axis and serves as the hidden-state carry.
# Weights are bf16, fully resident for all layers (constant block index);
# matmuls run bf16 x bf16 on the MXU with f32 accumulation.
# --------------------------------------------------------------------------
def conformer_kernel(x_ref, vec_ref,
                     ffn1_w1_ref, ffn1_w2_ref, attn_w_ref,
                     conv_pw1_ref, conv_pw2_ref,
                     ffn2_w1_ref, ffn2_w2_ref,
                     out_ref):
    layer = pl.program_id(1)

    @pl.when(layer == 0)
    def _init():
        out_ref[...] = x_ref[...]

    h = out_ref[...]                                   # (BT, D) f32 carry

    def row(i):                                        # (1, D) f32 param row
        return vec_ref[0, i:i + 1, :]

    def ln(v, wi, bi):
        mu = jnp.mean(v, axis=-1, keepdims=True)
        var = jnp.mean(jnp.square(v - mu), axis=-1, keepdims=True)
        return (v - mu) * jax.lax.rsqrt(var + LN_EPS) * row(wi) + row(bi)

    def silu(v):
        return v * jax.nn.sigmoid(v)

    def mm(a, w_ref):                                  # bf16 x bf16 -> f32 acc
        return jnp.dot(a.astype(jnp.bfloat16), w_ref[layer],
                       preferred_element_type=jnp.float32)

    # ---- FFN1 (half residual; 0.5 folded into w2/b2 offline) ----
    t = ln(h, R_FFN1_LN_W, R_FFN1_LN_B)
    t = silu(mm(t, ffn1_w1_ref) + vec_ref[0, R_FFN1_B1:R_FFN1_B1 + 1, :FFN_DIM])
    t = mm(t, ffn1_w2_ref) + row(R_FFN1_B2)
    h = h + t

    # ---- Multi-head self-attention (T == 1) ----
    # softmax over a single un-masked key is exactly 1, so the block is the
    # affine map  h + LN(h) @ (Wv^T Wout^T) + (bv Wout^T + bout), pre-folded.
    t = ln(h, R_ATTN_LN_W, R_ATTN_LN_B)
    h = h + mm(t, attn_w_ref) + row(R_ATTN_B)

    # ---- Convolution module ----
    # 1x1 conv (a|g halves packed at lane-aligned offsets) -> GLU ->
    # depthwise centre tap + BatchNorm1d(eval) folded to scale/bias -> SiLU ->
    # 1x1 conv.
    t = ln(h, R_CONV_LN_W, R_CONV_LN_B)
    ag = mm(t, conv_pw1_ref)                           # (BT, 2*GLU_PAD)
    a = ag[:, :INPUT_DIM] + row(R_CONV_A_B)
    g = ag[:, GLU_PAD:GLU_PAD + INPUT_DIM] + row(R_CONV_G_B)
    t = a * jax.nn.sigmoid(g)                          # GLU
    t = t * row(R_CONV_SCALE) + row(R_CONV_BIAS)       # dw centre tap + BN
    t = silu(t)
    h = h + mm(t, conv_pw2_ref) + row(R_CONV_PW2_B)

    # ---- FFN2 (half residual; 0.5 folded into w2/b2 offline) ----
    t = ln(h, R_FFN2_LN_W, R_FFN2_LN_B)
    t = silu(mm(t, ffn2_w1_ref) + vec_ref[0, R_FFN2_B1:R_FFN2_B1 + 1, :FFN_DIM])
    t = mm(t, ffn2_w2_ref) + row(R_FFN2_B2)
    h = h + t

    # ---- Final LayerNorm ----
    out_ref[...] = ln(h, R_FINAL_LN_W, R_FINAL_LN_B)


# --------------------------------------------------------------------------
# Wrapper: reshape + batch tiling + BlockSpec wiring.
# --------------------------------------------------------------------------
def conformer_forward(x, packed):
    B0, T = x.shape[0], x.shape[1]
    # The Q/K elision and centre-tap depthwise conv are exact only for T == 1
    # (which is what the module's lengths=1 / squeeze(dim=1) implies).
    assert T == 1, "kernel specialises the module for seq_len == 1"
    x2 = x.reshape(B0, T, -1)[:, 0, :].astype(jnp.float32)      # (B, D)
    D = x2.shape[-1]
    assert D == INPUT_DIM

    # Batch tiling: one tile for B <= 256; 256-row tiles for large B.  With
    # all-layer-resident weights, larger tiles amortise per-step overhead and
    # fill the MXU M dimension; the batch axis stays "parallel" for megacore.
    BT = B0 if B0 <= 256 else 256
    Bp = ((B0 + BT - 1) // BT) * BT
    if Bp != B0:
        x2 = jnp.pad(x2, ((0, Bp - B0), (0, 0)))
    NB = Bp // BT

    weights = [packed[k] for k in WEIGHT_ORDER]
    in_specs = [
        pl.BlockSpec((BT, D), lambda b, l: (b, 0)),
        pl.BlockSpec((1, NUM_VEC_ROWS, D), lambda b, l: (l, 0, 0)),
    ]
    # Full-array weight blocks with a constant index map: each weight is
    # DMA'd from HBM exactly once and stays resident in VMEM for every batch
    # tile and every layer; the kernel indexes w_ref[layer].
    for w in weights:
        in_specs.append(pl.BlockSpec(w.shape, lambda b, l: (0, 0, 0)))

    out = pl.pallas_call(
        conformer_kernel,
        out_shape=jax.ShapeDtypeStruct((Bp, D), jnp.float32),
        grid=(NB, NUM_LAYERS),
        in_specs=in_specs,
        out_specs=pl.BlockSpec((BT, D), lambda b, l: (b, 0)),
        compiler_params=pltpu.CompilerParams(
            dimension_semantics=("parallel", "arbitrary"),
            vmem_limit_bytes=48 * 1024 * 1024,
        ),
    )(x2, packed["vec"], *weights)
    return out[:B0]   # == conformer(x)[0].squeeze(dim=1)


# --------------------------------------------------------------------------
# Raw (PyTorch-layout) parameter initialisation: shapes per the module.
# --------------------------------------------------------------------------
def init_params(key):
    D, F, L, K = INPUT_DIM, FFN_DIM, NUM_LAYERS, DW_KERNEL
    ks = iter(jax.random.split(key, 32))

    def rnd(shape, scale=0.02):
        return scale * jax.random.normal(next(ks), shape, jnp.float32)

    ones = lambda s: jnp.ones(s, jnp.float32)
    zeros = lambda s: jnp.zeros(s, jnp.float32)
    p = {}

    for name in ("ffn1", "ffn2"):
        p[f"{name}_ln_w"] = ones((L, D)); p[f"{name}_ln_b"] = zeros((L, D))
        p[f"{name}_w1"] = rnd((L, F, D)); p[f"{name}_b1"] = rnd((L, F))
        p[f"{name}_w2"] = rnd((L, D, F)); p[f"{name}_b2"] = rnd((L, D))

    p["attn_ln_w"] = ones((L, D)); p["attn_ln_b"] = zeros((L, D))
    p["attn_in_proj_w"] = rnd((L, 3 * D, D)); p["attn_in_proj_b"] = rnd((L, 3 * D))
    p["attn_out_w"] = rnd((L, D, D)); p["attn_out_b"] = rnd((L, D))

    p["conv_ln_w"] = ones((L, D)); p["conv_ln_b"] = zeros((L, D))
    p["conv_pw1_w"] = rnd((L, 2 * D, D)); p["conv_pw1_b"] = rnd((L, 2 * D))
    p["conv_dw_w"] = rnd((L, D, 1, K)); p["conv_dw_b"] = rnd((L, D))
    # BatchNorm1d evaluated with running statistics (eval semantics); a fresh
    # module has mean=0, var=1, weight=1, bias=0.  Trained stats fold the same.
    p["conv_bn_w"] = ones((L, D)); p["conv_bn_b"] = zeros((L, D))
    p["conv_bn_mean"] = zeros((L, D)); p["conv_bn_var"] = ones((L, D))
    p["conv_pw2_w"] = rnd((L, D, D)); p["conv_pw2_b"] = rnd((L, D))

    p["final_ln_w"] = ones((L, D)); p["final_ln_b"] = zeros((L, D))
    return p


# --------------------------------------------------------------------------
# Offline packing/folding: fold attention V+out, fold dw-centre-tap+BN, fold
# the 0.5 half-residual into the FFN down-projections, pack all D-length
# vectors into one slab, concatenate GLU weights at lane-aligned offsets,
# transpose matmul weights to x@W layout and cast them to bf16.
# --------------------------------------------------------------------------
def pack_params(raw):
    D, F, L = INPUT_DIM, FFN_DIM, NUM_LAYERS

    # Attention fold (exact for T == 1): only the V slice of in_proj matters.
    wv = raw["attn_in_proj_w"][:, 2 * D:, :]             # (L, D, D)
    bv = raw["attn_in_proj_b"][:, 2 * D:]                # (L, D)
    wo = raw["attn_out_w"]; bo = raw["attn_out_b"]
    attn_w = jnp.einsum("lji,lkj->lik", wv, wo)          # Wv^T @ Wout^T
    attn_b = jnp.einsum("lj,lkj->lk", bv, wo) + bo

    # Depthwise centre tap + BatchNorm1d (eval) folded to per-channel scale/bias.
    dw_c = raw["conv_dw_w"][:, :, 0, (DW_KERNEL - 1) // 2]          # (L, D)
    inv_std = jax.lax.rsqrt(raw["conv_bn_var"] + BN_EPS)
    conv_scale = dw_c * raw["conv_bn_w"] * inv_std
    conv_bias = ((raw["conv_dw_b"] - raw["conv_bn_mean"])
                 * raw["conv_bn_w"] * inv_std + raw["conv_bn_b"])

    # GLU pointwise conv: a-half at lanes [0:D], gate-half at [640:640+D].
    wa_t = jnp.swapaxes(raw["conv_pw1_w"][:, :D, :], 1, 2)          # (L, D, D)
    wg_t = jnp.swapaxes(raw["conv_pw1_w"][:, D:, :], 1, 2)
    pw1 = jnp.zeros((L, D, 2 * GLU_PAD), jnp.float32)
    pw1 = pw1.at[:, :, :D].set(wa_t)
    pw1 = pw1.at[:, :, GLU_PAD:GLU_PAD + D].set(wg_t)

    # Half-residual fold: 0.5 * (x @ W2^T + b2) == x @ (0.5*W2)^T + 0.5*b2.
    ffn1_w2 = 0.5 * raw["ffn1_w2"]; ffn1_b2 = 0.5 * raw["ffn1_b2"]
    ffn2_w2 = 0.5 * raw["ffn2_w2"]; ffn2_b2 = 0.5 * raw["ffn2_b2"]

    # Packed vector slab.
    vec = jnp.zeros((L, NUM_VEC_ROWS, D), jnp.float32)
    rows = [
        (R_FFN1_LN_W, raw["ffn1_ln_w"], D), (R_FFN1_LN_B, raw["ffn1_ln_b"], D),
        (R_FFN1_B1, raw["ffn1_b1"], F),     (R_FFN1_B2, ffn1_b2, D),
        (R_ATTN_LN_W, raw["attn_ln_w"], D), (R_ATTN_LN_B, raw["attn_ln_b"], D),
        (R_ATTN_B, attn_b, D),
        (R_CONV_LN_W, raw["conv_ln_w"], D), (R_CONV_LN_B, raw["conv_ln_b"], D),
        (R_CONV_A_B, raw["conv_pw1_b"][:, :D], D),
        (R_CONV_G_B, raw["conv_pw1_b"][:, D:], D),
        (R_CONV_SCALE, conv_scale, D), (R_CONV_BIAS, conv_bias, D),
        (R_CONV_PW2_B, raw["conv_pw2_b"], D),
        (R_FFN2_LN_W, raw["ffn2_ln_w"], D), (R_FFN2_LN_B, raw["ffn2_ln_b"], D),
        (R_FFN2_B1, raw["ffn2_b1"], F),     (R_FFN2_B2, ffn2_b2, D),
        (R_FINAL_LN_W, raw["final_ln_w"], D), (R_FINAL_LN_B, raw["final_ln_b"], D),
    ]
    for idx, val, width in rows:
        vec = vec.at[:, idx, :width].set(val)

    bf16 = lambda a: a.astype(jnp.bfloat16)
    return {
        "vec": vec,
        "ffn1_w1": bf16(jnp.swapaxes(raw["ffn1_w1"], 1, 2)),   # (L, D, F)
        "ffn1_w2": bf16(jnp.swapaxes(ffn1_w2, 1, 2)),          # (L, F, D)
        "attn_w": bf16(attn_w),                                 # (L, D, D)
        "conv_pw1_w": bf16(pw1),                                # (L, D, 1280)
        "conv_pw2_w": bf16(jnp.swapaxes(raw["conv_pw2_w"], 1, 2)),
        "ffn2_w1": bf16(jnp.swapaxes(raw["ffn2_w1"], 1, 2)),
        "ffn2_w2": bf16(jnp.swapaxes(ffn2_w2, 1, 2)),
    }


# --------------------------------------------------------------------------
# Pure-JAX reference from the RAW (f32) parameters, HIGHEST matmul precision.
# Same math as the PyTorch module specialised to T == 1 / eval-mode BN.
# --------------------------------------------------------------------------
def conformer_reference(x, raw):
    B, T = x.shape[0], x.shape[1]
    h = x.reshape(B, T, -1)[:, 0, :].astype(jnp.float32)
    hp = jax.lax.Precision.HIGHEST
    D = INPUT_DIM

    def ln(v, w, b):
        mu = v.mean(-1, keepdims=True)
        var = jnp.square(v - mu).mean(-1, keepdims=True)
        return (v - mu) / jnp.sqrt(var + LN_EPS) * w + b

    silu = lambda v: v * jax.nn.sigmoid(v)

    for l in range(NUM_LAYERS):
        g = lambda k: raw[k][l]

        t = ln(h, g("ffn1_ln_w"), g("ffn1_ln_b"))
        t = silu(jnp.dot(t, g("ffn1_w1").T, precision=hp) + g("ffn1_b1"))
        t = jnp.dot(t, g("ffn1_w2").T, precision=hp) + g("ffn1_b2")
        h = h + 0.5 * t

        # MHSA: T == 1 -> softmax over one un-masked key == 1 -> out_proj(V).
        t = ln(h, g("attn_ln_w"), g("attn_ln_b"))
        wv = g("attn_in_proj_w")[2 * D:, :]
        bv = g("attn_in_proj_b")[2 * D:]
        v = jnp.dot(t, wv.T, precision=hp) + bv
        h = h + jnp.dot(v, g("attn_out_w").T, precision=hp) + g("attn_out_b")

        t = ln(h, g("conv_ln_w"), g("conv_ln_b"))
        ag = jnp.dot(t, g("conv_pw1_w").T, precision=hp) + g("conv_pw1_b")
        t = ag[:, :D] * jax.nn.sigmoid(ag[:, D:])
        t = t * g("conv_dw_w")[:, 0, (DW_KERNEL - 1) // 2] + g("conv_dw_b")
        t = ((t - g("conv_bn_mean")) / jnp.sqrt(g("conv_bn_var") + BN_EPS)
             * g("conv_bn_w") + g("conv_bn_b"))
        t = silu(t)
        h = h + jnp.dot(t, g("conv_pw2_w").T, precision=hp) + g("conv_pw2_b")

        t = ln(h, g("ffn2_ln_w"), g("ffn2_ln_b"))
        t = silu(jnp.dot(t, g("ffn2_w1").T, precision=hp) + g("ffn2_b1"))
        t = jnp.dot(t, g("ffn2_w2").T, precision=hp) + g("ffn2_b2")
        h = h + 0.5 * t

        h = ln(h, g("final_ln_w"), g("final_ln_b"))
    return h


if __name__ == "__main__":
    key = jax.random.PRNGKey(0)
    pkey, xkey = jax.random.split(key)

    raw = init_params(pkey)
    packed = pack_params(raw)

    # Input implied by the module: (B, T=1, 12, 51); the forward squeezes T.
    B = 2
    x = jax.random.normal(xkey, (B, 1, 12, 51), jnp.float32)

    out = jax.jit(conformer_forward)(x, packed)
    out = jax.block_until_ready(out)
    assert out.shape == (B, INPUT_DIM)

    # bf16 weight storage + bf16 MXU matmuls introduce ~1e-3..1e-2 deviation
    # vs the f32 HIGHEST-precision reference.
    ref = conformer_reference(x, raw)
    np.testing.assert_allclose(np.asarray(out), np.asarray(ref),
                               rtol=2e-2, atol=2e-2)

    print("KERNEL_OK")
</pallas_src>

<mosaic_0001>
module attributes {stable_mosaic.version = 11 : i64} {
  func.func @conformer_kernel(%arg0: i32, %arg1: i32, %arg2: memref<2x612xf32, #tpu.memory_space<vmem>>, %arg3: memref<1x24x612xf32, #tpu.memory_space<vmem>>, %arg4: memref<4x612x128xbf16, #tpu.memory_space<vmem>>, %arg5: memref<4x128x612xbf16, #tpu.memory_space<vmem>>, %arg6: memref<4x612x612xbf16, #tpu.memory_space<vmem>>, %arg7: memref<4x612x1280xbf16, #tpu.memory_space<vmem>>, %arg8: memref<4x612x612xbf16, #tpu.memory_space<vmem>>, %arg9: memref<4x612x128xbf16, #tpu.memory_space<vmem>>, %arg10: memref<4x128x612xbf16, #tpu.memory_space<vmem>>, %arg11: memref<2x612xf32, #tpu.memory_space<vmem>>) attributes {dimension_semantics = [#tpu.dimension_semantics<parallel>, #tpu.dimension_semantics<arbitrary>], iteration_bounds = array<i64: 1, 4>, scalar_prefetch = 0 : i64, scratch_operands = 0 : i64, tpu.core_type = #tpu.core_type<tc>, window_params = [{transform_indices = @transform_0, window_bounds = array<i64: 2, 612>}, {transform_indices = @transform_1, window_bounds = array<i64: 1, 24, 612>}, {pipeline_mode = #tpu.pipeline_mode<synchronous>, transform_indices = @transform_2, window_bounds = array<i64: 4, 612, 128>}, {pipeline_mode = #tpu.pipeline_mode<synchronous>, transform_indices = @transform_3, window_bounds = array<i64: 4, 128, 612>}, {pipeline_mode = #tpu.pipeline_mode<synchronous>, transform_indices = @transform_4, window_bounds = array<i64: 4, 612, 612>}, {pipeline_mode = #tpu.pipeline_mode<synchronous>, transform_indices = @transform_5, window_bounds = array<i64: 4, 612, 1280>}, {pipeline_mode = #tpu.pipeline_mode<synchronous>, transform_indices = @transform_6, window_bounds = array<i64: 4, 612, 612>}, {pipeline_mode = #tpu.pipeline_mode<synchronous>, transform_indices = @transform_7, window_bounds = array<i64: 4, 612, 128>}, {pipeline_mode = #tpu.pipeline_mode<synchronous>, transform_indices = @transform_8, window_bounds = array<i64: 4, 128, 612>}, {transform_indices = @transform_9, window_bounds = array<i64: 2, 612>}]} {
    %c0_i32 = arith.constant 0 : i32
    %0 = arith.cmpi eq, %arg1, %c0_i32 : i32
    %1 = arith.extui %0 : i1 to i32
    %c0_i32_0 = arith.constant 0 : i32
    %2 = arith.cmpi ne, %1, %c0_i32_0 : i32
    scf.if %2 {
      %c0_94 = arith.constant 0 : index
      %c0_95 = arith.constant 0 : index
      %240 = vector.load %arg2[%c0_94, %c0_95] : memref<2x612xf32, #tpu.memory_space<vmem>>, vector<2x612xf32>
      %c0_96 = arith.constant 0 : index
      %c0_97 = arith.constant 0 : index
      %241 = vector.load %arg11[%c0_96, %c0_97] : memref<2x612xf32, #tpu.memory_space<vmem>>, vector<2x612xf32>
      tpu.vector_store %arg11[%c0_96, %c0_97], %240 {strides = array<i32>} : memref<2x612xf32, #tpu.memory_space<vmem>>, vector<2x612xf32>,
    } else {
    }
    %c0 = arith.constant 0 : index
    %c0_1 = arith.constant 0 : index
    %3 = vector.load %arg11[%c0, %c0_1] : memref<2x612xf32, #tpu.memory_space<vmem>>, vector<2x612xf32>
    %cst = arith.constant dense<0.000000e+00> : vector<2xf32>
    %4 = vector.multi_reduction <add>, %3, %cst [1] : vector<2x612xf32> to vector<2xf32>
    %5 = vector.shape_cast %4 : vector<2xf32> to vector<2x1xf32>
    %cst_2 = arith.constant 6.120000e+02 : f32
    %6 = vector.broadcast %cst_2 : f32 to vector<2x1xf32>
    %7 = arith.divf %5, %6 : vector<2x1xf32>
    %8 = vector.broadcast %7 : vector<2x1xf32> to vector<2x612xf32>
    %9 = arith.subf %3, %8 : vector<2x612xf32>
    %10 = arith.mulf %9, %9 : vector<2x612xf32>
    %cst_3 = arith.constant dense<0.000000e+00> : vector<2xf32>
    %11 = vector.multi_reduction <add>, %10, %cst_3 [1] : vector<2x612xf32> to vector<2xf32>
    %12 = vector.shape_cast %11 : vector<2xf32> to vector<2x1xf32>
    %cst_4 = arith.constant 6.120000e+02 : f32
    %13 = vector.broadcast %cst_4 : f32 to vector<2x1xf32>
    %14 = arith.divf %12, %13 : vector<2x1xf32>
    %15 = vector.broadcast %7 : vector<2x1xf32> to vector<2x612xf32>
    %16 = arith.subf %3, %15 : vector<2x612xf32>
    %cst_5 = arith.constant 9.99999974E-6 : f32
    %17 = vector.broadcast %cst_5 : f32 to vector<2x1xf32>
    %18 = arith.addf %14, %17 : vector<2x1xf32>
    %19 = math.rsqrt %18 : vector<2x1xf32>
    %20 = vector.broadcast %19 : vector<2x1xf32> to vector<2x612xf32>
    %21 = arith.mulf %16, %20 : vector<2x612xf32>
    %c0_6 = arith.constant 0 : index
    %c0_7 = arith.constant 0 : index
    %c0_8 = arith.constant 0 : index
    %22 = vector.load %arg3[%c0_6, %c0_7, %c0_8] : memref<1x24x612xf32, #tpu.memory_space<vmem>>, vector<1x1x612xf32>
    %23 = vector.shape_cast %22 : vector<1x1x612xf32> to vector<1x612xf32>
    %24 = vector.broadcast %23 : vector<1x612xf32> to vector<2x612xf32>
    %25 = arith.mulf %21, %24 : vector<2x612xf32>
    %c0_9 = arith.constant 0 : index
    %c1 = arith.constant 1 : index
    %c0_10 = arith.constant 0 : index
    %26 = vector.load %arg3[%c0_9, %c1, %c0_10] : memref<1x24x612xf32, #tpu.memory_space<vmem>>, vector<1x1x612xf32>
    %27 = vector.shape_cast %26 : vector<1x1x612xf32> to vector<1x612xf32>
    %28 = vector.broadcast %27 : vector<1x612xf32> to vector<2x612xf32>
    %29 = arith.addf %25, %28 : vector<2x612xf32>
    %30 = arith.truncf %29 : vector<2x612xf32> to vector<2x612xbf16>
    %31 = arith.index_cast %arg1 : i32 to index
    %c0_11 = arith.constant 0 : index
    %c0_12 = arith.constant 0 : index
    %32 = vector.load %arg4[%31, %c0_11, %c0_12] : memref<4x612x128xbf16, #tpu.memory_space<vmem>>, vector<1x612x128xbf16>
    %33 = vector.shape_cast %32 : vector<1x612x128xbf16> to vector<612x128xbf16>
    %cst_13 = arith.constant dense<0.000000e+00> : vector<2x128xf32>
    %34 = tpu.matmul %30, %33, %cst_13 {dimension_numbers = #tpu.dot_dimension_numbers<[1], [0], [0], [1], [0, 0, 1, 1], [], []>} : vector<2x612xbf16>, vector<612x128xbf16>, vector<2x128xf32> -> vector<2x128xf32>
    %c0_14 = arith.constant 0 : index
    %c2 = arith.constant 2 : index
    %c0_15 = arith.constant 0 : index
    %35 = vector.load %arg3[%c0_14, %c2, %c0_15] : memref<1x24x612xf32, #tpu.memory_space<vmem>>, vector<1x1x128xf32>
    %36 = vector.shape_cast %35 : vector<1x1x128xf32> to vector<1x128xf32>
    %37 = vector.broadcast %36 : vector<1x128xf32> to vector<2x128xf32>
    %38 = arith.addf %34, %37 : vector<2x128xf32>
    %39 = arith.negf %38 : vector<2x128xf32>
    %40 = math.exp %39 : vector<2x128xf32>
    %cst_16 = arith.constant 1.000000e+00 : f32
    %41 = vector.broadcast %cst_16 : f32 to vector<2x128xf32>
    %42 = arith.addf %41, %40 : vector<2x128xf32>
    %43 = arith.divf %41, %42 : vector<2x128xf32>
    %44 = arith.mulf %38, %43 : vector<2x128xf32>
    %45 = arith.truncf %44 : vector<2x128xf32> to vector<2x128xbf16>
    %46 = arith.index_cast %arg1 : i32 to index
    %c0_17 = arith.constant 0 : index
    %c0_18 = arith.constant 0 : index
    %47 = vector.load %arg5[%46, %c0_17, %c0_18] : memref<4x128x612xbf16, #tpu.memory_space<vmem>>, vector<1x128x612xbf16>
    %48 = vector.shape_cast %47 : vector<1x128x612xbf16> to vector<128x612xbf16>
    %cst_19 = arith.constant dense<0.000000e+00> : vector<2x612xf32>
    %49 = tpu.matmul %45, %48, %cst_19 {dimension_numbers = #tpu.dot_dimension_numbers<[1], [0], [0], [1], [0, 0, 1, 1], [], []>} : vector<2x128xbf16>, vector<128x612xbf16>, vector<2x612xf32> -> vector<2x612xf32>
    %c0_20 = arith.constant 0 : index
    %c3 = arith.constant 3 : index
    %c0_21 = arith.constant 0 : index
    %50 = vector.load %arg3[%c0_20, %c3, %c0_21] : memref<1x24x612xf32, #tpu.memory_space<vmem>>, vector<1x1x612xf32>
    %51 = vector.shape_cast %50 : vector<1x1x612xf32> to vector<1x612xf32>
    %52 = vector.broadcast %51 : vector<1x612xf32> to vector<2x612xf32>
    %53 = arith.addf %49, %52 : vector<2x612xf32>
    %54 = arith.addf %3, %53 : vector<2x612xf32>
    %cst_22 = arith.constant dense<0.000000e+00> : vector<2xf32>
    %55 = vector.multi_reduction <add>, %54, %cst_22 [1] : vector<2x612xf32> to vector<2xf32>
    %56 = vector.shape_cast %55 : vector<2xf32> to vector<2x1xf32>
    %cst_23 = arith.constant 6.120000e+02 : f32
    %57 = vector.broadcast %cst_23 : f32 to vector<2x1xf32>
    %58 = arith.divf %56, %57 : vector<2x1xf32>
    %59 = vector.broadcast %58 : vector<2x1xf32> to vector<2x612xf32>
    %60 = arith.subf %54, %59 : vector<2x612xf32>
    %61 = arith.mulf %60, %60 : vector<2x612xf32>
    %cst_24 = arith.constant dense<0.000000e+00> : vector<2xf32>
    %62 = vector.multi_reduction <add>, %61, %cst_24 [1] : vector<2x612xf32> to vector<2xf32>
    %63 = vector.shape_cast %62 : vector<2xf32> to vector<2x1xf32>
    %cst_25 = arith.constant 6.120000e+02 : f32
    %64 = vector.broadcast %cst_25 : f32 to vector<2x1xf32>
    %65 = arith.divf %63, %64 : vector<2x1xf32>
    %66 = vector.broadcast %58 : vector<2x1xf32> to vector<2x612xf32>
    %67 = arith.subf %54, %66 : vector<2x612xf32>
    %cst_26 = arith.constant 9.99999974E-6 : f32
    %68 = vector.broadcast %cst_26 : f32 to vector<2x1xf32>
    %69 = arith.addf %65, %68 : vector<2x1xf32>
    %70 = math.rsqrt %69 : vector<2x1xf32>
    %71 = vector.broadcast %70 : vector<2x1xf32> to vector<2x612xf32>
    %72 = arith.mulf %67, %71 : vector<2x612xf32>
    %c0_27 = arith.constant 0 : index
    %c4 = arith.constant 4 : index
    %c0_28 = arith.constant 0 : index
    %73 = vector.load %arg3[%c0_27, %c4, %c0_28] : memref<1x24x612xf32, #tpu.memory_space<vmem>>, vector<1x1x612xf32>
    %74 = vector.shape_cast %73 : vector<1x1x612xf32> to vector<1x612xf32>
    %75 = vector.broadcast %74 : vector<1x612xf32> to vector<2x612xf32>
    %76 = arith.mulf %72, %75 : vector<2x612xf32>
    %c0_29 = arith.constant 0 : index
    %c5 = arith.constant 5 : index
    %c0_30 = arith.constant 0 : index
    %77 = vector.load %arg3[%c0_29, %c5, %c0_30] : memref<1x24x612xf32, #tpu.memory_space<vmem>>, vector<1x1x612xf32>
    %78 = vector.shape_cast %77 : vector<1x1x612xf32> to vector<1x612xf32>
    %79 = vector.broadcast %78 : vector<1x612xf32> to vector<2x612xf32>
    %80 = arith.addf %76, %79 : vector<2x612xf32>
    %81 = arith.truncf %80 : vector<2x612xf32> to vector<2x612xbf16>
    %82 = arith.index_cast %arg1 : i32 to index
    %c0_31 = arith.constant 0 : index
    %c0_32 = arith.constant 0 : index
    %83 = vector.load %arg6[%82, %c0_31, %c0_32] : memref<4x612x612xbf16, #tpu.memory_space<vmem>>, vector<1x612x612xbf16>
    %84 = vector.shape_cast %83 : vector<1x612x612xbf16> to vector<612x612xbf16>
    %cst_33 = arith.constant dense<0.000000e+00> : vector<2x612xf32>
    %85 = tpu.matmul %81, %84, %cst_33 {dimension_numbers = #tpu.dot_dimension_numbers<[1], [0], [0], [1], [0, 0, 1, 1], [], []>} : vector<2x612xbf16>, vector<612x612xbf16>, vector<2x612xf32> -> vector<2x612xf32>
    %86 = arith.addf %54, %85 : vector<2x612xf32>
    %c0_34 = arith.constant 0 : index
    %c6 = arith.constant 6 : index
    %c0_35 = arith.constant 0 : index
    %87 = vector.load %arg3[%c0_34, %c6, %c0_35] : memref<1x24x612xf32, #tpu.memory_space<vmem>>, vector<1x1x612xf32>
    %88 = vector.shape_cast %87 : vector<1x1x612xf32> to vector<1x612xf32>
    %89 = vector.broadcast %88 : vector<1x612xf32> to vector<2x612xf32>
    %90 = arith.addf %86, %89 : vector<2x612xf32>
    %cst_36 = arith.constant dense<0.000000e+00> : vector<2xf32>
    %91 = vector.multi_reduction <add>, %90, %cst_36 [1] : vector<2x612xf32> to vector<2xf32>
    %92 = vector.shape_cast %91 : vector<2xf32> to vector<2x1xf32>
    %cst_37 = arith.constant 6.120000e+02 : f32
    %93 = vector.broadcast %cst_37 : f32 to vector<2x1xf32>
    %94 = arith.divf %92, %93 : vector<2x1xf32>
    %95 = vector.broadcast %94 : vector<2x1xf32> to vector<2x612xf32>
    %96 = arith.subf %90, %95 : vector<2x612xf32>
    %97 = arith.mulf %96, %96 : vector<2x612xf32>
    %cst_38 = arith.constant dense<0.000000e+00> : vector<2xf32>
    %98 = vector.multi_reduction <add>, %97, %cst_38 [1] : vector<2x612xf32> to vector<2xf32>
    %99 = vector.shape_cast %98 : vector<2xf32> to vector<2x1xf32>
    %cst_39 = arith.constant 6.120000e+02 : f32
    %100 = vector.broadcast %cst_39 : f32 to vector<2x1xf32>
    %101 = arith.divf %99, %100 : vector<2x1xf32>
    %102 = vector.broadcast %94 : vector<2x1xf32> to vector<2x612xf32>
    %103 = arith.subf %90, %102 : vector<2x612xf32>
    %cst_40 = arith.constant 9.99999974E-6 : f32
    %104 = vector.broadcast %cst_40 : f32 to vector<2x1xf32>
    %105 = arith.addf %101, %104 : vector<2x1xf32>
    %106 = math.rsqrt %105 : vector<2x1xf32>
    %107 = vector.broadcast %106 : vector<2x1xf32> to vector<2x612xf32>
    %108 = arith.mulf %103, %107 : vector<2x612xf32>
    %c0_41 = arith.constant 0 : index
    %c7 = arith.constant 7 : index
    %c0_42 = arith.constant 0 : index
    %109 = vector.load %arg3[%c0_41, %c7, %c0_42] : memref<1x24x612xf32, #tpu.memory_space<vmem>>, vector<1x1x612xf32>
    %110 = vector.shape_cast %109 : vector<1x1x612xf32> to vector<1x612xf32>
    %111 = vector.broadcast %110 : vector<1x612xf32> to vector<2x612xf32>
    %112 = arith.mulf %108, %111 : vector<2x612xf32>
    %c0_43 = arith.constant 0 : index
    %c8 = arith.constant 8 : index
    %c0_44 = arith.constant 0 : index
    %113 = vector.load %arg3[%c0_43, %c8, %c0_44] : memref<1x24x612xf32, #tpu.memory_space<vmem>>, vector<1x1x612xf32>
    %114 = vector.shape_cast %113 : vector<1x1x612xf32> to vector<1x612xf32>
    %115 = vector.broadcast %114 : vector<1x612xf32> to vector<2x612xf32>
    %116 = arith.addf %112, %115 : vector<2x612xf32>
    %117 = arith.truncf %116 : vector<2x612xf32> to vector<2x612xbf16>
    %118 = arith.index_cast %arg1 : i32 to index
    %c0_45 = arith.constant 0 : index
    %c0_46 = arith.constant 0 : index
    %119 = vector.load %arg7[%118, %c0_45, %c0_46] : memref<4x612x1280xbf16, #tpu.memory_space<vmem>>, vector<1x612x1280xbf16>
    %120 = vector.shape_cast %119 : vector<1x612x1280xbf16> to vector<612x1280xbf16>
    %cst_47 = arith.constant dense<0.000000e+00> : vector<2x1280xf32>
    %121 = tpu.matmul %117, %120, %cst_47 {dimension_numbers = #tpu.dot_dimension_numbers<[1], [0], [0], [1], [0, 0, 1, 1], [], []>} : vector<2x612xbf16>, vector<612x1280xbf16>, vector<2x1280xf32> -> vector<2x1280xf32>
    %122 = vector.extract_strided_slice %121 {offsets = [0, 0], sizes = [2, 612], strides = [1, 1]} : vector<2x1280xf32> to vector<2x612xf32>
    %c0_48 = arith.constant 0 : index
    %c9 = arith.constant 9 : index
    %c0_49 = arith.constant 0 : index
    %123 = vector.load %arg3[%c0_48, %c9, %c0_49] : memref<1x24x612xf32, #tpu.memory_space<vmem>>, vector<1x1x612xf32>
    %124 = vector.shape_cast %123 : vector<1x1x612xf32> to vector<1x612xf32>
    %125 = vector.broadcast %124 : vector<1x612xf32> to vector<2x612xf32>
    %126 = arith.addf %122, %125 : vector<2x612xf32>
    %127 = vector.extract_strided_slice %121 {offsets = [0, 640], sizes = [2, 612], strides = [1, 1]} : vector<2x1280xf32> to vector<2x612xf32>
    %c0_50 = arith.constant 0 : index
    %c10 = arith.constant 10 : index
    %c0_51 = arith.constant 0 : index
    %128 = vector.load %arg3[%c0_50, %c10, %c0_51] : memref<1x24x612xf32, #tpu.memory_space<vmem>>, vector<1x1x612xf32>
    %129 = vector.shape_cast %128 : vector<1x1x612xf32> to vector<1x612xf32>
    %130 = vector.broadcast %129 : vector<1x612xf32> to vector<2x612xf32>
    %131 = arith.addf %127, %130 : vector<2x612xf32>
    %132 = arith.negf %131 : vector<2x612xf32>
    %133 = math.exp %132 : vector<2x612xf32>
    %cst_52 = arith.constant 1.000000e+00 : f32
    %134 = vector.broadcast %cst_52 : f32 to vector<2x612xf32>
    %135 = arith.addf %134, %133 : vector<2x612xf32>
    %136 = arith.divf %134, %135 : vector<2x612xf32>
    %137 = arith.mulf %126, %136 : vector<2x612xf32>
    %c0_53 = arith.constant 0 : index
    %c11 = arith.constant 11 : index
    %c0_54 = arith.constant 0 : index
    %138 = vector.load %arg3[%c0_53, %c11, %c0_54] : memref<1x24x612xf32, #tpu.memory_space<vmem>>, vector<1x1x612xf32>
    %139 = vector.shape_cast %138 : vector<1x1x612xf32> to vector<1x612xf32>
    %140 = vector.broadcast %139 : vector<1x612xf32> to vector<2x612xf32>
    %141 = arith.mulf %137, %140 : vector<2x612xf32>
    %c0_55 = arith.constant 0 : index
    %c12 = arith.constant 12 : index
    %c0_56 = arith.constant 0 : index
    %142 = vector.load %arg3[%c0_55, %c12, %c0_56] : memref<1x24x612xf32, #tpu.memory_space<vmem>>, vector<1x1x612xf32>
    %143 = vector.shape_cast %142 : vector<1x1x612xf32> to vector<1x612xf32>
    %144 = vector.broadcast %143 : vector<1x612xf32> to vector<2x612xf32>
    %145 = arith.addf %141, %144 : vector<2x612xf32>
    %146 = arith.negf %145 : vector<2x612xf32>
    %147 = math.exp %146 : vector<2x612xf32>
    %cst_57 = arith.constant 1.000000e+00 : f32
    %148 = vector.broadcast %cst_57 : f32 to vector<2x612xf32>
    %149 = arith.addf %148, %147 : vector<2x612xf32>
    %150 = arith.divf %148, %149 : vector<2x612xf32>
    %151 = arith.mulf %145, %150 : vector<2x612xf32>
    %152 = arith.truncf %151 : vector<2x612xf32> to vector<2x612xbf16>
    %153 = arith.index_cast %arg1 : i32 to index
    %c0_58 = arith.constant 0 : index
    %c0_59 = arith.constant 0 : index
    %154 = vector.load %arg8[%153, %c0_58, %c0_59] : memref<4x612x612xbf16, #tpu.memory_space<vmem>>, vector<1x612x612xbf16>
    %155 = vector.shape_cast %154 : vector<1x612x612xbf16> to vector<612x612xbf16>
    %cst_60 = arith.constant dense<0.000000e+00> : vector<2x612xf32>
    %156 = tpu.matmul %152, %155, %cst_60 {dimension_numbers = #tpu.dot_dimension_numbers<[1], [0], [0], [1], [0, 0, 1, 1], [], []>} : vector<2x612xbf16>, vector<612x612xbf16>, vector<2x612xf32> -> vector<2x612xf32>
    %157 = arith.addf %90, %156 : vector<2x612xf32>
    %c0_61 = arith.constant 0 : index
    %c13 = arith.constant 13 : index
    %c0_62 = arith.constant 0 : index
    %158 = vector.load %arg3[%c0_61, %c13, %c0_62] : memref<1x24x612xf32, #tpu.memory_space<vmem>>, vector<1x1x612xf32>
    %159 = vector.shape_cast %158 : vector<1x1x612xf32> to vector<1x612xf32>
    %160 = vector.broadcast %159 : vector<1x612xf32> to vector<2x612xf32>
    %161 = arith.addf %157, %160 : vector<2x612xf32>
    %cst_63 = arith.constant dense<0.000000e+00> : vector<2xf32>
    %162 = vector.multi_reduction <add>, %161, %cst_63 [1] : vector<2x612xf32> to vector<2xf32>
    %163 = vector.shape_cast %162 : vector<2xf32> to vector<2x1xf32>
    %cst_64 = arith.constant 6.120000e+02 : f32
    %164 = vector.broadcast %cst_64 : f32 to vector<2x1xf32>
    %165 = arith.divf %163, %164 : vector<2x1xf32>
    %166 = vector.broadcast %165 : vector<2x1xf32> to vector<2x612xf32>
    %167 = arith.subf %161, %166 : vector<2x612xf32>
    %168 = arith.mulf %167, %167 : vector<2x612xf32>
    %cst_65 = arith.constant dense<0.000000e+00> : vector<2xf32>
    %169 = vector.multi_reduction <add>, %168, %cst_65 [1] : vector<2x612xf32> to vector<2xf32>
    %170 = vector.shape_cast %169 : vector<2xf32> to vector<2x1xf32>
    %cst_66 = arith.constant 6.120000e+02 : f32
    %171 = vector.broadcast %cst_66 : f32 to vector<2x1xf32>
    %172 = arith.divf %170, %171 : vector<2x1xf32>
    %173 = vector.broadcast %165 : vector<2x1xf32> to vector<2x612xf32>
    %174 = arith.subf %161, %173 : vector<2x612xf32>
    %cst_67 = arith.constant 9.99999974E-6 : f32
    %175 = vector.broadcast %cst_67 : f32 to vector<2x1xf32>
    %176 = arith.addf %172, %175 : vector<2x1xf32>
    %177 = math.rsqrt %176 : vector<2x1xf32>
    %178 = vector.broadcast %177 : vector<2x1xf32> to vector<2x612xf32>
    %179 = arith.mulf %174, %178 : vector<2x612xf32>
    %c0_68 = arith.constant 0 : index
    %c14 = arith.constant 14 : index
    %c0_69 = arith.constant 0 : index
    %180 = vector.load %arg3[%c0_68, %c14, %c0_69] : memref<1x24x612xf32, #tpu.memory_space<vmem>>, vector<1x1x612xf32>
    %181 = vector.shape_cast %180 : vector<1x1x612xf32> to vector<1x612xf32>
    %182 = vector.broadcast %181 : vector<1x612xf32> to vector<2x612xf32>
    %183 = arith.mulf %179, %182 : vector<2x612xf32>
    %c0_70 = arith.constant 0 : index
    %c15 = arith.constant 15 : index
    %c0_71 = arith.constant 0 : index
    %184 = vector.load %arg3[%c0_70, %c15, %c0_71] : memref<1x24x612xf32, #tpu.memory_space<vmem>>, vector<1x1x612xf32>
    %185 = vector.shape_cast %184 : vector<1x1x612xf32> to vector<1x612xf32>
    %186 = vector.broadcast %185 : vector<1x612xf32> to vector<2x612xf32>
    %187 = arith.addf %183, %186 : vector<2x612xf32>
    %188 = arith.truncf %187 : vector<2x612xf32> to vector<2x612xbf16>
    %189 = arith.index_cast %arg1 : i32 to index
    %c0_72 = arith.constant 0 : index
    %c0_73 = arith.constant 0 : index
    %190 = vector.load %arg9[%189, %c0_72, %c0_73] : memref<4x612x128xbf16, #tpu.memory_space<vmem>>, vector<1x612x128xbf16>
    %191 = vector.shape_cast %190 : vector<1x612x128xbf16> to vector<612x128xbf16>
    %cst_74 = arith.constant dense<0.000000e+00> : vector<2x128xf32>
    %192 = tpu.matmul %188, %191, %cst_74 {dimension_numbers = #tpu.dot_dimension_numbers<[1], [0], [0], [1], [0, 0, 1, 1], [], []>} : vector<2x612xbf16>, vector<612x128xbf16>, vector<2x128xf32> -> vector<2x128xf32>
    %c0_75 = arith.constant 0 : index
    %c16 = arith.constant 16 : index
    %c0_76 = arith.constant 0 : index
    %193 = vector.load %arg3[%c0_75, %c16, %c0_76] : memref<1x24x612xf32, #tpu.memory_space<vmem>>, vector<1x1x128xf32>
    %194 = vector.shape_cast %193 : vector<1x1x128xf32> to vector<1x128xf32>
    %195 = vector.broadcast %194 : vector<1x128xf32> to vector<2x128xf32>
    %196 = arith.addf %192, %195 : vector<2x128xf32>
    %197 = arith.negf %196 : vector<2x128xf32>
    %198 = math.exp %197 : vector<2x128xf32>
    %cst_77 = arith.constant 1.000000e+00 : f32
    %199 = vector.broadcast %cst_77 : f32 to vector<2x128xf32>
    %200 = arith.addf %199, %198 : vector<2x128xf32>
    %201 = arith.divf %199, %200 : vector<2x128xf32>
    %202 = arith.mulf %196, %201 : vector<2x128xf32>
    %203 = arith.truncf %202 : vector<2x128xf32> to vector<2x128xbf16>
    %204 = arith.index_cast %arg1 : i32 to index
    %c0_78 = arith.constant 0 : index
    %c0_79 = arith.constant 0 : index
    %205 = vector.load %arg10[%204, %c0_78, %c0_79] : memref<4x128x612xbf16, #tpu.memory_space<vmem>>, vector<1x128x612xbf16>
    %206 = vector.shape_cast %205 : vector<1x128x612xbf16> to vector<128x612xbf16>
    %cst_80 = arith.constant dense<0.000000e+00> : vector<2x612xf32>
    %207 = tpu.matmul %203, %206, %cst_80 {dimension_numbers = #tpu.dot_dimension_numbers<[1], [0], [0], [1], [0, 0, 1, 1], [], []>} : vector<2x128xbf16>, vector<128x612xbf16>, vector<2x612xf32> -> vector<2x612xf32>
    %c0_81 = arith.constant 0 : index
    %c17 = arith.constant 17 : index
    %c0_82 = arith.constant 0 : index
    %208 = vector.load %arg3[%c0_81, %c17, %c0_82] : memref<1x24x612xf32, #tpu.memory_space<vmem>>, vector<1x1x612xf32>
    %209 = vector.shape_cast %208 : vector<1x1x612xf32> to vector<1x612xf32>
    %210 = vector.broadcast %209 : vector<1x612xf32> to vector<2x612xf32>
    %211 = arith.addf %207, %210 : vector<2x612xf32>
    %212 = arith.addf %161, %211 : vector<2x612xf32>
    %cst_83 = arith.constant dense<0.000000e+00> : vector<2xf32>
    %213 = vector.multi_reduction <add>, %212, %cst_83 [1] : vector<2x612xf32> to vector<2xf32>
    %214 = vector.shape_cast %213 : vector<2xf32> to vector<2x1xf32>
    %cst_84 = arith.constant 6.120000e+02 : f32
    %215 = vector.broadcast %cst_84 : f32 to vector<2x1xf32>
    %216 = arith.divf %214, %215 : vector<2x1xf32>
    %217 = vector.broadcast %216 : vector<2x1xf32> to vector<2x612xf32>
    %218 = arith.subf %212, %217 : vector<2x612xf32>
    %219 = arith.mulf %218, %218 : vector<2x612xf32>
    %cst_85 = arith.constant dense<0.000000e+00> : vector<2xf32>
    %220 = vector.multi_reduction <add>, %219, %cst_85 [1] : vector<2x612xf32> to vector<2xf32>
    %221 = vector.shape_cast %220 : vector<2xf32> to vector<2x1xf32>
    %cst_86 = arith.constant 6.120000e+02 : f32
    %222 = vector.broadcast %cst_86 : f32 to vector<2x1xf32>
    %223 = arith.divf %221, %222 : vector<2x1xf32>
    %224 = vector.broadcast %216 : vector<2x1xf32> to vector<2x612xf32>
    %225 = arith.subf %212, %224 : vector<2x612xf32>
    %cst_87 = arith.constant 9.99999974E-6 : f32
    %226 = vector.broadcast %cst_87 : f32 to vector<2x1xf32>
    %227 = arith.addf %223, %226 : vector<2x1xf32>
    %228 = math.rsqrt %227 : vector<2x1xf32>
    %229 = vector.broadcast %228 : vector<2x1xf32> to vector<2x612xf32>
    %230 = arith.mulf %225, %229 : vector<2x612xf32>
    %c0_88 = arith.constant 0 : index
    %c18 = arith.constant 18 : index
    %c0_89 = arith.constant 0 : index
    %231 = vector.load %arg3[%c0_88, %c18, %c0_89] : memref<1x24x612xf32, #tpu.memory_space<vmem>>, vector<1x1x612xf32>
    %232 = vector.shape_cast %231 : vector<1x1x612xf32> to vector<1x612xf32>
    %233 = vector.broadcast %232 : vector<1x612xf32> to vector<2x612xf32>
    %234 = arith.mulf %230, %233 : vector<2x612xf32>
    %c0_90 = arith.constant 0 : index
    %c19 = arith.constant 19 : index
    %c0_91 = arith.constant 0 : index
    %235 = vector.load %arg3[%c0_90, %c19, %c0_91] : memref<1x24x612xf32, #tpu.memory_space<vmem>>, vector<1x1x612xf32>
    %236 = vector.shape_cast %235 : vector<1x1x612xf32> to vector<1x612xf32>
    %237 = vector.broadcast %236 : vector<1x612xf32> to vector<2x612xf32>
    %238 = arith.addf %234, %237 : vector<2x612xf32>
    %c0_92 = arith.constant 0 : index
    %c0_93 = arith.constant 0 : index
    %239 = vector.load %arg11[%c0_92, %c0_93] : memref<2x612xf32, #tpu.memory_space<vmem>>, vector<2x612xf32>
    tpu.vector_store %arg11[%c0_92, %c0_93], %238 {strides = array<i32>} : memref<2x612xf32, #tpu.memory_space<vmem>>, vector<2x612xf32>,
    return
  }
  func.func @transform_0(%arg0: i32, %arg1: i32) -> (i32, i32) {
    %c0_i32 = arith.constant 0 : i32
    %c0_i32_0 = arith.constant 0 : i32
    return %arg0, %c0_i32 : i32, i32
  }
  func.func @transform_1(%arg0: i32, %arg1: i32) -> (i32, i32, i32) {
    %c0_i32 = arith.constant 0 : i32
    %c0_i32_0 = arith.constant 0 : i32
    %c0_i32_1 = arith.constant 0 : i32
    return %arg1, %c0_i32, %c0_i32_0 : i32, i32, i32
  }
  func.func @transform_2(%arg0: i32, %arg1: i32) -> (i32, i32, i32) {
    %c0_i32 = arith.constant 0 : i32
    %c0_i32_0 = arith.constant 0 : i32
    %c0_i32_1 = arith.constant 0 : i32
    %c0_i32_2 = arith.constant 0 : i32
    return %c0_i32, %c0_i32_0, %c0_i32_1 : i32, i32, i32
  }
  func.func @transform_3(%arg0: i32, %arg1: i32) -> (i32, i32, i32) {
    %c0_i32 = arith.constant 0 : i32
    %c0_i32_0 = arith.constant 0 : i32
    %c0_i32_1 = arith.constant 0 : i32
    %c0_i32_2 = arith.constant 0 : i32
    return %c0_i32, %c0_i32_0, %c0_i32_1 : i32, i32, i32
  }
  func.func @transform_4(%arg0: i32, %arg1: i32) -> (i32, i32, i32) {
    %c0_i32 = arith.constant 0 : i32
    %c0_i32_0 = arith.constant 0 : i32
    %c0_i32_1 = arith.constant 0 : i32
    %c0_i32_2 = arith.constant 0 : i32
    return %c0_i32, %c0_i32_0, %c0_i32_1 : i32, i32, i32
  }
  func.func @transform_5(%arg0: i32, %arg1: i32) -> (i32, i32, i32) {
    %c0_i32 = arith.constant 0 : i32
    %c0_i32_0 = arith.constant 0 : i32
    %c0_i32_1 = arith.constant 0 : i32
    %c0_i32_2 = arith.constant 0 : i32
    return %c0_i32, %c0_i32_0, %c0_i32_1 : i32, i32, i32
  }
  func.func @transform_6(%arg0: i32, %arg1: i32) -> (i32, i32, i32) {
    %c0_i32 = arith.constant 0 : i32
    %c0_i32_0 = arith.constant 0 : i32
    %c0_i32_1 = arith.constant 0 : i32
    %c0_i32_2 = arith.constant 0 : i32
    return %c0_i32, %c0_i32_0, %c0_i32_1 : i32, i32, i32
  }
  func.func @transform_7(%arg0: i32, %arg1: i32) -> (i32, i32, i32) {
    %c0_i32 = arith.constant 0 : i32
    %c0_i32_0 = arith.constant 0 : i32
    %c0_i32_1 = arith.constant 0 : i32
    %c0_i32_2 = arith.constant 0 : i32
    return %c0_i32, %c0_i32_0, %c0_i32_1 : i32, i32, i32
  }
  func.func @transform_8(%arg0: i32, %arg1: i32) -> (i32, i32, i32) {
    %c0_i32 = arith.constant 0 : i32
    %c0_i32_0 = arith.constant 0 : i32
    %c0_i32_1 = arith.constant 0 : i32
    %c0_i32_2 = arith.constant 0 : i32
    return %c0_i32, %c0_i32_0, %c0_i32_1 : i32, i32, i32
  }
  func.func @transform_9(%arg0: i32, %arg1: i32) -> (i32, i32) {
    %c0_i32 = arith.constant 0 : i32
    %c0_i32_0 = arith.constant 0 : i32
    return %arg0, %c0_i32 : i32, i32
  }
}

</mosaic_0001>

<bundles_post_ra>
// kernel: conformer_forward.1
= control target key start
LH: loop header
LB: loop body
LE: loop exit
PB: predicated region body
PF: predicated region fallthrough
CT: control target
= control target key end

     0   :  { %14 = vsyncpa [#allocation3], 0  ;;  %s12978_s30 = smov 0   ;;  %s12980_s10 = smov 0   ;;  %s14688_s0 = inlined_call_operand.vmem [shape: f32[2,612], index: 0, kind: input, shape index: {}]   ;;  %s14689_s1 = inlined_call_operand.vmem [shape: f32[4,24,612], index: 1, kind: input, shape index: {}]   ;;  %s14690_s2 = inlined_call_operand.vmem [shape: bf16[4,612,128], index: 2, kind: input, shape index: {}]   ;;  %s14691_s3 = inlined_call_operand.vmem [shape: bf16[4,128,612], index: 3, kind: input, shape index: {}]   ;;  %s14692_s4 = inlined_call_operand.vmem [shape: bf16[4,612,612], index: 4, kind: input, shape index: {}]   ;;  %s14693_s5 = inlined_call_operand.vmem [shape: bf16[4,612,1280], index: 5, kind: input, shape index: {}]   ;;  %s14694_s6 = inlined_call_operand.vmem [shape: bf16[4,612,612], index: 6, kind: input, shape index: {}]   ;;  %s14695_s7 = inlined_call_operand.vmem [shape: bf16[4,612,128], index: 7, kind: input, shape index: {}]   ;;  %s14696_s8 = inlined_call_operand.vmem [shape: bf16[4,128,612], index: 8, kind: input, shape index: {}]   ;;  %s14697_s9 = inlined_call_operand.hbm [shape: f32[2,612], index: 9, kind: output, shape index: {}]  }
   0x1   :  { %s12982_s11 = smov 0  }
   0x2 LB: > { %s10059_s12 = sadd.s32 4294967295, %s12920_s11   ;;  %s29_s13 = sadd.s32 1, %s12916_s10  ;;  %s12920_s11 = sphi %s12982_s11, %s20_s11   ;;  %s12916_s10 = sphi %s12980_s10, %s14700_s10   ;;  %s12912_s30 = sphi %s12978_s30, %s14699_s30  }
   0x3   : > { %p30_p0 = scmp.ge.s32.totalorder %s29_s13, 4  ;;  %p10063_p1 = scmp.ge.s32.totalorder %s12920_s11, 1 }
   0x4   : > { %p310_p2 = scmp.lt.s32.totalorder %s12920_s11, 5 }
   0x5   : > { %s14702_s13 = smov (%p30_p0, %s29_s13), 0 }
   0x6   : > { %p311_p3 = pnand %p10063_p1, %p310_p2 }
   0x7   : > { %p351_p4 = scmp.lt.s32.totalorder (!%p311_p3), %s12912_s30, 3  ;;  %p10065_p5 = scmp.ne.s32.totalorder (!%p311_p3), %s12912_s30, 0 }
   0x8   : > { %314 = sbr.rel (%p311_p3) target bundleno = 4089 (0xff9), region = 56 }
   0xf   : > { %s352_s14 = scalar_select %p351_p4, %s12912_s30, 3 }
  0x10   : > { %360 = sbr.rel (%p10065_p5) target bundleno = 23 (0x17), region = 60  ;;  %v361_v0 = vld [vmem:[%s14688_s0] sm:$0xff] (!%p10065_p5)  ;;  %v362_v1 = vld [vmem:[%s14688_s0 + $0x8] sm:$0x3] (!%p10065_p5)  ;;  %vm364_vm0 = vcmask (!%p10065_p5), 812032  }
  0x11   : > { %s11460_s15 = smul.u32 120, %s352_s14  ;;  %363 = vst [vmem:[#allocation2] sm:$0xff] (!%p10065_p5), %v361_v0  ;;  %365 = vst.msk [vmem:[#allocation2 + $0x8] sm:$0x3] (!%p10065_p5), %vm364_vm0, %v362_v1 }
  0x13   : > { %s13004_s18 = scalar_lea.vmem %s14689_s1, %s11460_s15 }
  0x17 PF: > { %v374_v2 = vlaneseq  ;;  %v12922_v3 = vmov 1983009808   ;;  %vm399_vm1 = vcmask 1041408   ;;  %vm407_vm2 = vcmask 812032   ;;  %s11083_s23 = smul.u32 308, %s12912_s30  ;;  %p14652_p6 = scmp.eq.s32.totalorder %s10059_s12, 3 }
  0x18   : > { %v372_v4 = vunpack.c.l.s4 %v12922_v3  ;;  %v13013_v5 = vld [vmem:[#allocation2] sm:$0xff]  ;;  %v13025_v12 = vld [vmem:[#allocation2 + $0x8] sm:$0x3]  ;;  %v12923_v27 = vmov 269488144   ;;  %vm12925_vm3 = vmmov 0  }
  0x19   : > { %v13015_v6 = vshrl.u32 %v374_v2, 7  ;;  %v370_v7 = vcombine.high %v13013_v5, %v13013_v5  ;;  %s13040_s26 = scalar_lea.vmem %s14690_s2, %s11083_s23  ;;  %v416_v28 = vunpack.c.l.s4 %v12923_v27  ;;  %v10066_v27 = vld [vmem:[%s13004_s18 + $0x1] ss:$8 sm:$0xf]  ;;  %vm936_vm4 = vcmask 818176   ;;  %s11084_s27 = smul.u32 320, %s12912_s30 }
  0x1a   : > { %v373_v8 = vunpack.c.0.s8 %v372_v4  ;;  %v11498_v25 = vld [vmem:[%s13040_s26 + $0x40] sm:$0xff]   ;;  %v11501_v54 = vld [vmem:[%s13040_s26 + $0x48] sm:$0xff]   ;;  %v11505_v58 = vld [vmem:[%s13040_s26 + $0x50] sm:$0xff]   ;;  %s11085_s15 = smul.u32 1540, %s12912_s30 }
  0x1b   : > { %v11499_v26 = vld [vmem:[%s13040_s26] sm:$0xff]   ;;  %11090 = vmatprep.subr.bf16.mxu0 %v11498_v25  ;;  %v417_v29 = vunpack.c.0.s8 %v416_v28  ;;  %v11503_v56 = vld [vmem:[%s13040_s26 + $0x8] sm:$0xff]   ;;  %v11507_v60 = vld [vmem:[%s13040_s26 + $0x10] sm:$0xff]   ;;  %s13161_s14 = scalar_lea.vmem %s14691_s3, %s11084_s27  ;;  %s11086_s20 = smul.u32 3080, %s12912_s30 }
  0x1c   : > { %v13020_v9 = vsub.s32 %v373_v8, %v13015_v6  ;;  %11091 = vmatpush3.bf16.msra.mxu0 %v11499_v26  ;;  %v11500_v53 = vld [vmem:[%s13040_s26 + $0xc0] sm:$0xff]   ;;  %v11504_v57 = vld [vmem:[%s13040_s26 + $0xc8] sm:$0xff]   ;;  %v11508_v61 = vld [vmem:[%s13040_s26 + $0xd0] sm:$0xff]   ;;  %v13100_v26 = vsub.s32 0, %v13015_v6  ;;  %s13250_s19 = scalar_lea.vmem %s14692_s4, %s11085_s15  ;;  %s14090_s28 = scalar_lea.vmem %s14694_s6, %s11085_s15 }
  0x1d   : > { %v13045_v30 = vsub.s32 %v417_v29, %v13015_v6  ;;  %v11502_v55 = vld [vmem:[%s13040_s26 + $0x80] sm:$0xff]   ;;  %11112 = vmatprep.subr.bf16.mxu1 %v11500_v53  ;;  %11092 = vmatprep.subr.bf16.mxu0 %v11501_v54  ;;  %v11506_v59 = vld [vmem:[%s13040_s26 + $0x88] sm:$0xff]   ;;  %v11509_v62 = vld [vmem:[%s13040_s26 + $0x58] sm:$0xff]   ;;  %s13578_s24 = scalar_lea.vmem %s14693_s5, %s11086_s20  ;;  %s14443_s15 = scalar_lea.vmem %s14695_s7, %s11083_s23 }
  0x1e   : > { %v377_v10 = vrot.slane %v13013_v5, %v13020_v9  ;;  %v384_v11 = vrot.slane %v370_v7, %v13020_v9  ;;  %v393_v16 = vrot.slane %v13025_v12, %v13020_v9  ;;  %11113 = vmatpush3.bf16.msra.mxu1 %v11502_v55  ;;  %v11510_v63 = vld [vmem:[%s13040_s26 + $0x90] sm:$0xff]   ;;  %v11511_v0 = vld [vmem:[%s13040_s26 + $0x18] sm:$0xff]   ;;  %v11513_v2 = vld [vmem:[%s13040_s26 + $0x60] sm:$0xff]   ;;  %s14547_s17 = scalar_lea.vmem %s14696_s8, %s11084_s27  ;;  %s12927_s30 = smov [#allocation2]  }
  0x1f   : > { %11114 = vmatprep.subr.bf16.mxu1 %v11504_v57  ;;  %v11512_v1 = vld [vmem:[%s13040_s26 + $0xd8] sm:$0xff]   ;;  %v11515_v4 = vld [vmem:[%s13040_s26 + $0x20] sm:$0xff]   ;;  %v11517_v8 = vld [vmem:[%s13040_s26 + $0x68] sm:$0xff]  }
  0x20   : > { %v385_v13 = vcombine.high %v377_v10, %v377_v10  ;;  %v386_v14 = vcombine.high %v384_v11, %v384_v11  ;;  %v400_v15 = vsel %vm399_vm1, %v377_v10, 0.0  ;;  %v403_v18 = vsel %vm399_vm1, %v384_v11, 0.0  ;;  %11093 = vmatpush3.bf16.msra.mxu0 %v11503_v56  ;;  %v11514_v3 = vld [vmem:[%s13040_s26 + $0x98] sm:$0xff]   ;;  %v11516_v7 = vld [vmem:[%s13040_s26 + $0xe0] sm:$0xff]   ;;  %v11519_v11 = vld [vmem:[%s13040_s26 + $0x28] sm:$0xff]  }
  0x21   : > { %v408_v22 = vsel %vm407_vm2, %v393_v16, 0.0  ;;  %11094 = vmatprep.subr.bf16.mxu0 %v11505_v58  ;;  %v11518_v10 = vld [vmem:[%s13040_s26 + $0xa0] sm:$0xff]   ;;  %v11523_v16 = vld [vmem:[%s13040_s26 + $0x30] sm:$0xff]  }
  0x22   : > { %v401_v17 = vsel %vm399_vm1, %v385_v13, 0.0  ;;  %v405_v20 = vsel %vm399_vm1, %v386_v14, 0.0  ;;  %11115 = vmatpush3.bf16.msra.mxu1 %v11506_v59  ;;  %v11520_v13 = vld [vmem:[%s13040_s26 + $0xe8] sm:$0xff]   ;;  %v11521_v14 = vld [vmem:[%s13040_s26 + $0x70] sm:$0xff]  }
  0x23   : > { %v402_v19 = vadd.f32 %v401_v17, %v400_v15  ;;  %11116 = vmatprep.subr.bf16.mxu1 %v11508_v61  ;;  %v11522_v15 = vld [vmem:[%s13040_s26 + $0xa8] sm:$0xff]   ;;  %v11524_v17 = vld [vmem:[%s13040_s26 + $0xf0] sm:$0xff]   ;;  %v484_v25 = vld [vmem:[%s13004_s18] ss:$8 sm:$0x10] }
  0x24   : > { %11095 = vmatpush3.bf16.msra.mxu0 %v11507_v60  ;;  %v10067_v28 = vld [vmem:[%s13004_s18 + $0x1] ss:$8 sm:$0x10] }
  0x25   : > { %v404_v21 = vadd.f32 %v403_v18, %v402_v19  ;;  %11096 = vmatprep.subr.bf16.mxu0 %v11509_v62  ;;  %v11525_v18 = vld [vmem:[%s13040_s26 + $0x78] sm:$0xff]   ;;  %v11526_v19 = vld [vmem:[%s13040_s26 + $0xb0] sm:$0xff]  }
  0x26   : > { %11117 = vmatpush3.bf16.msra.mxu1 %v11510_v63 }
  0x27   : > { %v406_v23 = vadd.f32 %v405_v20, %v404_v21  ;;  %11118 = vmatprep.subr.bf16.mxu1 %v11512_v1  ;;  %v11527_v20 = vld [vmem:[%s13040_s26 + $0x38] sm:$0xff]  }
  0x28   : > { %11097 = vmatpush3.bf16.msra.mxu0 %v11511_v0  ;;  %v11528_v21 = vld [vmem:[%s13040_s26 + $0xf8] sm:$0xff]  }
  0x29   : > { %v409_v24 = vadd.f32 %v408_v22, %v406_v23  ;;  %11098 = vmatprep.subr.bf16.mxu0 %v11513_v2  ;;  %v11529_v22 = vld [vmem:[%s13040_s26 + $0xb8] sm:$0xff]   ;;  %v12924_v23 = vmov 0.0  }
  0x2a   : > { %11119 = vmatpush3.bf16.msra.mxu1 %v11514_v3 }
  0x2b   : > { %410 = vadd.xlane.f32.xlu0 %v409_v24  ;;  %11120 = vmatprep.subr.bf16.mxu1 %v11516_v7  ;;  %v483_v24 = vld [vmem:[%s13004_s18] ss:$8 sm:$0xf] }
  0x2c   : > { %11099 = vmatpush3.bf16.msra.mxu0 %v11515_v4  ;;  %v11530_v4 = vld [vmem:[%s13040_s26 + $0x100] sm:$0xff]  }
  0x2d   : > { %11100 = vmatprep.subr.bf16.mxu0 %v11517_v8 }
  0x2e   : > { %11121 = vmatpush3.bf16.msra.mxu1 %v11518_v10 }
  0x2f   : > { %11122 = vmatprep.subr.bf16.mxu1 %v11520_v13  ;;  %v13132_v13 = vsub.s32 4, %v13015_v6 }
  0x30   : > { %11101 = vmatpush3.bf16.msra.mxu0 %v11519_v11  ;;  %v11531_v11 = vld [vmem:[%s13040_s26 + $0x108] sm:$0xff]  }
  0x31   : > { %11102 = vmatprep.subr.bf16.mxu0 %v11521_v14  ;;  %v11532_v14 = vld [vmem:[%s13040_s26 + $0x110] sm:$0xff]  }
  0x32   : > { %11123 = vmatpush3.bf16.msra.mxu1 %v11522_v15 }
  0x33   : > { %11124 = vmatprep.subr.bf16.mxu1 %v11524_v17 }
  0x34   : > { %11103 = vmatpush3.bf16.msra.mxu0 %v11523_v16  ;;  %v11533_v16 = vld [vmem:[%s13040_s26 + $0x118] sm:$0xff]  }
  0x35   : > { %11104 = vmatprep.subr.bf16.mxu0 %v11525_v18 }
  0x36   : > { %11125 = vmatpush3.bf16.msra.mxu1 %v11526_v19  ;;  %v11534_v19 = vld [vmem:[%s13040_s26 + $0x120] sm:$0xff]  }
  0x37   : > { %11126 = vmatprep.subr.bf16.mxu1 %v11528_v21 }
  0x38   : > { %11105 = vmatpush3.bf16.msra.mxu0 %v11527_v20 }
  0x39   : > { %11316 = vmatprep.subr.bf16.mxu0 %v12924_v23 }
  0x3a   : > { %11127 = vmatpush3.bf16.msra.mxu1 %v11529_v22  ;;  %v11535_v22 = vld [vmem:[%s13040_s26 + $0x128] sm:$0xff]  }
  0xb8   : > { %v411_v31 = vpop.xlane.xlu0 %410 }
  0xb9   : > { %v413_v32 = vmul.f32 0.001633987, %v411_v31  ;;  %v485_v31 = vor.u32 %v484_v25, %v483_v24 }
  0xbb   : > { %v421_v33 = vrot.slane %v413_v32, %v13045_v30  ;;  %v13105_v32 = vsub.s32 1, %v13015_v6  ;;  %v506_v15 = vrot.slane %v485_v31, %v13132_v13 }
  0xbd   : > { %v13049_v34 = vsub.f32 %v13013_v5, %v421_v33  ;;  %v13052_v35 = vsub.f32 %v13025_v12, %v421_v33  ;;  %v13108_v33 = vsub.s32 2, %v13015_v6  ;;  %v530_v17 = vrot.slane %v506_v15, %v13020_v9 }
  0xbf   : > { %v425_v36 = vmul.f32 %v13049_v34, %v13049_v34  ;;  %v426_v39 = vmul.f32 %v13052_v35, %v13052_v35 }
  0xc1   : > { %v429_v37 = vcombine.high %v425_v36, %v425_v36  ;;  %v436_v38 = vrot.slane %v425_v36, %v13020_v9  ;;  %v452_v46 = vrot.slane %v426_v39, %v13020_v9  ;;  %v13111_v36 = vsub.s32 3, %v13015_v6 }
  0xc3   : > { %v443_v40 = vrot.slane %v429_v37, %v13020_v9  ;;  %v444_v41 = vcombine.high %v436_v38, %v436_v38  ;;  %v458_v43 = vsel %vm399_vm1, %v436_v38, 0.0  ;;  %v465_v51 = vsel %vm407_vm2, %v452_v46, 0.0 }
  0xc4   : > { %v538_v38 = vor.u32 %v10067_v28, %v10066_v27 }
  0xc5   : > { %v445_v42 = vcombine.high %v443_v40, %v443_v40  ;;  %v459_v44 = vsel %vm399_vm1, %v444_v41, 0.0  ;;  %v461_v47 = vsel %vm399_vm1, %v443_v40, 0.0  ;;  %v490_v40 = vrot.slane %v485_v31, %v13100_v26 }
  0xc6   : > { %v460_v45 = vadd.f32 %v459_v44, %v458_v43  ;;  %v494_v41 = vrot.slane %v485_v31, %v13105_v32  ;;  %v502_v43 = vrot.slane %v485_v31, %v13111_v36  ;;  %v543_v44 = vrot.slane %v538_v38, %v13100_v26 }
  0xc7   : > { %v463_v49 = vsel %vm399_vm1, %v445_v42, 0.0  ;;  %v498_v42 = vrot.slane %v485_v31, %v13108_v33  ;;  %v551_v46 = vrot.slane %v538_v38, %v13108_v33  ;;  %v559_v18 = vrot.slane %v538_v38, %v13132_v13  ;;  %v11537_v31 = vld [vmem:[%s13161_s14] ss:$20 sps:$4 sm:$0xff]  }
  0xc8   : > { %v462_v48 = vadd.f32 %v461_v47, %v460_v45  ;;  %v547_v45 = vrot.slane %v538_v38, %v13105_v32  ;;  %v555_v47 = vrot.slane %v538_v38, %v13111_v36  ;;  %v11542_v38 = vld [vmem:[%s13161_s14 + $0xc] ss:$20 sps:$4 sm:$0xff]  }
  0xc9   : > { %v583_v21 = vrot.slane %v559_v18, %v13020_v9 }
  0xca   : > { %v464_v50 = vadd.f32 %v463_v49, %v462_v48  ;;  %v507_v48 = vcombine.low %v490_v40, %v494_v41  ;;  %v508_v49 = vcombine.low %v498_v42, %v502_v43  ;;  %v11543_v40 = vld [vmem:[%s13161_s14 + $0x28] ss:$20 sps:$4 sm:$0xff]   ;;  %v11546_v42 = vld [vmem:[%s13161_s14 + $0x30] ss:$20 sps:$4 sm:$0xff]  }
  0xcb   : > { %v11548_v41 = vld [vmem:[%s13161_s14 + $0x34] ss:$20 sps:$4 sm:$0xff]  }
  0xcc   : > { %v466_v52 = vadd.f32 %v465_v51, %v464_v50  ;;  %v560_v50 = vcombine.low %v543_v44, %v547_v45  ;;  %v561_v51 = vcombine.low %v551_v46, %v555_v47  ;;  %v522_v53 = vrot.slane %v508_v49, %v13020_v9  ;;  %v11551_v43 = vld [vmem:[%s13161_s14 + $0x54] ss:$20 sps:$4 sm:$0xff]   ;;  %v11549_v44 = vld [vmem:[%s13161_s14 + $0x50] ss:$20 sps:$4 sm:$0xff]   ;;  %v11552_v46 = vld [vmem:[%s13161_s14 + $0x58] ss:$20 sps:$4 sm:$0xff]  }
  0xcd   : > { %v11554_v45 = vld [vmem:[%s13161_s14 + $0x5c] ss:$20 sps:$4 sm:$0xff]   ;;  %v11560_v49 = vld [vmem:[%s13161_s14 + $0x84] ss:$20 sps:$4 sm:$0xff]  }
  0xce   : > { %467 = vadd.xlane.f32.xlu0 %v466_v52  ;;  %v515_v52 = vrot.slane %v507_v48, %v13020_v9  ;;  %v568_v54 = vrot.slane %v560_v50, %v13020_v9  ;;  %v575_v55 = vrot.slane %v561_v51, %v13020_v9  ;;  %v11557_v47 = vld [vmem:[%s13161_s14 + $0x7c] ss:$20 sps:$4 sm:$0xff]   ;;  %v11555_v48 = vld [vmem:[%s13161_s14 + $0x78] ss:$20 sps:$4 sm:$0xff]   ;;  %v11558_v50 = vld [vmem:[%s13161_s14 + $0x80] ss:$20 sps:$4 sm:$0xff]  }
  0xcf   : > { %v11563_v51 = vld [vmem:[%s13161_s14 + $0xa4] ss:$20 sps:$4 sm:$0xff]  }
  0xd0   : > { %v523_v58 = vcombine.low %v515_v52, %v522_v53  ;;  %v576_v60 = vcombine.low %v568_v54, %v575_v55  ;;  %v11561_v52 = vld [vmem:[%s13161_s14 + $0xa0] ss:$20 sps:$4 sm:$0xff]   ;;  %v11564_v54 = vld [vmem:[%s13161_s14 + $0xa8] ss:$20 sps:$4 sm:$0xff]  }
  0xd1   : > { %v11566_v53 = vld [vmem:[%s13161_s14 + $0xac] ss:$20 sps:$4 sm:$0xff]  }
  0xd2   : > { %v11569_v55 = vld [vmem:[%s13161_s14 + $0xcc] ss:$20 sps:$4 sm:$0xff]  }
 0x15b   : > { %v468_v29 = vpop.xlane.xlu0 %467 }
 0x15c   : > { %v469_v37 = vmul.f32 0.001633987, %v468_v29  ;;  %v11539_v29 = vld [vmem:[%s13161_s14 + $0x4] ss:$20 sps:$4 sm:$0xff]  }
 0x15d   : > { %1360 = vmatprep.subr.bf16.mxu1 %v11539_v29 }
 0x15e   : > { %v470_v39 = vadd.f32 1e-05, %v469_v37  ;;  %v11540_v37 = vld [vmem:[%s13161_s14 + $0x8] ss:$20 sps:$4 sm:$0xff]  }
 0x160   : > { %12810 = vrsqrt.f32 %v470_v39  ;;  %v11545_v39 = vld [vmem:[%s13161_s14 + $0x2c] ss:$20 sps:$4 sm:$0xff]  }
 0x16a   : > { %v12811_v56 = vpop.eup %12810 }
 0x16b   : > { %v479_v57 = vrot.slane %v12811_v56, %v13045_v30  ;;  %v11567_v56 = vld [vmem:[%s13161_s14 + $0xc8] ss:$20 sps:$4 sm:$0xff]  }
 0x16d   : > { %v481_v59 = vmul.f32 %v479_v57, %v13049_v34  ;;  %v482_v6 = vmul.f32 %v479_v57, %v13052_v35  ;;  %v11536_v35 = vld [vmem:[%s13040_s26 + $0x130] ss:$0 sps:$4 sm:$0x33]   ;;  %v11572_v57 = vld [vmem:[%s13161_s14 + $0xd4] ss:$20 sps:$4 sm:$0xff]  }
 0x16e   : > { %v941_v25 = vsel %vm399_vm1, %v11536_v35, 0 }
 0x16f   : > { %v533_v61 = vmul.f32 %v523_v58, %v481_v59  ;;  %v534_v20 = vmul.f32 %v530_v17, %v482_v6  ;;  %v11570_v58 = vld [vmem:[%s13161_s14 + $0xd0] ss:$20 sps:$4 sm:$0xff]   ;;  %v11575_v59 = vld [vmem:[%s13161_s14 + $0xf4] ss:$20 sps:$4 sm:$0xff]  }
 0x171   : > { %v586_v62 = vadd.f32 %v576_v60, %v533_v61  ;;  %v587_v24 = vadd.f32 %v583_v21, %v534_v20  ;;  %v11573_v60 = vld [vmem:[%s13161_s14 + $0xf0] ss:$20 sps:$4 sm:$0xff]  }
 0x172   : > { %v11578_v61 = vld [vmem:[%s13161_s14 + $0xfc] ss:$20 sps:$4 sm:$0xff]  }
 0x173   : > { %v597_v63 = vrot.slane %v586_v62, %v13020_v9  ;;  %v590_v0 = vcombine.high %v586_v62, %v586_v62  ;;  %v613_v27 = vrot.slane %v587_v24, %v13020_v9  ;;  %v11576_v62 = vld [vmem:[%s13161_s14 + $0xf8] ss:$20 sps:$4 sm:$0xff]  }
 0x175   : > { %v605_v1 = vcombine.high %v597_v63, %v597_v63  ;;  %v604_v2 = vrot.slane %v590_v0, %v13020_v9  ;;  %v619_v8 = vpack.c.bf16 %v597_v63, %v597_v63  ;;  %v623_v28 = vpack.c.bf16 %v613_v27, %v613_v27  ;;  %v11581_v63 = vld [vmem:[%s13161_s14 + $0x11c] ss:$20 sps:$4 sm:$0xff]   ;;  %v11579_v0 = vld [vmem:[%s13161_s14 + $0x118] ss:$20 sps:$4 sm:$0xff]  }
 0x177   : > { %v620_v3 = vpack.c.bf16 %v605_v1, %v605_v1  ;;  %v606_v7 = vcombine.high %v604_v2, %v604_v2  ;;  %v621_v34 = vpack.c.bf16 %v604_v2, %v604_v2  ;;  %v11584_v1 = vld [vmem:[%s13161_s14 + $0x124] ss:$20 sps:$4 sm:$0xff]   ;;  %v11582_v2 = vld [vmem:[%s13161_s14 + $0x120] ss:$20 sps:$4 sm:$0xff]  }
 0x179   : > { %975 = vmatprep.mubr.bf16.mxu0 %v620_v3  ;;  %v622_v10 = vpack.c.bf16 %v606_v7, %v606_v7  ;;  %v12926_v3 = vmov 0   ;;  %v704_v7 = vld [vmem:[%s13004_s18 + $0x2] ss:$0 sm:$0xff] }
 0x17a   : > { %976 = vmatmul.mubr.bf16.vlgmr.msra.gmra.mrb[0].mxu0 %v619_v8 }
 0x17b   : > { %11317 = vmatpush3.bf16.msra.mxu0 %v11530_v4  ;;  %1015 = vmatprep.mubr.bf16.mxu1 %v622_v10 }
 0x17c   : > { %1016 = vmatmul.mubr.bf16.vlgmr.msra.gmra.mrb[0].mxu1 %v621_v34  ;;  %11318 = vmatprep.subr.bf16.mxu0 %v12924_v23 }
 0x17d   : > { %11330 = vmatprep.mubr.msk.bf16.mxu0 %vm12925_vm3, %v12924_v23  ;;  %1361 = vmatpush1.bf16.msra.mxu1 %v11537_v31 }
 0x17e   : > { %1362 = vmatprep.subr.bf16.mxu1 %v11545_v39  ;;  %1392 = vmatprep.mubr.bf16.mxu1 %v12926_v3  ;;  %v11586_v39 = vld [vmem:[%s13161_s14 + $0x38] ss:$20 sps:$4 sm:$0xff]  }
 0x17f   : > { %11319 = vmatpush3.bf16.msra.mxu0 %v11531_v11 }
 0x180   : > { %11320 = vmatprep.subr.bf16.mxu0 %v12924_v23 }
 0x181   : > { %1363 = vmatpush1.bf16.msra.mxu1 %v11543_v40  ;;  %v11587_v40 = vld [vmem:[%s13161_s14 + $0x60] ss:$20 sps:$4 sm:$0xff]  }
 0x182   : > { %1364 = vmatprep.subr.bf16.mxu1 %v11551_v43  ;;  %v11590_v43 = vld [vmem:[%s13161_s14 + $0xd8] ss:$20 sps:$4 sm:$0xff]  }
 0x183   : > { %11321 = vmatpush3.bf16.msra.mxu0 %v11532_v14 }
 0x184   : > { %11322 = vmatprep.subr.bf16.mxu0 %v12924_v23 }
 0x185   : > { %1365 = vmatpush1.bf16.msra.mxu1 %v11549_v44  ;;  %v11591_v44 = vld [vmem:[%s13161_s14 + $0x100] ss:$20 sps:$4 sm:$0xff]  }
 0x186   : > { %1366 = vmatprep.subr.bf16.mxu1 %v11557_v47  ;;  %v10112_v47 = vld [vmem:[%s13004_s18 + $0x3] ss:$8 sm:$0x10] }
 0x187   : > { %11323 = vmatpush3.bf16.msra.mxu0 %v11533_v16 }
 0x188   : > { %11324 = vmatprep.subr.bf16.mxu0 %v12924_v23 }
 0x189   : > { %1367 = vmatpush1.bf16.msra.mxu1 %v11555_v48 }
 0x18a   : > { %1368 = vmatprep.subr.bf16.mxu1 %v11563_v51 }
 0x18b   : > { %11325 = vmatpush3.bf16.msra.mxu0 %v11534_v19 }
 0x18c   : > { %11326 = vmatprep.subr.bf16.mxu0 %v12924_v23 }
 0x18d   : > { %1369 = vmatpush1.bf16.msra.mxu1 %v11561_v52 }
 0x18e   : > { %1370 = vmatprep.subr.bf16.mxu1 %v11569_v55 }
 0x18f   : > { %11327 = vmatpush3.bf16.msra.mxu0 %v11535_v22 }
 0x190   : > { %11328 = vmatprep.subr.bf16.mxu0 %v12924_v23 }
 0x191   : > { %1371 = vmatpush1.bf16.msra.mxu1 %v11567_v56 }
 0x192   : > { %1372 = vmatprep.subr.bf16.mxu1 %v11575_v59 }
 0x193   : > { %11329 = vmatpush3.bf16.msra.mxu0 %v941_v25 }
 0x194   : > { %1401 = vmatprep.subr.bf16.mxu0 %v11542_v38 }
 0x195   : > { %1373 = vmatpush1.bf16.msra.mxu1 %v11573_v60 }
 0x196   : > { %11331 = vmatmul.mubr.msk.bf16.vlgmr.msra.gmra.mrb[4].mxu0 %vm936_vm4, %v623_v28  ;;  %1374 = vmatprep.subr.bf16.mxu1 %v11581_v63 }
 0x197   : > { %1402 = vmatpush1.bf16.msra.mxu0 %v11540_v37  ;;  %1433 = vmatprep.mubr.bf16.mxu0 %v12926_v3  ;;  %v11585_v37 = vld [vmem:[%s13161_s14 + $0x10] ss:$20 sps:$4 sm:$0xff]  }
 0x198   : > { %1403 = vmatprep.subr.bf16.mxu0 %v11548_v41  ;;  %v11588_v41 = vld [vmem:[%s13161_s14 + $0x88] ss:$20 sps:$4 sm:$0xff]  }
 0x199   : > { %1375 = vmatpush1.bf16.msra.mxu1 %v11579_v0 }
 0x19a   : > { %11334 = vmatprep.subr.bf16.mxu1 %v12924_v23 }
 0x19b   : > { %1404 = vmatpush1.bf16.msra.mxu0 %v11546_v42  ;;  %v11589_v42 = vld [vmem:[%s13161_s14 + $0xb0] ss:$20 sps:$4 sm:$0xff]  }
 0x19c   : > { %1405 = vmatprep.subr.bf16.mxu0 %v11554_v45  ;;  %v11592_v45 = vld [vmem:[%s13161_s14 + $0x128] ss:$20 sps:$4 sm:$0xff]  }
 0x19f   : > { %1406 = vmatpush1.bf16.msra.mxu0 %v11552_v46  ;;  %v10111_v46 = vld [vmem:[%s13004_s18 + $0x3] ss:$8 sm:$0xf] }
 0x1a0   : > { %1407 = vmatprep.subr.bf16.mxu0 %v11560_v49  ;;  %v1125_v48 = vor.u32 %v10112_v47, %v10111_v46  ;;  %v11604_v46 = vld [vmem:[%s13250_s19 + $0x34] ss:$20 sps:$4 sm:$0xff]  }
 0x1a1   : > { %v11607_v47 = vld [vmem:[%s13250_s19 + $0x54] ss:$20 sps:$4 sm:$0xff]  }
 0x1a2   : > { %v1130_v49 = vrot.slane %v1125_v48, %v13100_v26  ;;  %v1134_v51 = vrot.slane %v1125_v48, %v13105_v32  ;;  %v1142_v52 = vrot.slane %v1125_v48, %v13111_v36 }
 0x1a3   : > { %1408 = vmatpush1.bf16.msra.mxu0 %v11558_v50  ;;  %v1138_v50 = vrot.slane %v1125_v48, %v13108_v33 }
 0x1a4   : > { %1409 = vmatprep.subr.bf16.mxu0 %v11566_v53 }
 0x1a7   : > { %1410 = vmatpush1.bf16.msra.mxu0 %v11564_v54 }
 0x1a8   : > { %1411 = vmatprep.subr.bf16.mxu0 %v11572_v57 }
 0x1ab   : > { %1412 = vmatpush1.bf16.msra.mxu0 %v11570_v58 }
 0x1ac   : > { %1413 = vmatprep.subr.bf16.mxu0 %v11578_v61 }
 0x1af   : > { %1414 = vmatpush1.bf16.msra.mxu0 %v11576_v62 }
 0x1b0   : > { %1415 = vmatprep.subr.bf16.mxu0 %v11584_v1 }
 0x1b3   : > { %1416 = vmatpush1.bf16.msra.mxu0 %v11582_v2 }
 0x24d   : > { %v11106_v4 = vpop.f32.mrb[0].mxu0 }
 0x24e   : > { %v11107_v8 = vpop.f32.mrb[1].mxu0 }
 0x24f   : > { %v11108_v10 = vadd.f32 %v11107_v8, %v11106_v4  ;;  %v11109_v34 = vpop.f32.mrb[2].mxu0  ;;  %v11128_v11 = vpop.f32.mrb[0].mxu1 }
 0x250   : > { %v11110_v14 = vpop.f32.mrb[3].mxu0  ;;  %v11129_v15 = vpop.f32.mrb[1].mxu1 }
 0x251   : > { %v978_v16 = vadd.f32 %v11108_v10, %v704_v7  ;;  %v11130_v6 = vadd.f32 %v11129_v15, %v11128_v11  ;;  %v11131_v17 = vpop.f32.mrb[2].mxu1  ;;  %v1146_v15 = vrot.slane %v1125_v48, %v13132_v13  ;;  %v11605_v48 = vld [vmem:[%s13250_s19 + $0x50] ss:$20 sps:$4 sm:$0xff]  }
 0x252   : > { %v11132_v18 = vpop.f32.mrb[3].mxu1 }
 0x253   : > { %v1018_v19 = vadd.f32 %v11130_v6, %v978_v16 }
 0x269   : > { %v1057_v20 = vpop.f32.mrb[4].mxu0 }
 0x26a   : > { %v1058_v21 = vadd.f32 %v1057_v20, %v1018_v19  ;;  %v11332_v22 = vpop.f32.mrb[5].mxu0 }
 0x26b   : > { %v1060_v35 = vpop.f32.mrb[6].mxu0 }
 0x26c   : > { %v10109_v24 = vmul.f32 -1.442695, %v1058_v21  ;;  %v11333_v25 = vpop.f32.mrb[7].mxu0 }
 0x26e   : > { %12812 = vpow2.f32 %v10109_v24 }
 0x278   : > { %v12813_v27 = vpop.eup %12812 }
 0x279   : > { %v1066_v28 = vadd.f32 1.0, %v12813_v27 }
 0x27b   : > { %12814 = vrcp.f32 %v1066_v28 }
 0x285   : > { %v12815_v29 = vpop.eup %12814 }
 0x286   : > { %v1069_v31 = vmul.f32 %v12815_v29, %v1058_v21 }
 0x288   : > { %v1070_v38 = vpack.c.bf16 %v1069_v31, %v1069_v31 }
 0x28a   : > { %1393 = vmatmul.mubr.bf16.vlgmr.msra.gmra.mrb[4].mxu1 %v1070_v38  ;;  %1434 = vmatmul.mubr.bf16.vlgmr.msra.gmra.mrb[8].mxu0 %v1070_v38 }
 0x28b   : > { %11335 = vmatpush3.bf16.msra.mxu1 %v11585_v37  ;;  %11350 = vmatprep.mubr.msk.bf16.mxu1 %vm12925_vm3, %v12924_v23 }
 0x28c   : > { %11336 = vmatprep.subr.bf16.mxu1 %v12924_v23 }
 0x28f   : > { %11337 = vmatpush3.bf16.msra.mxu1 %v11586_v39 }
 0x290   : > { %11338 = vmatprep.subr.bf16.mxu1 %v12924_v23 }
 0x293   : > { %11339 = vmatpush3.bf16.msra.mxu1 %v11587_v40  ;;  %v11595_v40 = vld [vmem:[%s13250_s19 + $0x4] ss:$20 sps:$4 sm:$0xff]  }
 0x294   : > { %11340 = vmatprep.subr.bf16.mxu1 %v12924_v23  ;;  %3022 = vmatprep.subr.bf16.mxu0 %v11595_v40 }
 0x297   : > { %11341 = vmatpush3.bf16.msra.mxu1 %v11588_v41  ;;  %v11596_v41 = vld [vmem:[%s13250_s19 + $0x8] ss:$20 sps:$4 sm:$0xff]  }
 0x298   : > { %11342 = vmatprep.subr.bf16.mxu1 %v12924_v23 }
 0x29b   : > { %11343 = vmatpush3.bf16.msra.mxu1 %v11589_v42  ;;  %v11598_v42 = vld [vmem:[%s13250_s19 + $0xc] ss:$20 sps:$4 sm:$0xff]  }
 0x29c   : > { %11344 = vmatprep.subr.bf16.mxu1 %v12924_v23 }
 0x29f   : > { %11345 = vmatpush3.bf16.msra.mxu1 %v11590_v43  ;;  %v11599_v43 = vld [vmem:[%s13250_s19 + $0x28] ss:$20 sps:$4 sm:$0xff]  }
 0x2a0   : > { %11346 = vmatprep.subr.bf16.mxu1 %v12924_v23 }
 0x2a3   : > { %11347 = vmatpush3.bf16.msra.mxu1 %v11591_v44  ;;  %v11601_v44 = vld [vmem:[%s13250_s19 + $0x2c] ss:$20 sps:$4 sm:$0xff]  }
 0x2a4   : > { %11348 = vmatprep.subr.bf16.mxu1 %v12924_v23 }
 0x2a7   : > { %11349 = vmatpush3.bf16.msra.mxu1 %v11592_v45  ;;  %v11602_v45 = vld [vmem:[%s13250_s19 + $0x30] ss:$20 sps:$4 sm:$0xff]  }
 0x2a8   : > { %3145 = vmatprep.subr.bf16.mxu1 %v11598_v42 }
 0x2aa   : > { %11351 = vmatmul.mubr.bf16.vlgmr.msra.gmra.mrb[8].mxu1 %v1070_v38 }
 0x2ab   : > { %3146 = vmatpush1.bf16.msra.mxu1 %v11596_v41 }
 0x2ac   : > { %3147 = vmatprep.subr.bf16.mxu1 %v11604_v46  ;;  %v11647_v46 = vld [vmem:[%s13250_s19 + $0x168] ss:$20 sps:$4 sm:$0xff]  }
 0x2af   : > { %3148 = vmatpush1.bf16.msra.mxu1 %v11602_v45  ;;  %v11652_v45 = vld [vmem:[%s13250_s19 + $0x174] ss:$20 sps:$4 sm:$0xff]  }
 0x35d   : > { %v1394_v53 = vpop.f32.mrb[4].mxu1  ;;  %v1435_v54 = vpop.f32.mrb[8].mxu0 }
 0x35e   : > { %v1395_v55 = vadd.f32 %v1394_v53, %v1130_v49  ;;  %v1436_v56 = vadd.f32 %v1435_v54, %v1138_v50  ;;  %v1396_v57 = vpop.f32.mrb[5].mxu1  ;;  %v1437_v58 = vpop.f32.mrb[9].mxu0  ;;  %v11610_v49 = vld [vmem:[%s13250_s19 + $0x5c] ss:$20 sps:$4 sm:$0xff]   ;;  %v11608_v50 = vld [vmem:[%s13250_s19 + $0x58] ss:$20 sps:$4 sm:$0xff]  }
 0x35f   : > { %v1397_v59 = vadd.f32 %v1396_v57, %v1134_v51  ;;  %v1438_v60 = vadd.f32 %v1437_v58, %v1142_v52  ;;  %v1398_v61 = vpop.f32.mrb[6].mxu1  ;;  %v1439_v62 = vpop.f32.mrb[10].mxu0  ;;  %v11613_v51 = vld [vmem:[%s13250_s19 + $0x7c] ss:$20 sps:$4 sm:$0xff]   ;;  %3149 = vmatprep.subr.bf16.mxu1 %v11610_v49  ;;  %v11616_v52 = vld [vmem:[%s13250_s19 + $0x84] ss:$20 sps:$4 sm:$0xff]  }
 0x360   : > { %v1399_v63 = vpop.f32.mrb[7].mxu1  ;;  %v1440_v0 = vpop.f32.mrb[11].mxu0  ;;  %v11611_v53 = vld [vmem:[%s13250_s19 + $0x78] ss:$20 sps:$4 sm:$0xff]   ;;  %v11614_v54 = vld [vmem:[%s13250_s19 + $0x80] ss:$20 sps:$4 sm:$0xff]   ;;  %3150 = vmatpush1.bf16.msra.mxu1 %v11608_v50 }
 0x361   : > { %v1487_v1 = vcombine.low %v1395_v55, %v1397_v59  ;;  %v1488_v2 = vcombine.low %v1436_v56, %v1438_v60  ;;  %v11619_v55 = vld [vmem:[%s13250_s19 + $0xa4] ss:$20 sps:$4 sm:$0xff]   ;;  %3151 = vmatprep.subr.bf16.mxu1 %v11616_v52  ;;  %v11622_v56 = vld [vmem:[%s13250_s19 + $0xac] ss:$20 sps:$4 sm:$0xff]   ;;  %v11620_v58 = vld [vmem:[%s13250_s19 + $0xa8] ss:$20 sps:$4 sm:$0xff]  }
 0x362   : > { %v11617_v57 = vld [vmem:[%s13250_s19 + $0xa0] ss:$20 sps:$4 sm:$0xff]   ;;  %v11623_v61 = vld [vmem:[%s13250_s19 + $0xc8] ss:$20 sps:$4 sm:$0xff]   ;;  %v11626_v62 = vld [vmem:[%s13250_s19 + $0xd0] ss:$20 sps:$4 sm:$0xff]  }
 0x363   : > { %v1495_v4 = vrot.slane %v1487_v1, %v13020_v9  ;;  %v1502_v7 = vrot.slane %v1488_v2, %v13020_v9  ;;  %v11625_v59 = vld [vmem:[%s13250_s19 + $0xcc] ss:$20 sps:$4 sm:$0xff]   ;;  %v11628_v60 = vld [vmem:[%s13250_s19 + $0xd4] ss:$20 sps:$4 sm:$0xff]   ;;  %v11629_v0 = vld [vmem:[%s13250_s19 + $0xf0] ss:$20 sps:$4 sm:$0xff]  }
 0x364   : > { %3152 = vmatpush1.bf16.msra.mxu1 %v11614_v54  ;;  %v11631_v63 = vld [vmem:[%s13250_s19 + $0xf4] ss:$20 sps:$4 sm:$0xff]   ;;  %v11634_v1 = vld [vmem:[%s13250_s19 + $0xfc] ss:$20 sps:$4 sm:$0xff]   ;;  %v11632_v2 = vld [vmem:[%s13250_s19 + $0xf8] ss:$20 sps:$4 sm:$0xff]  }
 0x365   : > { %v1503_v8 = vcombine.low %v1495_v4, %v1502_v7  ;;  %3153 = vmatprep.subr.bf16.mxu1 %v11622_v56  ;;  %v11637_v4 = vld [vmem:[%s13250_s19 + $0x11c] ss:$20 sps:$4 sm:$0xff]   ;;  %v11640_v7 = vld [vmem:[%s13250_s19 + $0x124] ss:$20 sps:$4 sm:$0xff]  }
 0x366   : > { %v11658_v49 = vld [vmem:[%s13250_s19 + $0x19c] ss:$20 sps:$4 sm:$0xff]   ;;  %v11659_v54 = vld [vmem:[%s13250_s19 + $0x1b8] ss:$20 sps:$4 sm:$0xff]  }
 0x367   : > { %v13225_v10 = vadd.f32 %v1503_v8, %v13013_v5  ;;  %v11635_v8 = vld [vmem:[%s13250_s19 + $0x118] ss:$20 sps:$4 sm:$0xff]   ;;  %v11653_v50 = vld [vmem:[%s13250_s19 + $0x190] ss:$20 sps:$4 sm:$0xff]  }
 0x368   : > { %3154 = vmatpush1.bf16.msra.mxu1 %v11620_v58  ;;  %v11661_v52 = vld [vmem:[%s13250_s19 + $0x1bc] ss:$20 sps:$4 sm:$0xff]   ;;  %v11667_v56 = vld [vmem:[%s13250_s19 + $0x1e4] ss:$20 sps:$4 sm:$0xff]   ;;  %v11665_v58 = vld [vmem:[%s13250_s19 + $0x1e0] ss:$20 sps:$4 sm:$0xff]  }
 0x369   : > { %v1524_v34 = vrot.slane %v13225_v10, %v13020_v9  ;;  %v1517_v14 = vcombine.high %v13225_v10, %v13225_v10  ;;  %3155 = vmatprep.subr.bf16.mxu1 %v11628_v60  ;;  %v11673_v60 = vld [vmem:[%s13250_s19 + $0x20c] ss:$20 sps:$4 sm:$0xff]  }
 0x36b   : > { %v1532_v11 = vcombine.high %v1524_v34, %v1524_v34  ;;  %v1531_v6 = vrot.slane %v1517_v14, %v13020_v9  ;;  %v1546_v17 = vsel %vm399_vm1, %v1524_v34, 0.0  ;;  %v11638_v34 = vld [vmem:[%s13250_s19 + $0x120] ss:$20 sps:$4 sm:$0xff]  }
 0x36c   : > { %3156 = vmatpush1.bf16.msra.mxu1 %v11626_v62  ;;  %v11646_v14 = vld [vmem:[%s13250_s19 + $0x14c] ss:$20 sps:$4 sm:$0xff]   ;;  %v11671_v62 = vld [vmem:[%s13250_s19 + $0x208] ss:$20 sps:$4 sm:$0xff]  }
 0x36d   : > { %v1547_v16 = vsel %vm399_vm1, %v1532_v11, 0.0  ;;  %v1533_v24 = vcombine.high %v1531_v6, %v1531_v6  ;;  %v1549_v25 = vsel %vm399_vm1, %v1531_v6, 0.0  ;;  %3157 = vmatprep.subr.bf16.mxu1 %v11634_v1  ;;  %v11643_v11 = vld [vmem:[%s13250_s19 + $0x144] ss:$20 sps:$4 sm:$0xff]  }
 0x36e   : > { %v1548_v19 = vadd.f32 %v1547_v16, %v1546_v17  ;;  %v11644_v16 = vld [vmem:[%s13250_s19 + $0x148] ss:$20 sps:$4 sm:$0xff]   ;;  %v11677_v1 = vld [vmem:[%s13250_s19 + $0x230] ss:$20 sps:$4 sm:$0xff]  }
 0x36f   : > { %v1551_v31 = vsel %vm399_vm1, %v1533_v24, 0.0 }
 0x370   : > { %v1550_v27 = vadd.f32 %v1549_v25, %v1548_v19  ;;  %3158 = vmatpush1.bf16.msra.mxu1 %v11632_v2  ;;  %v11680_v2 = vld [vmem:[%s13250_s19 + $0x238] ss:$20 sps:$4 sm:$0xff]  }
 0x371   : > { %3159 = vmatprep.subr.bf16.mxu1 %v11640_v7  ;;  %v11685_v7 = vld [vmem:[%s13250_s19 + $0x25c] ss:$20 sps:$4 sm:$0xff]  }
 0x372   : > { %v1552_v37 = vadd.f32 %v1551_v31, %v1550_v27 }
 0x374   : > { %3160 = vmatpush1.bf16.msra.mxu1 %v11638_v34  ;;  %v11683_v34 = vld [vmem:[%s13250_s19 + $0x258] ss:$20 sps:$4 sm:$0xff]  }
 0x375   : > { %3161 = vmatprep.subr.bf16.mxu1 %v11646_v14  ;;  %v11691_v14 = vld [vmem:[%s13250_s19 + $0x284] ss:$20 sps:$4 sm:$0xff]  }
 0x378   : > { %3162 = vmatpush1.bf16.msra.mxu1 %v11644_v16  ;;  %v10153_v16 = vld [vmem:[%s13004_s18 + $0x4] ss:$8 sm:$0xf] }
 0x379   : > { %3163 = vmatprep.subr.bf16.mxu1 %v11652_v45 }
 0x37d   : > { %v1476_v18 = vpop.f32.mrb[8].mxu1 }
 0x37e   : > { %v1477_v5 = vadd.f32 %v1476_v18, %v1146_v15  ;;  %v11352_v20 = vpop.f32.mrb[9].mxu1  ;;  %v11641_v15 = vld [vmem:[%s13250_s19 + $0x140] ss:$20 sps:$4 sm:$0xff]  }
 0x37f   : > { %v1479_v21 = vpop.f32.mrb[10].mxu1 }
 0x380   : > { %v1510_v22 = vrot.slane %v1477_v5, %v13020_v9  ;;  %v11353_v35 = vpop.f32.mrb[11].mxu1 }
 0x382   : > { %v13238_v28 = vadd.f32 %v1510_v22, %v13025_v12  ;;  %v11593_v12 = vld [vmem:[%s13250_s19] ss:$20 sps:$4 sm:$0xff]  }
 0x383   : > { %3023 = vmatpush1.bf16.msra.mxu0 %v11593_v12 }
 0x384   : > { %v1540_v29 = vrot.slane %v13238_v28, %v13020_v9  ;;  %3024 = vmatprep.subr.bf16.mxu0 %v11601_v44  ;;  %v11649_v44 = vld [vmem:[%s13250_s19 + $0x16c] ss:$20 sps:$4 sm:$0xff]  }
 0x386   : > { %v1553_v38 = vsel %vm407_vm2, %v1540_v29, 0.0 }
 0x387   : > { %v1554_v39 = vadd.f32 %v1553_v38, %v1552_v37  ;;  %3025 = vmatpush1.bf16.msra.mxu0 %v11599_v43 }
 0x388   : > { %3026 = vmatprep.subr.bf16.mxu0 %v11607_v47  ;;  %v11650_v47 = vld [vmem:[%s13250_s19 + $0x170] ss:$20 sps:$4 sm:$0xff]  }
 0x389   : > { %1555 = vadd.xlane.f32.xlu1 %v1554_v39  ;;  %3164 = vmatpush1.bf16.msra.mxu1 %v11650_v47 }
 0x38a   : > { %3165 = vmatprep.subr.bf16.mxu1 %v11658_v49 }
 0x38b   : > { %3027 = vmatpush1.bf16.msra.mxu0 %v11605_v48  ;;  %v11655_v48 = vld [vmem:[%s13250_s19 + $0x194] ss:$20 sps:$4 sm:$0xff]  }
 0x38c   : > { %3028 = vmatprep.subr.bf16.mxu0 %v11613_v51  ;;  %v11656_v51 = vld [vmem:[%s13250_s19 + $0x198] ss:$20 sps:$4 sm:$0xff]  }
 0x38d   : > { %3166 = vmatpush1.bf16.msra.mxu1 %v11656_v51 }
 0x38f   : > { %3029 = vmatpush1.bf16.msra.mxu0 %v11611_v53  ;;  %v11664_v53 = vld [vmem:[%s13250_s19 + $0x1c4] ss:$20 sps:$4 sm:$0xff]  }
 0x390   : > { %3030 = vmatprep.subr.bf16.mxu0 %v11619_v55  ;;  %v11662_v55 = vld [vmem:[%s13250_s19 + $0x1c0] ss:$20 sps:$4 sm:$0xff]   ;;  %3167 = vmatprep.subr.bf16.mxu1 %v11664_v53 }
 0x391   : > { %3168 = vmatpush1.bf16.msra.mxu1 %v11662_v55 }
 0x393   : > { %3031 = vmatpush1.bf16.msra.mxu0 %v11617_v57  ;;  %v11670_v57 = vld [vmem:[%s13250_s19 + $0x1ec] ss:$20 sps:$4 sm:$0xff]  }
 0x394   : > { %3032 = vmatprep.subr.bf16.mxu0 %v11625_v59  ;;  %v11668_v59 = vld [vmem:[%s13250_s19 + $0x1e8] ss:$20 sps:$4 sm:$0xff]   ;;  %3169 = vmatprep.subr.bf16.mxu1 %v11670_v57 }
 0x395   : > { %3170 = vmatpush1.bf16.msra.mxu1 %v11668_v59 }
 0x397   : > { %3033 = vmatpush1.bf16.msra.mxu0 %v11623_v61  ;;  %v11676_v61 = vld [vmem:[%s13250_s19 + $0x214] ss:$20 sps:$4 sm:$0xff]  }
 0x398   : > { %3034 = vmatprep.subr.bf16.mxu0 %v11631_v63  ;;  %v11674_v63 = vld [vmem:[%s13250_s19 + $0x210] ss:$20 sps:$4 sm:$0xff]   ;;  %3171 = vmatprep.subr.bf16.mxu1 %v11676_v61 }
 0x399   : > { %3172 = vmatpush1.bf16.msra.mxu1 %v11674_v63 }
 0x39b   : > { %3035 = vmatpush1.bf16.msra.mxu0 %v11629_v0  ;;  %v11679_v0 = vld [vmem:[%s13250_s19 + $0x234] ss:$20 sps:$4 sm:$0xff]  }
 0x39c   : > { %3036 = vmatprep.subr.bf16.mxu0 %v11637_v4  ;;  %v11682_v4 = vld [vmem:[%s13250_s19 + $0x23c] ss:$20 sps:$4 sm:$0xff]  }
 0x39d   : > { %3173 = vmatprep.subr.bf16.mxu1 %v11682_v4 }
 0x39e   : > { %3174 = vmatpush1.bf16.msra.mxu1 %v11680_v2  ;;  %v11692_v2 = vld [vmem:[%s13250_s19 + $0x288] ss:$20 sps:$4 sm:$0xff]  }
 0x39f   : > { %3037 = vmatpush1.bf16.msra.mxu0 %v11635_v8  ;;  %v11688_v8 = vld [vmem:[%s13250_s19 + $0x264] ss:$20 sps:$4 sm:$0xff]  }
 0x3a0   : > { %3038 = vmatprep.subr.bf16.mxu0 %v11643_v11  ;;  %v11686_v11 = vld [vmem:[%s13250_s19 + $0x260] ss:$20 sps:$4 sm:$0xff]   ;;  %3175 = vmatprep.subr.bf16.mxu1 %v11688_v8 }
 0x3a2   : > { %3176 = vmatpush1.bf16.msra.mxu1 %v11686_v11  ;;  %v11700_v11 = vld [vmem:[%s13250_s19 + $0x2b4] ss:$20 sps:$4 sm:$0xff]  }
 0x3a3   : > { %3039 = vmatpush1.bf16.msra.mxu0 %v11641_v15  ;;  %v11694_v15 = vld [vmem:[%s13250_s19 + $0x28c] ss:$20 sps:$4 sm:$0xff]  }
 0x3a4   : > { %3040 = vmatprep.subr.bf16.mxu0 %v11649_v44  ;;  %3186 = vmatprep.subr.bf16.mxu1 %v11694_v15  ;;  %v11698_v15 = vld [vmem:[%s13250_s19 + $0x2b0] ss:$20 sps:$4 sm:$0xff]  }
 0x3a7   : > { %3041 = vmatpush1.bf16.msra.mxu0 %v11647_v46 }
 0x3a8   : > { %3042 = vmatprep.subr.bf16.mxu0 %v11655_v48 }
 0x3ab   : > { %3043 = vmatpush1.bf16.msra.mxu0 %v11653_v50 }
 0x3ac   : > { %3044 = vmatprep.subr.bf16.mxu0 %v11661_v52 }
 0x3af   : > { %3045 = vmatpush1.bf16.msra.mxu0 %v11659_v54 }
 0x3b0   : > { %3046 = vmatprep.subr.bf16.mxu0 %v11667_v56 }
 0x3b3   : > { %3047 = vmatpush1.bf16.msra.mxu0 %v11665_v58 }
 0x3b4   : > { %3048 = vmatprep.subr.bf16.mxu0 %v11673_v60 }
 0x3b7   : > { %3049 = vmatpush1.bf16.msra.mxu0 %v11671_v62 }
 0x3b8   : > { %3050 = vmatprep.subr.bf16.mxu0 %v11679_v0 }
 0x3bb   : > { %3051 = vmatpush1.bf16.msra.mxu0 %v11677_v1 }
 0x3bc   : > { %3052 = vmatprep.subr.bf16.mxu0 %v11685_v7 }
 0x3bf   : > { %3053 = vmatpush1.bf16.msra.mxu0 %v11683_v34  ;;  %v11697_v34 = vld [vmem:[%s13250_s19 + $0x2ac] ss:$20 sps:$4 sm:$0xff]  }
 0x3c0   : > { %3063 = vmatprep.subr.bf16.mxu0 %v11691_v14  ;;  %v11695_v14 = vld [vmem:[%s13250_s19 + $0x2a8] ss:$20 sps:$4 sm:$0xff]  }
 0x416   : > { %v1556_v6 = vpop.xlane.xlu1 %1555 }
 0x417   : > { %v1557_v17 = vmul.f32 0.001633987, %v1556_v6  ;;  %v10154_v6 = vld [vmem:[%s13004_s18 + $0x4] ss:$8 sm:$0x10] }
 0x419   : > { %v1565_v18 = vrot.slane %v1557_v17, %v13045_v30  ;;  %v10155_v17 = vld [vmem:[%s13004_s18 + $0x5] ss:$8 sm:$0xf] }
 0x41b   : > { %v13290_v19 = vsub.f32 %v13225_v10, %v1565_v18  ;;  %v13293_v5 = vsub.f32 %v13238_v28, %v1565_v18  ;;  %v10156_v18 = vld [vmem:[%s13004_s18 + $0x5] ss:$8 sm:$0x10] }
 0x41d   : > { %v1569_v20 = vmul.f32 %v13290_v19, %v13290_v19  ;;  %v1570_v35 = vmul.f32 %v13293_v5, %v13293_v5 }
 0x41f   : > { %v1573_v21 = vcombine.high %v1569_v20, %v1569_v20  ;;  %v1580_v22 = vrot.slane %v1569_v20, %v13020_v9  ;;  %v1596_v38 = vrot.slane %v1570_v35, %v13020_v9  ;;  %v1683_v35 = vor.u32 %v10156_v18, %v10155_v17  ;;  %v11701_v17 = vld [vmem:[%s13250_s19 + $0x2d0] ss:$20 sps:$4 sm:$0xff]   ;;  %v11704_v18 = vld [vmem:[%s13250_s19 + $0x2d8] ss:$20 sps:$4 sm:$0xff]  }
 0x421   : > { %v1587_v24 = vrot.slane %v1573_v21, %v13020_v9  ;;  %v1588_v25 = vcombine.high %v1580_v22, %v1580_v22  ;;  %v1602_v29 = vsel %vm399_vm1, %v1580_v22, 0.0  ;;  %v1609_v42 = vsel %vm407_vm2, %v1596_v38, 0.0 }
 0x422   : > { %v1630_v21 = vor.u32 %v10154_v6, %v10153_v16  ;;  %v1692_v38 = vrot.slane %v1683_v35, %v13105_v32  ;;  %v1704_v49 = vrot.slane %v1683_v35, %v13132_v13  ;;  %v11703_v16 = vld [vmem:[%s13250_s19 + $0x2d4] ss:$20 sps:$4 sm:$0xff]   ;;  %v11706_v6 = vld [vmem:[%s13250_s19 + $0x2dc] ss:$20 sps:$4 sm:$0xff]  }
 0x423   : > { %v1589_v27 = vcombine.high %v1587_v24, %v1587_v24  ;;  %v1603_v31 = vsel %vm399_vm1, %v1588_v25, 0.0  ;;  %v1605_v39 = vsel %vm399_vm1, %v1587_v24, 0.0 }
 0x424   : > { %v1604_v37 = vadd.f32 %v1603_v31, %v1602_v29  ;;  %v1635_v25 = vrot.slane %v1630_v21, %v13100_v26  ;;  %v1643_v29 = vrot.slane %v1630_v21, %v13108_v33  ;;  %v1647_v31 = vrot.slane %v1630_v21, %v13111_v36 }
 0x425   : > { %v1607_v40 = vsel %vm399_vm1, %v1589_v27, 0.0  ;;  %v1639_v27 = vrot.slane %v1630_v21, %v13105_v32  ;;  %v1651_v46 = vrot.slane %v1630_v21, %v13132_v13  ;;  %v1728_v57 = vrot.slane %v1704_v49, %v13020_v9  ;;  %v11712_v21 = vld [vmem:[%s13250_s19 + $0x304] ss:$20 sps:$4 sm:$0xff]   ;;  %v11737_v49 = vld [vmem:[%s13250_s19 + $0x3c0] ss:$20 sps:$4 sm:$0xff]  }
 0x426   : > { %v1606_v12 = vadd.f32 %v1605_v39, %v1604_v37  ;;  %v1688_v37 = vrot.slane %v1683_v35, %v13100_v26  ;;  %v1696_v39 = vrot.slane %v1683_v35, %v13108_v33 }
 0x427   : > { %v1675_v53 = vrot.slane %v1651_v46, %v13020_v9  ;;  %v11734_v46 = vld [vmem:[%s13250_s19 + $0x3a0] ss:$20 sps:$4 sm:$0xff]  }
 0x428   : > { %v1608_v41 = vadd.f32 %v1607_v40, %v1606_v12  ;;  %v1700_v12 = vrot.slane %v1683_v35, %v13111_v36  ;;  %v1652_v40 = vcombine.low %v1635_v25, %v1639_v27  ;;  %v11710_v35 = vld [vmem:[%s13250_s19 + $0x300] ss:$20 sps:$4 sm:$0xff]  }
 0x429   : > { %v11718_v25 = vld [vmem:[%s13250_s19 + $0x32c] ss:$20 sps:$4 sm:$0xff]  }
 0x42a   : > { %v1610_v43 = vadd.f32 %v1609_v42, %v1608_v41  ;;  %v1653_v41 = vcombine.low %v1643_v29, %v1647_v31  ;;  %v1705_v42 = vcombine.low %v1688_v37, %v1692_v38  ;;  %v1660_v44 = vrot.slane %v1652_v40, %v13020_v9  ;;  %v11713_v27 = vld [vmem:[%s13250_s19 + $0x320] ss:$20 sps:$4 sm:$0xff]   ;;  %v11716_v29 = vld [vmem:[%s13250_s19 + $0x328] ss:$20 sps:$4 sm:$0xff]  }
 0x42b   : > { %v11721_v31 = vld [vmem:[%s13250_s19 + $0x34c] ss:$20 sps:$4 sm:$0xff]   ;;  %v11724_v37 = vld [vmem:[%s13250_s19 + $0x354] ss:$20 sps:$4 sm:$0xff]   ;;  %v11730_v40 = vld [vmem:[%s13250_s19 + $0x37c] ss:$20 sps:$4 sm:$0xff]  }
 0x42c   : > { %1611 = vadd.xlane.f32.xlu1 %v1610_v43  ;;  %v1706_v43 = vcombine.low %v1696_v39, %v1700_v12  ;;  %v1667_v45 = vrot.slane %v1653_v41, %v13020_v9  ;;  %v1713_v47 = vrot.slane %v1705_v42, %v13020_v9  ;;  %v11719_v38 = vld [vmem:[%s13250_s19 + $0x348] ss:$20 sps:$4 sm:$0xff]   ;;  %v11722_v39 = vld [vmem:[%s13250_s19 + $0x350] ss:$20 sps:$4 sm:$0xff]   ;;  %v11728_v42 = vld [vmem:[%s13250_s19 + $0x378] ss:$20 sps:$4 sm:$0xff]  }
 0x42d   : > { %v11727_v12 = vld [vmem:[%s13250_s19 + $0x374] ss:$20 sps:$4 sm:$0xff]   ;;  %v11725_v41 = vld [vmem:[%s13250_s19 + $0x370] ss:$20 sps:$4 sm:$0xff]  }
 0x42e   : > { %v1720_v48 = vrot.slane %v1706_v43, %v13020_v9  ;;  %v1668_v52 = vcombine.low %v1660_v44, %v1667_v45  ;;  %v11733_v43 = vld [vmem:[%s13250_s19 + $0x39c] ss:$20 sps:$4 sm:$0xff]   ;;  %v11736_v44 = vld [vmem:[%s13250_s19 + $0x3a4] ss:$20 sps:$4 sm:$0xff]  }
 0x42f   : > { %v11731_v45 = vld [vmem:[%s13250_s19 + $0x398] ss:$20 sps:$4 sm:$0xff]  }
 0x430   : > { %v1721_v56 = vcombine.low %v1713_v47, %v1720_v48  ;;  %v11739_v47 = vld [vmem:[%s13250_s19 + $0x3c4] ss:$20 sps:$4 sm:$0xff]   ;;  %v11742_v48 = vld [vmem:[%s13250_s19 + $0x3cc] ss:$20 sps:$4 sm:$0xff]  }
 0x4b9   : > { %v1612_v20 = vpop.xlane.xlu1 %1611 }
 0x4ba   : > { %v1613_v22 = vmul.f32 0.001633987, %v1612_v20  ;;  %v11709_v20 = vld [vmem:[%s13250_s19 + $0x2fc] ss:$20 sps:$4 sm:$0xff]  }
 0x4bc   : > { %v1614_v24 = vadd.f32 1e-05, %v1613_v22  ;;  %v11707_v22 = vld [vmem:[%s13250_s19 + $0x2f8] ss:$20 sps:$4 sm:$0xff]  }
 0x4be   : > { %12816 = vrsqrt.f32 %v1614_v24  ;;  %v11715_v24 = vld [vmem:[%s13250_s19 + $0x324] ss:$20 sps:$4 sm:$0xff]  }
 0x4c8   : > { %v12817_v50 = vpop.eup %12816 }
 0x4c9   : > { %v1623_v51 = vrot.slane %v12817_v50, %v13045_v30  ;;  %v11740_v50 = vld [vmem:[%s13250_s19 + $0x3c8] ss:$20 sps:$4 sm:$0xff]  }
 0x4cb   : > { %v1626_v54 = vmul.f32 %v1623_v51, %v13293_v5  ;;  %v1625_v55 = vmul.f32 %v1623_v51, %v13290_v19  ;;  %v11689_v5 = vld [vmem:[%s13250_s19 + $0x280] ss:$20 sps:$4 sm:$0xff]  }
 0x4cc   : > { %v11745_v51 = vld [vmem:[%s13250_s19 + $0x3ec] ss:$20 sps:$4 sm:$0xff]  }
 0x4cd   : > { %v1678_v58 = vmul.f32 %v1668_v52, %v1625_v55  ;;  %v1679_v59 = vmul.f32 %v1675_v53, %v1626_v54  ;;  %v11748_v52 = vld [vmem:[%s13250_s19 + $0x3f4] ss:$20 sps:$4 sm:$0xff]   ;;  %v11746_v54 = vld [vmem:[%s13250_s19 + $0x3f0] ss:$20 sps:$4 sm:$0xff]  }
 0x4ce   : > { %v11743_v53 = vld [vmem:[%s13250_s19 + $0x3e8] ss:$20 sps:$4 sm:$0xff]  }
 0x4cf   : > { %v1731_v60 = vadd.f32 %v1721_v56, %v1678_v58  ;;  %v13360_v61 = vadd.f32 %v1728_v57, %v1679_v59  ;;  %v11751_v55 = vld [vmem:[%s13250_s19 + $0x414] ss:$20 sps:$4 sm:$0xff]   ;;  %v11754_v56 = vld [vmem:[%s13250_s19 + $0x41c] ss:$20 sps:$4 sm:$0xff]   ;;  %v11752_v58 = vld [vmem:[%s13250_s19 + $0x418] ss:$20 sps:$4 sm:$0xff]  }
 0x4d0   : > { %v11749_v57 = vld [vmem:[%s13250_s19 + $0x410] ss:$20 sps:$4 sm:$0xff]  }
 0x4d1   : > { %v1742_v62 = vrot.slane %v1731_v60, %v13020_v9  ;;  %v1735_v63 = vcombine.high %v1731_v60, %v1731_v60  ;;  %v11757_v59 = vld [vmem:[%s13250_s19 + $0x43c] ss:$20 sps:$4 sm:$0xff]   ;;  %v11760_v60 = vld [vmem:[%s13250_s19 + $0x444] ss:$20 sps:$4 sm:$0xff]  }
 0x4d3   : > { %v1750_v0 = vcombine.high %v1742_v62, %v1742_v62  ;;  %v13364_v1 = vrot.slane %v1735_v63, %v13020_v9  ;;  %v13372_v7 = vpack.c.bf16 %v1742_v62, %v1742_v62  ;;  %v11755_v62 = vld [vmem:[%s13250_s19 + $0x438] ss:$20 sps:$4 sm:$0xff]   ;;  %v11758_v63 = vld [vmem:[%s13250_s19 + $0x440] ss:$20 sps:$4 sm:$0xff]  }
 0x4d5   : > { %v13366_v19 = vpack.c.bf16 %v1750_v0, %v1750_v0  ;;  %v1751_v4 = vcombine.high %v13364_v1, %v13364_v1  ;;  %v11763_v0 = vld [vmem:[%s13250_s19 + $0x464] ss:$20 sps:$4 sm:$0xff]  }
 0x4d7   : > { %3054 = vmatprep.mubr.bf16.mxu0 %v13366_v19  ;;  %3177 = vmatprep.mubr.bf16.mxu1 %v13366_v19  ;;  %v13376_v8 = vpack.c.bf16 %v1751_v4, %v1751_v4  ;;  %v11764_v4 = vld [vmem:[%s13250_s19 + $0x468] ss:$20 sps:$4 sm:$0xff]  }
 0x4d8   : > { %3055 = vmatmul.mubr.bf16.vlgmr.msra.gmra.mrb[12].mxu0 %v13372_v7  ;;  %3178 = vmatmul.mubr.bf16.vlgmr.msra.gmra.mrb[12].mxu1 %v13372_v7 }
 0x4d9   : > { %3064 = vmatpush1.bf16.msra.mxu0 %v11689_v5  ;;  %3187 = vmatpush1.bf16.msra.mxu1 %v11692_v2  ;;  %v11766_v5 = vld [vmem:[%s13250_s19 + $0x46c] ss:$20 sps:$4 sm:$0xff]  }
 0x4da   : > { %3095 = vmatprep.mubr.bf16.mxu0 %v13376_v8  ;;  %3218 = vmatprep.mubr.bf16.mxu1 %v13376_v8  ;;  %v11761_v2 = vld [vmem:[%s13250_s19 + $0x460] ss:$20 sps:$4 sm:$0xff]  }
 0x4db   : > { %3065 = vmatprep.subr.bf16.mxu0 %v11697_v34  ;;  %3188 = vmatprep.subr.bf16.mxu1 %v11700_v11  ;;  %v11769_v34 = vld [vmem:[%s13250_s19 + $0x48c] ss:$20 sps:$4 sm:$0xff]   ;;  %v11772_v11 = vld [vmem:[%s13250_s19 + $0x494] ss:$20 sps:$4 sm:$0xff]  }
 0x4dd   : > { %3066 = vmatpush1.bf16.msra.mxu0 %v11695_v14  ;;  %3189 = vmatpush1.bf16.msra.mxu1 %v11698_v15  ;;  %v11767_v14 = vld [vmem:[%s13250_s19 + $0x488] ss:$20 sps:$4 sm:$0xff]   ;;  %v11770_v15 = vld [vmem:[%s13250_s19 + $0x490] ss:$20 sps:$4 sm:$0xff]  }
 0x4de   : > { %3067 = vmatprep.subr.bf16.mxu0 %v11703_v16  ;;  %3190 = vmatprep.subr.bf16.mxu1 %v11706_v6  ;;  %v11775_v16 = vld [vmem:[%s13250_s19 + $0x4b4] ss:$20 sps:$4 sm:$0xff]   ;;  %v11778_v6 = vld [vmem:[%s13250_s19 + $0x4bc] ss:$20 sps:$4 sm:$0xff]  }
 0x4e1   : > { %3068 = vmatpush1.bf16.msra.mxu0 %v11701_v17  ;;  %3191 = vmatpush1.bf16.msra.mxu1 %v11704_v18  ;;  %v11773_v17 = vld [vmem:[%s13250_s19 + $0x4b0] ss:$20 sps:$4 sm:$0xff]   ;;  %v11776_v18 = vld [vmem:[%s13250_s19 + $0x4b8] ss:$20 sps:$4 sm:$0xff]  }
 0x4e2   : > { %3069 = vmatprep.subr.bf16.mxu0 %v11709_v20  ;;  %3192 = vmatprep.subr.bf16.mxu1 %v11712_v21  ;;  %v11781_v20 = vld [vmem:[%s13250_s19 + $0x4dc] ss:$20 sps:$4 sm:$0xff]   ;;  %v11784_v21 = vld [vmem:[%s13250_s19 + $0x4e4] ss:$20 sps:$4 sm:$0xff]  }
 0x4e5   : > { %3070 = vmatpush1.bf16.msra.mxu0 %v11707_v22  ;;  %3193 = vmatpush1.bf16.msra.mxu1 %v11710_v35  ;;  %v11779_v22 = vld [vmem:[%s13250_s19 + $0x4d8] ss:$20 sps:$4 sm:$0xff]   ;;  %v11782_v35 = vld [vmem:[%s13250_s19 + $0x4e0] ss:$20 sps:$4 sm:$0xff]  }
 0x4e6   : > { %3071 = vmatprep.subr.bf16.mxu0 %v11715_v24  ;;  %3194 = vmatprep.subr.bf16.mxu1 %v11718_v25  ;;  %v11787_v24 = vld [vmem:[%s13250_s19 + $0x504] ss:$20 sps:$4 sm:$0xff]   ;;  %v11790_v25 = vld [vmem:[%s13250_s19 + $0x50c] ss:$20 sps:$4 sm:$0xff]  }
 0x4e9   : > { %3072 = vmatpush1.bf16.msra.mxu0 %v11713_v27  ;;  %3195 = vmatpush1.bf16.msra.mxu1 %v11716_v29  ;;  %v11785_v27 = vld [vmem:[%s13250_s19 + $0x500] ss:$20 sps:$4 sm:$0xff]   ;;  %v11788_v29 = vld [vmem:[%s13250_s19 + $0x508] ss:$20 sps:$4 sm:$0xff]  }
 0x4ea   : > { %3073 = vmatprep.subr.bf16.mxu0 %v11721_v31  ;;  %3196 = vmatprep.subr.bf16.mxu1 %v11724_v37  ;;  %v13448_v31 = vpack.c.bf16 %v13364_v1, %v13364_v1  ;;  %v11793_v37 = vld [vmem:[%s13250_s19 + $0x52c] ss:$20 sps:$4 sm:$0xff]   ;;  %v11799_v1 = vld [vmem:[%s13250_s19 + $0x554] ss:$20 sps:$4 sm:$0xff]  }
 0x4ed   : > { %3074 = vmatpush1.bf16.msra.mxu0 %v11719_v38  ;;  %3197 = vmatpush1.bf16.msra.mxu1 %v11722_v39  ;;  %v11796_v38 = vld [vmem:[%s13250_s19 + $0x534] ss:$20 sps:$4 sm:$0xff]  }
 0x4ee   : > { %3075 = vmatprep.subr.bf16.mxu0 %v11727_v12  ;;  %3198 = vmatprep.subr.bf16.mxu1 %v11730_v40  ;;  %v11791_v39 = vld [vmem:[%s13250_s19 + $0x528] ss:$20 sps:$4 sm:$0xff]   ;;  %v11794_v12 = vld [vmem:[%s13250_s19 + $0x530] ss:$20 sps:$4 sm:$0xff]  }
 0x4ef   : > { %v11802_v40 = vld [vmem:[%s13250_s19 + $0x55c] ss:$20 sps:$4 sm:$0xff]  }
 0x4f1   : > { %3076 = vmatpush1.bf16.msra.mxu0 %v11725_v41  ;;  %3199 = vmatpush1.bf16.msra.mxu1 %v11728_v42  ;;  %v11797_v41 = vld [vmem:[%s13250_s19 + $0x550] ss:$20 sps:$4 sm:$0xff]   ;;  %v11800_v42 = vld [vmem:[%s13250_s19 + $0x558] ss:$20 sps:$4 sm:$0xff]  }
 0x4f2   : > { %3077 = vmatprep.subr.bf16.mxu0 %v11733_v43  ;;  %3200 = vmatprep.subr.bf16.mxu1 %v11736_v44  ;;  %v11805_v43 = vld [vmem:[%s13250_s19 + $0x57c] ss:$20 sps:$4 sm:$0xff]   ;;  %v11808_v44 = vld [vmem:[%s13250_s19 + $0x584] ss:$20 sps:$4 sm:$0xff]  }
 0x4f5   : > { %3078 = vmatpush1.bf16.msra.mxu0 %v11731_v45  ;;  %3201 = vmatpush1.bf16.msra.mxu1 %v11734_v46  ;;  %v11803_v45 = vld [vmem:[%s13250_s19 + $0x578] ss:$20 sps:$4 sm:$0xff]   ;;  %v11806_v46 = vld [vmem:[%s13250_s19 + $0x580] ss:$20 sps:$4 sm:$0xff]  }
 0x4f6   : > { %3079 = vmatprep.subr.bf16.mxu0 %v11739_v47  ;;  %3202 = vmatprep.subr.bf16.mxu1 %v11742_v48  ;;  %v11811_v47 = vld [vmem:[%s13250_s19 + $0x5a4] ss:$20 sps:$4 sm:$0xff]   ;;  %v11814_v48 = vld [vmem:[%s13250_s19 + $0x5ac] ss:$20 sps:$4 sm:$0xff]  }
 0x4f9   : > { %3080 = vmatpush1.bf16.msra.mxu0 %v11737_v49  ;;  %3203 = vmatpush1.bf16.msra.mxu1 %v11740_v50  ;;  %v11809_v49 = vld [vmem:[%s13250_s19 + $0x5a0] ss:$20 sps:$4 sm:$0xff]   ;;  %v11812_v50 = vld [vmem:[%s13250_s19 + $0x5a8] ss:$20 sps:$4 sm:$0xff]  }
 0x4fa   : > { %3081 = vmatprep.subr.bf16.mxu0 %v11745_v51  ;;  %3204 = vmatprep.subr.bf16.mxu1 %v11748_v52  ;;  %v11817_v51 = vld [vmem:[%s13250_s19 + $0x5cc] ss:$20 sps:$4 sm:$0xff]   ;;  %v11820_v52 = vld [vmem:[%s13250_s19 + $0x5d4] ss:$20 sps:$4 sm:$0xff]  }
 0x4fd   : > { %3082 = vmatpush1.bf16.msra.mxu0 %v11743_v53  ;;  %3205 = vmatpush1.bf16.msra.mxu1 %v11746_v54  ;;  %v2000_v53 = vld [vmem:[%s13250_s19 + $0x5f0] sm:$0x33]  ;;  %v2001_v54 = vld [vmem:[%s13250_s19 + $0x5f8] sm:$0x33] }
 0x4fe   : > { %3083 = vmatprep.subr.bf16.mxu0 %v11751_v55  ;;  %3206 = vmatprep.subr.bf16.mxu1 %v11754_v56  ;;  %v11815_v55 = vld [vmem:[%s13250_s19 + $0x5c8] ss:$20 sps:$4 sm:$0xff]   ;;  %v11818_v56 = vld [vmem:[%s13250_s19 + $0x5d0] ss:$20 sps:$4 sm:$0xff]  }
 0x501   : > { %3084 = vmatpush1.bf16.msra.mxu0 %v11749_v57  ;;  %3207 = vmatpush1.bf16.msra.mxu1 %v11752_v58  ;;  %v10349_v57 = vcombine.high %v2000_v53, %v2000_v53  ;;  %v10351_v58 = vcombine.high %v2001_v54, %v2001_v54 }
 0x502   : > { %3085 = vmatprep.subr.bf16.mxu0 %v11757_v59  ;;  %3208 = vmatprep.subr.bf16.mxu1 %v11760_v60  ;;  %v10348_v59 = vcombine.low %v2000_v53, %v2000_v53  ;;  %v10350_v60 = vcombine.low %v2001_v54, %v2001_v54 }
 0x505   : > { %3086 = vmatpush1.bf16.msra.mxu0 %v11755_v62  ;;  %3209 = vmatpush1.bf16.msra.mxu1 %v11758_v63  ;;  %v3008_v62 = vsel %vm399_vm1, %v10348_v59, 0  ;;  %v3014_v63 = vsel %vm399_vm1, %v10350_v60, 0 }
 0x506   : > { %3087 = vmatprep.subr.bf16.mxu0 %v11763_v0  ;;  %3210 = vmatprep.subr.bf16.mxu1 %v11766_v5  ;;  %v1758_v0 = vrot.slane %v13360_v61, %v13020_v9  ;;  %v11825_v5 = vld [vmem:[%s13250_s19 + $0x150] ss:$20 sps:$4 sm:$0xff]   ;;  %v11831_v61 = vld [vmem:[%s13250_s19 + $0x38] ss:$20 sps:$4 sm:$0xff]  }
 0x509   : > { %3088 = vmatpush1.bf16.msra.mxu0 %v11761_v2  ;;  %3211 = vmatpush1.bf16.msra.mxu1 %v11764_v4  ;;  %v11826_v2 = vld [vmem:[%s13250_s19 + $0x3d0] ss:$20 sps:$4 sm:$0xff]  }
 0x50a   : > { %3089 = vmatprep.subr.bf16.mxu0 %v11769_v34  ;;  %3212 = vmatprep.subr.bf16.mxu1 %v11772_v11  ;;  %v11827_v4 = vld [vmem:[%s13250_s19 + $0x10] ss:$20 sps:$4 sm:$0xff]   ;;  %v13485_v34 = vpack.c.bf16 %v1758_v0, %v1758_v0 }
 0x50b   : > { %v11828_v11 = vld [vmem:[%s13250_s19 + $0x290] ss:$20 sps:$4 sm:$0xff]  }
 0x50d   : > { %3090 = vmatpush1.bf16.msra.mxu0 %v11767_v14  ;;  %3213 = vmatpush1.bf16.msra.mxu1 %v11770_v15  ;;  %v11829_v14 = vld [vmem:[%s13250_s19 + $0x178] ss:$20 sps:$4 sm:$0xff]  }
 0x50e   : > { %3091 = vmatprep.subr.bf16.mxu0 %v11775_v16  ;;  %3214 = vmatprep.subr.bf16.mxu1 %v11778_v6  ;;  %v11830_v15 = vld [vmem:[%s13250_s19 + $0x3f8] ss:$20 sps:$4 sm:$0xff]   ;;  %v11833_v6 = vld [vmem:[%s13250_s19 + $0x1a0] ss:$20 sps:$4 sm:$0xff]  }
 0x50f   : > { %v11832_v16 = vld [vmem:[%s13250_s19 + $0x2b8] ss:$20 sps:$4 sm:$0xff]  }
 0x511   : > { %3092 = vmatpush1.bf16.msra.mxu0 %v11773_v17  ;;  %3215 = vmatpush1.bf16.msra.mxu1 %v11776_v18  ;;  %v11834_v17 = vld [vmem:[%s13250_s19 + $0x420] ss:$20 sps:$4 sm:$0xff]  }
 0x512   : > { %3093 = vmatprep.subr.bf16.mxu0 %v11781_v20  ;;  %3216 = vmatprep.subr.bf16.mxu1 %v11784_v21  ;;  %v11835_v18 = vld [vmem:[%s13250_s19 + $0x60] ss:$20 sps:$4 sm:$0xff]   ;;  %v11837_v20 = vld [vmem:[%s13250_s19 + $0x1c8] ss:$20 sps:$4 sm:$0xff]  }
 0x513   : > { %v11838_v21 = vld [vmem:[%s13250_s19 + $0x448] ss:$20 sps:$4 sm:$0xff]  }
 0x515   : > { %3094 = vmatpush1.bf16.msra.mxu0 %v11779_v22  ;;  %3217 = vmatpush1.bf16.msra.mxu1 %v11782_v35  ;;  %v11840_v22 = vld [vmem:[%s13250_s19 + $0x308] ss:$20 sps:$4 sm:$0xff]   ;;  %v11841_v35 = vld [vmem:[%s13250_s19 + $0x1f0] ss:$20 sps:$4 sm:$0xff]  }
 0x516   : > { %3104 = vmatprep.subr.bf16.mxu0 %v11787_v24  ;;  %3227 = vmatprep.subr.bf16.mxu1 %v11790_v25  ;;  %v11842_v24 = vld [vmem:[%s13250_s19 + $0x470] ss:$20 sps:$4 sm:$0xff]  }
 0x517   : > { %v11843_v25 = vld [vmem:[%s13250_s19 + $0xb0] ss:$20 sps:$4 sm:$0xff]  }
 0x518   : > { %3096 = vmatmul.mubr.bf16.vlgmr.msra.gmra.mrb[12].mxu0 %v13448_v31  ;;  %3219 = vmatmul.mubr.bf16.vlgmr.msra.gmra.mrb[12].mxu1 %v13448_v31 }
 0x519   : > { %3105 = vmatpush1.bf16.msra.mxu0 %v11785_v27  ;;  %3228 = vmatpush1.bf16.msra.mxu1 %v11788_v29  ;;  %v11844_v27 = vld [vmem:[%s13250_s19 + $0x330] ss:$20 sps:$4 sm:$0xff]   ;;  %v11845_v29 = vld [vmem:[%s13250_s19 + $0x218] ss:$20 sps:$4 sm:$0xff]  }
 0x51a   : > { %3106 = vmatprep.subr.bf16.mxu0 %v11793_v37  ;;  %3229 = vmatprep.subr.bf16.mxu1 %v11796_v38  ;;  %v11846_v37 = vld [vmem:[%s13250_s19 + $0x498] ss:$20 sps:$4 sm:$0xff]  }
 0x51b   : > { %3136 = vmatprep.mubr.bf16.mxu0 %v12926_v3  ;;  %3259 = vmatprep.mubr.bf16.mxu1 %v12926_v3  ;;  %v11847_v38 = vld [vmem:[%s13250_s19 + $0xd8] ss:$20 sps:$4 sm:$0xff]  }
 0x51d   : > { %3107 = vmatpush1.bf16.msra.mxu0 %v11791_v39  ;;  %3230 = vmatpush1.bf16.msra.mxu1 %v11794_v12  ;;  %v11848_v39 = vld [vmem:[%s13250_s19 + $0x358] ss:$20 sps:$4 sm:$0xff]   ;;  %v11849_v12 = vld [vmem:[%s13250_s19 + $0x240] ss:$20 sps:$4 sm:$0xff]  }
 0x51e   : > { %3108 = vmatprep.subr.bf16.mxu0 %v11799_v1  ;;  %3231 = vmatprep.subr.bf16.mxu1 %v11802_v40  ;;  %v11850_v1 = vld [vmem:[%s13250_s19 + $0x4c0] ss:$20 sps:$4 sm:$0xff]  }
 0x51f   : > { %v11851_v40 = vld [vmem:[%s13250_s19 + $0x100] ss:$20 sps:$4 sm:$0xff]  }
 0x521   : > { %3109 = vmatpush1.bf16.msra.mxu0 %v11797_v41  ;;  %3232 = vmatpush1.bf16.msra.mxu1 %v11800_v42  ;;  %v11852_v41 = vld [vmem:[%s13250_s19 + $0x380] ss:$20 sps:$4 sm:$0xff]   ;;  %v11853_v42 = vld [vmem:[%s13250_s19 + $0x268] ss:$20 sps:$4 sm:$0xff]  }
 0x522   : > { %3110 = vmatprep.subr.bf16.mxu0 %v11805_v43  ;;  %3233 = vmatprep.subr.bf16.mxu1 %v11808_v44  ;;  %v11854_v43 = vld [vmem:[%s13250_s19 + $0x4e8] ss:$20 sps:$4 sm:$0xff]  }
 0x523   : > { %v11855_v44 = vld [vmem:[%s13250_s19 + $0x128] ss:$20 sps:$4 sm:$0xff]  }
 0x525   : > { %3111 = vmatpush1.bf16.msra.mxu0 %v11803_v45  ;;  %3234 = vmatpush1.bf16.msra.mxu1 %v11806_v46  ;;  %v11856_v45 = vld [vmem:[%s13250_s19 + $0x3a8] ss:$20 sps:$4 sm:$0xff]   ;;  %v11857_v46 = vld [vmem:[%s13250_s19 + $0x510] ss:$20 sps:$4 sm:$0xff]  }
 0x526   : > { %3112 = vmatprep.subr.bf16.mxu0 %v11811_v47  ;;  %3235 = vmatprep.subr.bf16.mxu1 %v11814_v48  ;;  %v11858_v47 = vld [vmem:[%s13250_s19 + $0x538] ss:$20 sps:$4 sm:$0xff]   ;;  %v11859_v48 = vld [vmem:[%s13250_s19 + $0x560] ss:$20 sps:$4 sm:$0xff]  }
 0x529   : > { %3113 = vmatpush1.bf16.msra.mxu0 %v11809_v49  ;;  %3236 = vmatpush1.bf16.msra.mxu1 %v11812_v50  ;;  %v11860_v49 = vld [vmem:[%s13250_s19 + $0x588] ss:$20 sps:$4 sm:$0xff]   ;;  %v11863_v50 = vld [vmem:[%s13250_s19 + $0x600] ss:$0 sps:$4 sm:$0x33]  }
 0x52a   : > { %3114 = vmatprep.subr.bf16.mxu0 %v11817_v51  ;;  %3237 = vmatprep.subr.bf16.mxu1 %v11820_v52  ;;  %v3020_v51 = vsel %vm399_vm1, %v11863_v50, 0 }
 0x52d   : > { %3115 = vmatpush1.bf16.msra.mxu0 %v11815_v55  ;;  %3238 = vmatpush1.bf16.msra.mxu1 %v11818_v56 }
 0x52e   : > { %10353 = vmatprep.subr.msk.bf16.mxu0 %vm399_vm1, %v10349_v57  ;;  %10355 = vmatprep.subr.msk.bf16.mxu1 %vm399_vm1, %v10351_v58 }
 0x531   : > { %3117 = vmatpush1.bf16.msra.mxu0 %v3008_v62  ;;  %3240 = vmatpush1.bf16.msra.mxu1 %v3014_v63 }
 0x532   : > { %11151 = vmatprep.subr.bf16.mxu0 %v11825_v5  ;;  %11173 = vmatprep.subr.bf16.mxu1 %v11826_v2  ;;  %v10358_v2 = vld [vmem:[%s13004_s18 + $0x6] ss:$8 sm:$0xf] }
 0x534   : > { %10354 = vmatmul.mubr.msk.bf16.vlgmr.msra.gmra.mrb[12].mxu0 %vm936_vm4, %v13485_v34  ;;  %10356 = vmatmul.mubr.msk.bf16.vlgmr.msra.gmra.mrb[12].mxu1 %vm936_vm4, %v13485_v34 }
 0x535   : > { %11152 = vmatpush3.bf16.msra.mxu0 %v11827_v4  ;;  %3300 = vmatprep.mubr.bf16.mxu0 %v13366_v19  ;;  %v11836_v19 = vld [vmem:[%s13250_s19 + $0x2e0] ss:$20 sps:$4 sm:$0xff]   ;;  %v10359_v4 = vld [vmem:[%s13004_s18 + $0x6] ss:$8 sm:$0x10] }
 0x536   : > { %11174 = vmatpush3.bf16.msra.mxu1 %v11828_v11  ;;  %3340 = vmatprep.mubr.bf16.mxu1 %v13376_v8  ;;  %v11839_v8 = vld [vmem:[%s13250_s19 + $0x88] ss:$20 sps:$4 sm:$0xff]   ;;  %v3424_v11 = vor.u32 %v10359_v4, %v10358_v2  ;;  %v11873_v4 = vld [vmem:[%s13578_s24 + $0x550] ss:$40 sps:$4 sm:$0xff]  }
 0x537   : > { %11153 = vmatprep.subr.bf16.mxu0 %v11829_v14  ;;  %11175 = vmatprep.subr.bf16.mxu1 %v11830_v15  ;;  %v11872_v2 = vld [vmem:[%s13578_s24 + $0x54] ss:$40 sps:$4 sm:$0xff]  }
 0x538   : > { %v3433_v14 = vrot.slane %v3424_v11, %v13105_v32  ;;  %v3437_v15 = vrot.slane %v3424_v11, %v13108_v33 }
 0x539   : > { %11154 = vmatpush3.bf16.msra.mxu0 %v11831_v61  ;;  %v3441_v61 = vrot.slane %v3424_v11, %v13111_v36 }
 0x53a   : > { %11176 = vmatpush3.bf16.msra.mxu1 %v11832_v16  ;;  %11155 = vmatprep.subr.bf16.mxu0 %v11833_v6 }
 0x53b   : > { %11177 = vmatprep.subr.bf16.mxu1 %v11834_v17 }
 0x53d   : > { %11156 = vmatpush3.bf16.msra.mxu0 %v11835_v18 }
 0x53e   : > { %11178 = vmatpush3.bf16.msra.mxu1 %v11836_v19  ;;  %11157 = vmatprep.subr.bf16.mxu0 %v11837_v20 }
 0x53f   : > { %11179 = vmatprep.subr.bf16.mxu1 %v11838_v21 }
 0x541   : > { %11158 = vmatpush3.bf16.msra.mxu0 %v11839_v8  ;;  %v3447_v8 = vcombine.low %v3437_v15, %v3441_v61  ;;  %v11881_v15 = vld [vmem:[%s13578_s24 + $0x5a4] ss:$40 sps:$4 sm:$0xff]   ;;  %v11879_v61 = vld [vmem:[%s13578_s24 + $0x5a0] ss:$40 sps:$4 sm:$0xff]  }
 0x542   : > { %11180 = vmatpush3.bf16.msra.mxu1 %v11840_v22  ;;  %11159 = vmatprep.subr.bf16.mxu0 %v11841_v35 }
 0x543   : > { %11181 = vmatprep.subr.bf16.mxu1 %v11842_v24 }
 0x545   : > { %11160 = vmatpush3.bf16.msra.mxu0 %v11843_v25 }
 0x546   : > { %11182 = vmatpush3.bf16.msra.mxu1 %v11844_v27  ;;  %11161 = vmatprep.subr.bf16.mxu0 %v11845_v29 }
 0x547   : > { %11183 = vmatprep.subr.bf16.mxu1 %v11846_v37  ;;  %v3461_v37 = vrot.slane %v3447_v8, %v13020_v9  ;;  %v11891_v8 = vld [vmem:[%s13578_s24 + $0x640] ss:$40 sps:$4 sm:$0xff]  }
 0x549   : > { %11162 = vmatpush3.bf16.msra.mxu0 %v11847_v38 }
 0x54a   : > { %11184 = vmatpush3.bf16.msra.mxu1 %v11848_v39  ;;  %11163 = vmatprep.subr.bf16.mxu0 %v11849_v12 }
 0x54b   : > { %11185 = vmatprep.subr.bf16.mxu1 %v11850_v1 }
 0x54d   : > { %11164 = vmatpush3.bf16.msra.mxu0 %v11851_v40 }
 0x54e   : > { %11186 = vmatpush3.bf16.msra.mxu1 %v11852_v41  ;;  %11165 = vmatprep.subr.bf16.mxu0 %v11853_v42  ;;  %v3445_v42 = vrot.slane %v3424_v11, %v13132_v13 }
 0x54f   : > { %11187 = vmatprep.subr.bf16.mxu1 %v11854_v43 }
 0x551   : > { %11166 = vmatpush3.bf16.msra.mxu0 %v11855_v44 }
 0x552   : > { %11188 = vmatpush3.bf16.msra.mxu1 %v11856_v45  ;;  %11354 = vmatprep.subr.bf16.mxu0 %v12924_v23 }
 0x554   : > { %3301 = vmatmul.mubr.bf16.vlgmr.msra.gmra.mrb[16].mxu0 %v13372_v7  ;;  %v11861_v7 = vld [vmem:[%s13250_s19 + $0x5b0] ss:$20 sps:$4 sm:$0xff]  }
 0x555   : > { %3341 = vmatmul.mubr.bf16.vlgmr.msra.gmra.mrb[16].mxu1 %v13448_v31  ;;  %11355 = vmatpush3.bf16.msra.mxu0 %v11857_v46  ;;  %v11862_v31 = vld [vmem:[%s13250_s19 + $0x5d8] ss:$20 sps:$4 sm:$0xff]  }
 0x556   : > { %11356 = vmatprep.subr.bf16.mxu0 %v12924_v23  ;;  %11368 = vmatprep.mubr.msk.bf16.mxu0 %vm12925_vm3, %v12924_v23 }
 0x559   : > { %11357 = vmatpush3.bf16.msra.mxu0 %v11858_v47 }
 0x55a   : > { %11358 = vmatprep.subr.bf16.mxu0 %v12924_v23 }
 0x55d   : > { %11359 = vmatpush3.bf16.msra.mxu0 %v11859_v48 }
 0x55e   : > { %11360 = vmatprep.subr.bf16.mxu0 %v12924_v23 }
 0x561   : > { %11361 = vmatpush3.bf16.msra.mxu0 %v11860_v49 }
 0x562   : > { %11362 = vmatprep.subr.bf16.mxu0 %v12924_v23 }
 0x565   : > { %11363 = vmatpush3.bf16.msra.mxu0 %v11861_v7 }
 0x566   : > { %11364 = vmatprep.subr.bf16.mxu0 %v12924_v23 }
 0x569   : > { %11365 = vmatpush3.bf16.msra.mxu0 %v11862_v31  ;;  %v3469_v31 = vrot.slane %v3445_v42, %v13020_v9  ;;  %v11914_v42 = vld [vmem:[%s13578_s24 + $0x284] ss:$40 sps:$4 sm:$0xff]  }
 0x56a   : > { %11366 = vmatprep.subr.bf16.mxu0 %v12924_v23 }
 0x56d   : > { %11367 = vmatpush3.bf16.msra.mxu0 %v3020_v51 }
 0x570   : > { %11369 = vmatmul.mubr.msk.bf16.vlgmr.msra.gmra.mrb[20].mxu0 %vm936_vm4, %v13485_v34  ;;  %v3429_v34 = vrot.slane %v3424_v11, %v13100_v26  ;;  %v11875_v11 = vld [vmem:[%s13578_s24 + $0x554] ss:$40 sps:$4 sm:$0xff]  }
 0x572   : > { %v3446_v21 = vcombine.low %v3429_v34, %v3433_v14  ;;  %v11878_v34 = vld [vmem:[%s13578_s24 + $0xa4] ss:$40 sps:$4 sm:$0xff]   ;;  %v11876_v14 = vld [vmem:[%s13578_s24 + $0xa0] ss:$40 sps:$4 sm:$0xff]  }
 0x574   : > { %v3454_v29 = vrot.slane %v3446_v21, %v13020_v9  ;;  %v11888_v21 = vld [vmem:[%s13578_s24 + $0x140] ss:$40 sps:$4 sm:$0xff]  }
 0x576   : > { %v3462_v39 = vcombine.low %v3454_v29, %v3461_v37  ;;  %v11900_v29 = vld [vmem:[%s13578_s24 + $0x1e0] ss:$40 sps:$4 sm:$0xff]   ;;  %v11905_v37 = vld [vmem:[%s13578_s24 + $0x6e4] ss:$40 sps:$4 sm:$0xff]  }
 0x607   : > { %v3138_v52 = vpop.f32.mrb[12].mxu0  ;;  %v3261_v53 = vpop.f32.mrb[12].mxu1 }
 0x608   : > { %v3140_v54 = vpop.f32.mrb[13].mxu0  ;;  %v3263_v55 = vpop.f32.mrb[13].mxu1 }
 0x609   : > { %v3393_v56 = vcombine.low %v3138_v52, %v3140_v54  ;;  %v3394_v57 = vcombine.low %v3261_v53, %v3263_v55  ;;  %v3142_v58 = vpop.f32.mrb[14].mxu0  ;;  %v3265_v59 = vpop.f32.mrb[14].mxu1 }
 0x60a   : > { %v3143_v60 = vpop.f32.mrb[15].mxu0  ;;  %v3266_v62 = vpop.f32.mrb[15].mxu1 }
 0x60b   : > { %v3401_v63 = vrot.slane %v3393_v56, %v13020_v9  ;;  %v3408_v0 = vrot.slane %v3394_v57, %v13020_v9  ;;  %v11866_v62 = vld [vmem:[%s13578_s24 + $0x4] ss:$40 sps:$4 sm:$0xff]  }
 0x60c   : > { %6074 = vmatprep.subr.bf16.mxu1 %v11866_v62 }
 0x60d   : > { %v3409_v5 = vcombine.low %v3401_v63, %v3408_v0  ;;  %v11867_v63 = vld [vmem:[%s13578_s24 + $0x500] ss:$40 sps:$4 sm:$0xff]   ;;  %v11869_v0 = vld [vmem:[%s13578_s24 + $0x504] ss:$40 sps:$4 sm:$0xff]  }
 0x60e   : > { %6115 = vmatprep.subr.bf16.mxu0 %v11869_v0 }
 0x60f   : > { %v3419_v38 = vadd.f32 %v3409_v5, %v13225_v10  ;;  %v11870_v5 = vld [vmem:[%s13578_s24 + $0x50] ss:$40 sps:$4 sm:$0xff]   ;;  %6116 = vmatpush1.bf16.msra.mxu0 %v11867_v63 }
 0x610   : > { %6117 = vmatprep.subr.bf16.mxu0 %v11875_v11  ;;  %v11923_v11 = vld [vmem:[%s13578_s24 + $0x7d4] ss:$40 sps:$4 sm:$0xff]  }
 0x611   : > { %v13554_v12 = vadd.f32 %v3462_v39, %v3419_v38  ;;  %v11903_v38 = vld [vmem:[%s13578_s24 + $0x6e0] ss:$40 sps:$4 sm:$0xff]   ;;  %v11908_v39 = vld [vmem:[%s13578_s24 + $0x234] ss:$40 sps:$4 sm:$0xff]  }
 0x613   : > { %v3483_v1 = vrot.slane %v13554_v12, %v13020_v9  ;;  %v3476_v41 = vcombine.high %v13554_v12, %v13554_v12  ;;  %6118 = vmatpush1.bf16.msra.mxu0 %v11873_v4  ;;  %v11918_v4 = vld [vmem:[%s13578_s24 + $0x2d0] ss:$40 sps:$4 sm:$0xff]  }
 0x614   : > { %6119 = vmatprep.subr.bf16.mxu0 %v11881_v15  ;;  %v11924_v15 = vld [vmem:[%s13578_s24 + $0x320] ss:$40 sps:$4 sm:$0xff]  }
 0x615   : > { %v3491_v40 = vcombine.high %v3483_v1, %v3483_v1  ;;  %v3490_v47 = vrot.slane %v3476_v41, %v13020_v9  ;;  %v3505_v10 = vsel %vm399_vm1, %v3483_v1, 0.0  ;;  %v11911_v1 = vld [vmem:[%s13578_s24 + $0x734] ss:$40 sps:$4 sm:$0xff]   ;;  %v11909_v41 = vld [vmem:[%s13578_s24 + $0x730] ss:$40 sps:$4 sm:$0xff]  }
 0x617   : > { %v3506_v43 = vsel %vm399_vm1, %v3491_v40, 0.0  ;;  %v3492_v52 = vcombine.high %v3490_v47, %v3490_v47  ;;  %v3508_v53 = vsel %vm399_vm1, %v3490_v47, 0.0  ;;  %6120 = vmatpush1.bf16.msra.mxu0 %v11879_v61  ;;  %v11906_v40 = vld [vmem:[%s13578_s24 + $0x230] ss:$40 sps:$4 sm:$0xff]   ;;  %v11929_v61 = vld [vmem:[%s13578_s24 + $0x824] ss:$40 sps:$4 sm:$0xff]  }
 0x618   : > { %v3507_v49 = vadd.f32 %v3506_v43, %v3505_v10  ;;  %v11917_v43 = vld [vmem:[%s13578_s24 + $0x784] ss:$40 sps:$4 sm:$0xff]  }
 0x619   : > { %v3510_v57 = vsel %vm399_vm1, %v3492_v52, 0.0 }
 0x61a   : > { %v3509_v54 = vadd.f32 %v3508_v53, %v3507_v49 }
 0x61c   : > { %v3511_v58 = vadd.f32 %v3510_v57, %v3509_v54 }
 0x627   : > { %v11167_v16 = vpop.f32.mrb[16].mxu0 }
 0x628   : > { %v11189_v6 = vpop.f32.mrb[16].mxu1  ;;  %v11168_v17 = vpop.f32.mrb[17].mxu0 }
 0x629   : > { %v11169_v18 = vadd.f32 %v11168_v17, %v11167_v16  ;;  %v11190_v19 = vpop.f32.mrb[17].mxu1  ;;  %v11170_v20 = vpop.f32.mrb[18].mxu0  ;;  %v11884_v16 = vld [vmem:[%s13578_s24 + $0xf4] ss:$40 sps:$4 sm:$0xff]   ;;  %v11882_v17 = vld [vmem:[%s13578_s24 + $0xf0] ss:$40 sps:$4 sm:$0xff]  }
 0x62a   : > { %v11191_v22 = vadd.f32 %v11190_v19, %v11189_v6  ;;  %v11192_v35 = vpop.f32.mrb[18].mxu1  ;;  %v11171_v24 = vpop.f32.mrb[19].mxu0  ;;  %v11887_v6 = vld [vmem:[%s13578_s24 + $0x5f4] ss:$40 sps:$4 sm:$0xff]   ;;  %v11890_v19 = vld [vmem:[%s13578_s24 + $0x144] ss:$40 sps:$4 sm:$0xff]  }
 0x62b   : > { %v11193_v25 = vpop.f32.mrb[19].mxu1  ;;  %6121 = vmatprep.subr.bf16.mxu0 %v11887_v6  ;;  %v11893_v20 = vld [vmem:[%s13578_s24 + $0x644] ss:$40 sps:$4 sm:$0xff]   ;;  %v11899_v35 = vld [vmem:[%s13578_s24 + $0x694] ss:$40 sps:$4 sm:$0xff]  }
 0x62c   : > { %v3343_v27 = vadd.f32 %v11191_v22, %v11169_v18  ;;  %v11885_v18 = vld [vmem:[%s13578_s24 + $0x5f0] ss:$40 sps:$4 sm:$0xff]   ;;  %v11896_v22 = vld [vmem:[%s13578_s24 + $0x194] ss:$40 sps:$4 sm:$0xff]  }
 0x62d   : > { %6122 = vmatpush1.bf16.msra.mxu0 %v11885_v18  ;;  %v11894_v24 = vld [vmem:[%s13578_s24 + $0x190] ss:$40 sps:$4 sm:$0xff]   ;;  %v11932_v6 = vld [vmem:[%s13578_s24 + $0x374] ss:$40 sps:$4 sm:$0xff]  }
 0x62e   : > { %6123 = vmatprep.subr.bf16.mxu0 %v11893_v20  ;;  %v11897_v25 = vld [vmem:[%s13578_s24 + $0x690] ss:$40 sps:$4 sm:$0xff]   ;;  %v11935_v18 = vld [vmem:[%s13578_s24 + $0x874] ss:$40 sps:$4 sm:$0xff]   ;;  %v11938_v20 = vld [vmem:[%s13578_s24 + $0x3c4] ss:$40 sps:$4 sm:$0xff]  }
 0x631   : > { %6124 = vmatpush1.bf16.msra.mxu0 %v11891_v8  ;;  %v11941_v8 = vld [vmem:[%s13578_s24 + $0x8c4] ss:$40 sps:$4 sm:$0xff]  }
 0x632   : > { %6125 = vmatprep.subr.bf16.mxu0 %v11899_v35  ;;  %v11944_v35 = vld [vmem:[%s13578_s24 + $0x414] ss:$40 sps:$4 sm:$0xff]  }
 0x635   : > { %6126 = vmatpush1.bf16.msra.mxu0 %v11897_v25  ;;  %v11947_v25 = vld [vmem:[%s13578_s24 + $0x914] ss:$40 sps:$4 sm:$0xff]  }
 0x636   : > { %6127 = vmatprep.subr.bf16.mxu0 %v11905_v37  ;;  %v11950_v37 = vld [vmem:[%s13578_s24 + $0x464] ss:$40 sps:$4 sm:$0xff]  }
 0x639   : > { %6128 = vmatpush1.bf16.msra.mxu0 %v11903_v38  ;;  %v11953_v38 = vld [vmem:[%s13578_s24 + $0x964] ss:$40 sps:$4 sm:$0xff]  }
 0x63a   : > { %6129 = vmatprep.subr.bf16.mxu0 %v11911_v1  ;;  %v11956_v1 = vld [vmem:[%s13578_s24 + $0x4b4] ss:$40 sps:$4 sm:$0xff]  }
 0x63d   : > { %6130 = vmatpush1.bf16.msra.mxu0 %v11909_v41  ;;  %v11954_v41 = vld [vmem:[%s13578_s24 + $0x4b0] ss:$40 sps:$4 sm:$0xff]  }
 0x63e   : > { %6131 = vmatprep.subr.bf16.mxu0 %v11917_v43  ;;  %v11962_v43 = vld [vmem:[%s13578_s24 + $0xa04] ss:$40 sps:$4 sm:$0xff]  }
 0x643   : > { %v3382_v44 = vpop.f32.mrb[20].mxu0 }
 0x644   : > { %v3383_v45 = vadd.f32 %v3382_v44, %v3343_v27  ;;  %v11370_v46 = vpop.f32.mrb[21].mxu0  ;;  %v11902_v27 = vld [vmem:[%s13578_s24 + $0x1e4] ss:$40 sps:$4 sm:$0xff]   ;;  %v11912_v44 = vld [vmem:[%s13578_s24 + $0x280] ss:$40 sps:$4 sm:$0xff]  }
 0x645   : > { %v3385_v48 = vpop.f32.mrb[22].mxu0 }
 0x646   : > { %v3416_v7 = vrot.slane %v3383_v45, %v13020_v9  ;;  %v11371_v50 = vpop.f32.mrb[23].mxu0  ;;  %v11915_v45 = vld [vmem:[%s13578_s24 + $0x780] ss:$40 sps:$4 sm:$0xff]  }
 0x647   : > { %6132 = vmatpush1.bf16.msra.mxu0 %v11915_v45  ;;  %v10360_v45 = vld [vmem:[%s13004_s18 + $0x7] ss:$8 sm:$0xf] }
 0x648   : > { %v3420_v51 = vadd.f32 %v3416_v7, %v13238_v28  ;;  %v11864_v28 = vld [vmem:[%s13578_s24] ss:$40 sps:$4 sm:$0xff]   ;;  %6133 = vmatprep.subr.bf16.mxu0 %v11923_v11 }
 0x649   : > { %6075 = vmatpush1.bf16.msra.mxu1 %v11864_v28 }
 0x64a   : > { %v13568_v55 = vadd.f32 %v3469_v31, %v3420_v51  ;;  %6076 = vmatprep.subr.bf16.mxu1 %v11872_v2  ;;  %v11920_v2 = vld [vmem:[%s13578_s24 + $0x2d4] ss:$40 sps:$4 sm:$0xff]  }
 0x64c   : > { %v3499_v56 = vrot.slane %v13568_v55, %v13020_v9 }
 0x64d   : > { %6077 = vmatpush1.bf16.msra.mxu1 %v11870_v5 }
 0x64e   : > { %v3512_v59 = vsel %vm407_vm2, %v3499_v56, 0.0  ;;  %6078 = vmatprep.subr.bf16.mxu1 %v11878_v34  ;;  %v11921_v34 = vld [vmem:[%s13578_s24 + $0x7d0] ss:$40 sps:$4 sm:$0xff]  }
 0x64f   : > { %v3513_v60 = vadd.f32 %v3512_v59, %v3511_v58  ;;  %6134 = vmatpush1.bf16.msra.mxu0 %v11921_v34 }
 0x650   : > { %6135 = vmatprep.subr.bf16.mxu0 %v11929_v61 }
 0x651   : > { %3514 = vadd.xlane.f32.xlu0 %v3513_v60  ;;  %6079 = vmatpush1.bf16.msra.mxu1 %v11876_v14  ;;  %v11926_v14 = vld [vmem:[%s13578_s24 + $0x324] ss:$40 sps:$4 sm:$0xff]  }
 0x652   : > { %6080 = vmatprep.subr.bf16.mxu1 %v11884_v16  ;;  %v11927_v16 = vld [vmem:[%s13578_s24 + $0x820] ss:$40 sps:$4 sm:$0xff]  }
 0x653   : > { %6136 = vmatpush1.bf16.msra.mxu0 %v11927_v16 }
 0x654   : > { %6137 = vmatprep.subr.bf16.mxu0 %v11935_v18 }
 0x655   : > { %6081 = vmatpush1.bf16.msra.mxu1 %v11882_v17  ;;  %v11930_v17 = vld [vmem:[%s13578_s24 + $0x370] ss:$40 sps:$4 sm:$0xff]  }
 0x656   : > { %6082 = vmatprep.subr.bf16.mxu1 %v11890_v19  ;;  %v11933_v19 = vld [vmem:[%s13578_s24 + $0x870] ss:$40 sps:$4 sm:$0xff]  }
 0x657   : > { %6138 = vmatpush1.bf16.msra.mxu0 %v11933_v19 }
 0x658   : > { %6139 = vmatprep.subr.bf16.mxu0 %v11941_v8 }
 0x659   : > { %6083 = vmatpush1.bf16.msra.mxu1 %v11888_v21  ;;  %v11936_v21 = vld [vmem:[%s13578_s24 + $0x3c0] ss:$40 sps:$4 sm:$0xff]  }
 0x65a   : > { %6084 = vmatprep.subr.bf16.mxu1 %v11896_v22  ;;  %v11939_v22 = vld [vmem:[%s13578_s24 + $0x8c0] ss:$40 sps:$4 sm:$0xff]  }
 0x65b   : > { %6140 = vmatpush1.bf16.msra.mxu0 %v11939_v22 }
 0x65c   : > { %6141 = vmatprep.subr.bf16.mxu0 %v11947_v25 }
 0x65d   : > { %6085 = vmatpush1.bf16.msra.mxu1 %v11894_v24  ;;  %v11942_v24 = vld [vmem:[%s13578_s24 + $0x410] ss:$40 sps:$4 sm:$0xff]  }
 0x65e   : > { %6086 = vmatprep.subr.bf16.mxu1 %v11902_v27  ;;  %v11945_v27 = vld [vmem:[%s13578_s24 + $0x910] ss:$40 sps:$4 sm:$0xff]  }
 0x65f   : > { %6142 = vmatpush1.bf16.msra.mxu0 %v11945_v27 }
 0x660   : > { %6143 = vmatprep.subr.bf16.mxu0 %v11953_v38  ;;  %v11971_v38 = vld [vmem:[%s13578_s24 + $0x5c] ss:$40 sps:$4 sm:$0xff]  }
 0x661   : > { %6087 = vmatpush1.bf16.msra.mxu1 %v11900_v29  ;;  %v11948_v29 = vld [vmem:[%s13578_s24 + $0x460] ss:$40 sps:$4 sm:$0xff]  }
 0x662   : > { %6088 = vmatprep.subr.bf16.mxu1 %v11908_v39  ;;  %v11951_v39 = vld [vmem:[%s13578_s24 + $0x960] ss:$40 sps:$4 sm:$0xff]  }
 0x663   : > { %6144 = vmatpush1.bf16.msra.mxu0 %v11951_v39  ;;  %v11966_v39 = vld [vmem:[%s13578_s24 + $0xa50] ss:$40 sps:$4 sm:$0xff]  }
 0x665   : > { %6089 = vmatpush1.bf16.msra.mxu1 %v11906_v40  ;;  %v11959_v40 = vld [vmem:[%s13578_s24 + $0x9b4] ss:$40 sps:$4 sm:$0xff]  }
 0x666   : > { %6090 = vmatprep.subr.bf16.mxu1 %v11914_v42  ;;  %v11957_v42 = vld [vmem:[%s13578_s24 + $0x9b0] ss:$40 sps:$4 sm:$0xff]   ;;  %6145 = vmatprep.subr.bf16.mxu0 %v11959_v40 }
 0x667   : > { %6146 = vmatpush1.bf16.msra.mxu0 %v11957_v42  ;;  %v11969_v40 = vld [vmem:[%s13578_s24 + $0x58] ss:$40 sps:$4 sm:$0xff]  }
 0x668   : > { %v11972_v42 = vld [vmem:[%s13578_s24 + $0xaa0] ss:$40 sps:$4 sm:$0xff]  }
 0x669   : > { %6091 = vmatpush1.bf16.msra.mxu1 %v11912_v44  ;;  %v11965_v44 = vld [vmem:[%s13578_s24 + $0xc] ss:$40 sps:$4 sm:$0xff]  }
 0x66a   : > { %6092 = vmatprep.subr.bf16.mxu1 %v11920_v2  ;;  %6197 = vmatprep.subr.bf16.mxu0 %v11965_v44 }
 0x66d   : > { %6093 = vmatpush1.bf16.msra.mxu1 %v11918_v4 }
 0x66e   : > { %6094 = vmatprep.subr.bf16.mxu1 %v11926_v14 }
 0x671   : > { %6095 = vmatpush1.bf16.msra.mxu1 %v11924_v15 }
 0x672   : > { %6096 = vmatprep.subr.bf16.mxu1 %v11932_v6 }
 0x675   : > { %6097 = vmatpush1.bf16.msra.mxu1 %v11930_v17 }
 0x676   : > { %6098 = vmatprep.subr.bf16.mxu1 %v11938_v20 }
 0x679   : > { %6099 = vmatpush1.bf16.msra.mxu1 %v11936_v21 }
 0x67a   : > { %6100 = vmatprep.subr.bf16.mxu1 %v11944_v35  ;;  %v11960_v35 = vld [vmem:[%s13578_s24 + $0xa00] ss:$40 sps:$4 sm:$0xff]  }
 0x67d   : > { %6101 = vmatpush1.bf16.msra.mxu1 %v11942_v24 }
 0x67e   : > { %6102 = vmatprep.subr.bf16.mxu1 %v11950_v37 }
 0x681   : > { %6103 = vmatpush1.bf16.msra.mxu1 %v11948_v29  ;;  %v11963_v29 = vld [vmem:[%s13578_s24 + $0x8] ss:$40 sps:$4 sm:$0xff]  }
 0x682   : > { %6104 = vmatprep.subr.bf16.mxu1 %v11956_v1  ;;  %v11974_v1 = vld [vmem:[%s13578_s24 + $0xaa4] ss:$40 sps:$4 sm:$0xff]  }
 0x685   : > { %6105 = vmatpush1.bf16.msra.mxu1 %v11954_v41  ;;  %v11977_v41 = vld [vmem:[%s13578_s24 + $0xac] ss:$40 sps:$4 sm:$0xff]  }
 0x686   : > { %6156 = vmatprep.subr.bf16.mxu1 %v11962_v43  ;;  %v11980_v43 = vld [vmem:[%s13578_s24 + $0xaf4] ss:$40 sps:$4 sm:$0xff]  }
 0x6de   : > { %v3515_v46 = vpop.xlane.xlu0 %3514 }
 0x6df   : > { %v3516_v47 = vmul.f32 0.001633987, %v3515_v46  ;;  %v10361_v46 = vld [vmem:[%s13004_s18 + $0x7] ss:$8 sm:$0x10] }
 0x6e1   : > { %v3524_v10 = vrot.slane %v3516_v47, %v13045_v30  ;;  %v10362_v47 = vld [vmem:[%s13004_s18 + $0x28] ss:$8 sm:$0xf] }
 0x6e3   : > { %v13618_v48 = vsub.f32 %v13554_v12, %v3524_v10  ;;  %v13621_v49 = vsub.f32 %v13568_v55, %v3524_v10  ;;  %v10363_v10 = vld [vmem:[%s13004_s18 + $0x28] ss:$8 sm:$0x10] }
 0x6e5   : > { %v3528_v7 = vmul.f32 %v13618_v48, %v13618_v48  ;;  %v3529_v51 = vmul.f32 %v13621_v49, %v13621_v49 }
 0x6e7   : > { %v3532_v31 = vcombine.high %v3528_v7, %v3528_v7  ;;  %v3539_v50 = vrot.slane %v3528_v7, %v13020_v9  ;;  %v3555_v59 = vrot.slane %v3529_v51, %v13020_v9  ;;  %v13669_v7 = vor.u32 %v10361_v46, %v10360_v45  ;;  %v11975_v45 = vld [vmem:[%s13578_s24 + $0xa8] ss:$40 sps:$4 sm:$0xff]   ;;  %v11983_v46 = vld [vmem:[%s13578_s24 + $0xfc] ss:$40 sps:$4 sm:$0xff]  }
 0x6e8   : > { %v13671_v51 = vor.u32 %v10363_v10, %v10362_v47  ;;  %v11978_v47 = vld [vmem:[%s13578_s24 + $0xaf0] ss:$40 sps:$4 sm:$0xff]  }
 0x6e9   : > { %v3546_v52 = vrot.slane %v3532_v31, %v13020_v9  ;;  %v3547_v53 = vcombine.high %v3539_v50, %v3539_v50  ;;  %v3561_v56 = vsel %vm399_vm1, %v3539_v50, 0.0  ;;  %v3568_v0 = vsel %vm407_vm2, %v3555_v59, 0.0 }
 0x6ea   : > { %v3651_v59 = vrot.slane %v13671_v51, %v13105_v32  ;;  %v3610_v44 = vrot.slane %v13669_v7, %v13132_v13 }
 0x6eb   : > { %v3548_v54 = vcombine.high %v3546_v52, %v3546_v52  ;;  %v3562_v57 = vsel %vm399_vm1, %v3547_v53, 0.0  ;;  %v3564_v60 = vsel %vm399_vm1, %v3546_v52, 0.0  ;;  %v3594_v53 = vrot.slane %v13669_v7, %v13100_v26 }
 0x6ec   : > { %v3563_v58 = vadd.f32 %v3562_v57, %v3561_v56  ;;  %v3602_v56 = vrot.slane %v13669_v7, %v13108_v33  ;;  %v3606_v57 = vrot.slane %v13669_v7, %v13111_v36 }
 0x6ed   : > { %v3566_v62 = vsel %vm399_vm1, %v3548_v54, 0.0  ;;  %v3598_v54 = vrot.slane %v13669_v7, %v13105_v32  ;;  %v3663_v7 = vrot.slane %v13671_v51, %v13132_v13 }
 0x6ee   : > { %v3565_v28 = vadd.f32 %v3564_v60, %v3563_v58  ;;  %v3647_v58 = vrot.slane %v13671_v51, %v13100_v26  ;;  %v3655_v60 = vrot.slane %v13671_v51, %v13108_v33 }
 0x6f0   : > { %v3567_v63 = vadd.f32 %v3566_v62, %v3565_v28  ;;  %v3659_v28 = vrot.slane %v13671_v51, %v13111_v36  ;;  %v3611_v62 = vcombine.low %v3594_v53, %v3598_v54  ;;  %v11989_v53 = vld [vmem:[%s13578_s24 + $0x14c] ss:$40 sps:$4 sm:$0xff]   ;;  %v11984_v54 = vld [vmem:[%s13578_s24 + $0xb40] ss:$40 sps:$4 sm:$0xff]   ;;  %v11995_v51 = vld [vmem:[%s13578_s24 + $0x19c] ss:$40 sps:$4 sm:$0xff]  }
 0x6f2   : > { %v3569_v5 = vadd.f32 %v3568_v0, %v3567_v63  ;;  %v3612_v63 = vcombine.low %v3602_v56, %v3606_v57  ;;  %v3664_v0 = vcombine.low %v3647_v58, %v3651_v59  ;;  %v3619_v2 = vrot.slane %v3611_v62, %v13020_v9  ;;  %v11987_v58 = vld [vmem:[%s13578_s24 + $0x148] ss:$40 sps:$4 sm:$0xff]   ;;  %v4111_v59 = vld [vmem:[%s13578_s24 + $0xbe0] sm:$0x33] }
 0x6f3   : > { %v3687_v57 = vrot.slane %v3663_v7, %v13020_v9  ;;  %v10745_v62 = vcombine.low %v4111_v59, %v4111_v59  ;;  %v12048_v7 = vld [vmem:[%s13578_s24 + $0x46c] ss:$40 sps:$4 sm:$0xff]  }
 0x6f4   : > { %3570 = vadd.xlane.f32.xlu1 %v3569_v5  ;;  %v3665_v5 = vcombine.low %v3655_v60, %v3659_v28  ;;  %v3626_v4 = vrot.slane %v3612_v63, %v13020_v9  ;;  %v3672_v11 = vrot.slane %v3664_v0, %v13020_v9  ;;  %v11990_v60 = vld [vmem:[%s13578_s24 + $0xb90] ss:$40 sps:$4 sm:$0xff]   ;;  %v10746_v28 = vcombine.high %v4111_v59, %v4111_v59  ;;  %v12060_v59 = vld [vmem:[%s13578_s24 + $0xa0c] ss:$40 sps:$4 sm:$0xff]  }
 0x6f5   : > { %v11993_v0 = vld [vmem:[%s13578_s24 + $0x198] ss:$40 sps:$4 sm:$0xff]  }
 0x6f6   : > { %v3679_v34 = vrot.slane %v3665_v5, %v13020_v9  ;;  %v3627_v15 = vcombine.low %v3619_v2, %v3626_v4  ;;  %v12000_v5 = vld [vmem:[%s13578_s24 + $0x1ec] ss:$40 sps:$4 sm:$0xff]   ;;  %v6045_v2 = vsel %vm399_vm1, %v10745_v62, 0  ;;  %v12066_v62 = vld [vmem:[%s13578_s24 + $0xa5c] ss:$40 sps:$4 sm:$0xff]  }
 0x6f8   : > { %v3680_v6 = vcombine.low %v3672_v11, %v3679_v34  ;;  %v12003_v11 = vld [vmem:[%s13578_s24 + $0x50c] ss:$40 sps:$4 sm:$0xff]   ;;  %v11998_v34 = vld [vmem:[%s13578_s24 + $0x1e8] ss:$40 sps:$4 sm:$0xff]  }
 0x781   : > { %v3571_v31 = vpop.xlane.xlu1 %3570 }
 0x782   : > { %v3572_v50 = vmul.f32 0.001633987, %v3571_v31  ;;  %v11986_v31 = vld [vmem:[%s13578_s24 + $0xb44] ss:$40 sps:$4 sm:$0xff]  }
 0x784   : > { %v3573_v52 = vadd.f32 1e-05, %v3572_v50  ;;  %v3634_v50 = vrot.slane %v3610_v44, %v13020_v9  ;;  %v12031_v44 = vld [vmem:[%s13578_s24 + $0x698] ss:$40 sps:$4 sm:$0xff]  }
 0x786   : > { %12818 = vrsqrt.f32 %v3573_v52  ;;  %v11981_v52 = vld [vmem:[%s13578_s24 + $0xf8] ss:$40 sps:$4 sm:$0xff]  }
 0x790   : > { %v12819_v14 = vpop.eup %12818 }
 0x791   : > { %v3582_v61 = vrot.slane %v12819_v14, %v13045_v30  ;;  %v12006_v14 = vld [vmem:[%s13578_s24 + $0x23c] ss:$40 sps:$4 sm:$0xff]  }
 0x793   : > { %v3584_v16 = vmul.f32 %v3582_v61, %v13618_v48  ;;  %v11968_v48 = vld [vmem:[%s13578_s24 + $0xa54] ss:$40 sps:$4 sm:$0xff]   ;;  %v3585_v10 = vmul.f32 %v3582_v61, %v13621_v49 }
 0x794   : > { %v11992_v49 = vld [vmem:[%s13578_s24 + $0xb94] ss:$40 sps:$4 sm:$0xff]  }
 0x795   : > { %v3637_v17 = vmul.f32 %v3627_v15, %v3584_v16  ;;  %v3638_v56 = vmul.f32 %v3634_v50, %v3585_v10  ;;  %v12001_v15 = vld [vmem:[%s13578_s24 + $0x508] ss:$40 sps:$4 sm:$0xff]   ;;  %v12009_v16 = vld [vmem:[%s13578_s24 + $0x55c] ss:$40 sps:$4 sm:$0xff]   ;;  %v12040_v50 = vld [vmem:[%s13578_s24 + $0x418] ss:$40 sps:$4 sm:$0xff]  }
 0x796   : > { %v12037_v10 = vld [vmem:[%s13578_s24 + $0x6e8] ss:$40 sps:$4 sm:$0xff]  }
 0x797   : > { %v3690_v18 = vadd.f32 %v3680_v6, %v3637_v17  ;;  %v3691_v63 = vadd.f32 %v3687_v57, %v3638_v56  ;;  %v12004_v6 = vld [vmem:[%s13578_s24 + $0x238] ss:$40 sps:$4 sm:$0xff]   ;;  %v12012_v17 = vld [vmem:[%s13578_s24 + $0x28c] ss:$40 sps:$4 sm:$0xff]   ;;  %v12049_v56 = vld [vmem:[%s13578_s24 + $0x788] ss:$40 sps:$4 sm:$0xff]  }
 0x798   : > { %v12057_v57 = vld [vmem:[%s13578_s24 + $0x7dc] ss:$40 sps:$4 sm:$0xff]  }
 0x799   : > { %v3701_v19 = vrot.slane %v3690_v18, %v13020_v9  ;;  %v3694_v20 = vcombine.high %v3690_v18, %v3690_v18  ;;  %v3717_v4 = vrot.slane %v3691_v63, %v13020_v9  ;;  %v12007_v18 = vld [vmem:[%s13578_s24 + $0x558] ss:$40 sps:$4 sm:$0xff]   ;;  %v12061_v63 = vld [vmem:[%s13578_s24 + $0x828] ss:$40 sps:$4 sm:$0xff]  }
 0x79b   : > { %v3709_v21 = vcombine.high %v3701_v19, %v3701_v19  ;;  %v3708_v8 = vrot.slane %v3694_v20, %v13020_v9  ;;  %v13700_v25 = vpack.c.bf16 %v3701_v19, %v3701_v19  ;;  %v13749_v61 = vpack.c.bf16 %v3717_v4, %v3717_v4  ;;  %v12015_v19 = vld [vmem:[%s13578_s24 + $0x5ac] ss:$40 sps:$4 sm:$0xff]   ;;  %v12010_v20 = vld [vmem:[%s13578_s24 + $0x288] ss:$40 sps:$4 sm:$0xff]   ;;  %v12067_v4 = vld [vmem:[%s13578_s24 + $0x878] ss:$40 sps:$4 sm:$0xff]  }
 0x79d   : > { %v13697_v22 = vpack.c.bf16 %v3709_v21, %v3709_v21  ;;  %v3710_v24 = vcombine.high %v3708_v8, %v3708_v8  ;;  %v13708_v37 = vpack.c.bf16 %v3708_v8, %v3708_v8  ;;  %v12018_v21 = vld [vmem:[%s13578_s24 + $0x2dc] ss:$40 sps:$4 sm:$0xff]   ;;  %v12013_v8 = vld [vmem:[%s13578_s24 + $0x5a8] ss:$40 sps:$4 sm:$0xff]  }
 0x79f   : > { %6106 = vmatprep.mubr.bf16.mxu1 %v13697_v22  ;;  %v13704_v27 = vpack.c.bf16 %v3710_v24, %v3710_v24  ;;  %v12016_v24 = vld [vmem:[%s13578_s24 + $0x2d8] ss:$40 sps:$4 sm:$0xff]  }
 0x7a0   : > { %6107 = vmatmul.mubr.bf16.vlgmr.msra.gmra.mrb[20].mxu1 %v13700_v25 }
 0x7a1   : > { %6157 = vmatpush1.bf16.msra.mxu1 %v11960_v35  ;;  %6147 = vmatprep.mubr.bf16.mxu0 %v13704_v27  ;;  %v12021_v35 = vld [vmem:[%s13578_s24 + $0x5fc] ss:$40 sps:$4 sm:$0xff]  }
 0x7a2   : > { %6148 = vmatmul.mubr.bf16.vlgmr.msra.gmra.mrb[24].mxu0 %v13708_v37  ;;  %6158 = vmatprep.subr.bf16.mxu1 %v11968_v48  ;;  %v12024_v48 = vld [vmem:[%s13578_s24 + $0x32c] ss:$40 sps:$4 sm:$0xff]  }
 0x7a3   : > { %6198 = vmatpush1.bf16.msra.mxu0 %v11963_v29  ;;  %6229 = vmatprep.mubr.bf16.mxu0 %v13697_v22  ;;  %v12019_v29 = vld [vmem:[%s13578_s24 + $0x5f8] ss:$40 sps:$4 sm:$0xff]  }
 0x7a4   : > { %6199 = vmatprep.subr.bf16.mxu0 %v11971_v38  ;;  %6188 = vmatprep.mubr.bf16.mxu1 %v12926_v3  ;;  %v12027_v38 = vld [vmem:[%s13578_s24 + $0x64c] ss:$40 sps:$4 sm:$0xff]  }
 0x7a5   : > { %6159 = vmatpush1.bf16.msra.mxu1 %v11966_v39  ;;  %v12022_v39 = vld [vmem:[%s13578_s24 + $0x328] ss:$40 sps:$4 sm:$0xff]  }
 0x7a6   : > { %6160 = vmatprep.subr.bf16.mxu1 %v11974_v1  ;;  %v12030_v1 = vld [vmem:[%s13578_s24 + $0x37c] ss:$40 sps:$4 sm:$0xff]  }
 0x7a7   : > { %6200 = vmatpush1.bf16.msra.mxu0 %v11969_v40  ;;  %v12025_v40 = vld [vmem:[%s13578_s24 + $0x648] ss:$40 sps:$4 sm:$0xff]  }
 0x7a8   : > { %6201 = vmatprep.subr.bf16.mxu0 %v11977_v41  ;;  %v12033_v41 = vld [vmem:[%s13578_s24 + $0x69c] ss:$40 sps:$4 sm:$0xff]  }
 0x7a9   : > { %6161 = vmatpush1.bf16.msra.mxu1 %v11972_v42  ;;  %v12028_v42 = vld [vmem:[%s13578_s24 + $0x378] ss:$40 sps:$4 sm:$0xff]  }
 0x7aa   : > { %6162 = vmatprep.subr.bf16.mxu1 %v11980_v43  ;;  %v12036_v43 = vld [vmem:[%s13578_s24 + $0x3cc] ss:$40 sps:$4 sm:$0xff]  }
 0x7ab   : > { %6202 = vmatpush1.bf16.msra.mxu0 %v11975_v45  ;;  %v12039_v45 = vld [vmem:[%s13578_s24 + $0x6ec] ss:$40 sps:$4 sm:$0xff]  }
 0x7ac   : > { %6203 = vmatprep.subr.bf16.mxu0 %v11983_v46  ;;  %v12034_v46 = vld [vmem:[%s13578_s24 + $0x3c8] ss:$40 sps:$4 sm:$0xff]  }
 0x7ad   : > { %6163 = vmatpush1.bf16.msra.mxu1 %v11978_v47  ;;  %v12042_v47 = vld [vmem:[%s13578_s24 + $0x41c] ss:$40 sps:$4 sm:$0xff]  }
 0x7ae   : > { %6164 = vmatprep.subr.bf16.mxu1 %v11986_v31  ;;  %v12045_v31 = vld [vmem:[%s13578_s24 + $0x73c] ss:$40 sps:$4 sm:$0xff]  }
 0x7af   : > { %6204 = vmatpush1.bf16.msra.mxu0 %v11981_v52  ;;  %v12043_v52 = vld [vmem:[%s13578_s24 + $0x738] ss:$40 sps:$4 sm:$0xff]  }
 0x7b0   : > { %6205 = vmatprep.subr.bf16.mxu0 %v11989_v53  ;;  %v12051_v53 = vld [vmem:[%s13578_s24 + $0x78c] ss:$40 sps:$4 sm:$0xff]  }
 0x7b1   : > { %6165 = vmatpush1.bf16.msra.mxu1 %v11984_v54  ;;  %v12046_v54 = vld [vmem:[%s13578_s24 + $0x468] ss:$40 sps:$4 sm:$0xff]  }
 0x7b2   : > { %6166 = vmatprep.subr.bf16.mxu1 %v11992_v49  ;;  %v12054_v49 = vld [vmem:[%s13578_s24 + $0x4bc] ss:$40 sps:$4 sm:$0xff]  }
 0x7b3   : > { %6206 = vmatpush1.bf16.msra.mxu0 %v11987_v58  ;;  %v12052_v58 = vld [vmem:[%s13578_s24 + $0x4b8] ss:$40 sps:$4 sm:$0xff]  }
 0x7b4   : > { %6207 = vmatprep.subr.bf16.mxu0 %v11995_v51  ;;  %v12055_v51 = vld [vmem:[%s13578_s24 + $0x7d8] ss:$40 sps:$4 sm:$0xff]  }
 0x7b5   : > { %6167 = vmatpush1.bf16.msra.mxu1 %v11990_v60  ;;  %v12063_v60 = vld [vmem:[%s13578_s24 + $0x82c] ss:$40 sps:$4 sm:$0xff]  }
 0x7b6   : > { %10755 = vmatprep.subr.msk.bf16.mxu1 %vm399_vm1, %v10746_v28  ;;  %v12058_v28 = vld [vmem:[%s13578_s24 + $0xa08] ss:$40 sps:$4 sm:$0xff]  }
 0x7b7   : > { %6208 = vmatpush1.bf16.msra.mxu0 %v11993_v0  ;;  %v12069_v0 = vld [vmem:[%s13578_s24 + $0x87c] ss:$40 sps:$4 sm:$0xff]  }
 0x7b8   : > { %6209 = vmatprep.subr.bf16.mxu0 %v12000_v5  ;;  %v12064_v5 = vld [vmem:[%s13578_s24 + $0xa58] ss:$40 sps:$4 sm:$0xff]  }
 0x7b9   : > { %6169 = vmatpush1.bf16.msra.mxu1 %v6045_v2  ;;  %v12072_v2 = vld [vmem:[%s13578_s24 + $0xaac] ss:$40 sps:$4 sm:$0xff]  }
 0x7ba   : > { %6238 = vmatprep.subr.bf16.mxu1 %v12003_v11  ;;  %v12075_v11 = vld [vmem:[%s13578_s24 + $0x8cc] ss:$40 sps:$4 sm:$0xff]  }
 0x7bb   : > { %6210 = vmatpush1.bf16.msra.mxu0 %v11998_v34  ;;  %v12070_v34 = vld [vmem:[%s13578_s24 + $0xaa8] ss:$40 sps:$4 sm:$0xff]  }
 0x7bc   : > { %10756 = vmatmul.mubr.msk.bf16.vlgmr.msra.gmra.mrb[24].mxu1 %vm936_vm4, %v13749_v61  ;;  %6211 = vmatprep.subr.bf16.mxu0 %v12006_v14  ;;  %v12078_v14 = vld [vmem:[%s13578_s24 + $0xafc] ss:$40 sps:$4 sm:$0xff]  }
 0x7bd   : > { %6239 = vmatpush1.bf16.msra.mxu1 %v12001_v15  ;;  %6270 = vmatprep.mubr.bf16.mxu1 %v13704_v27  ;;  %v12073_v15 = vld [vmem:[%s13578_s24 + $0x8c8] ss:$40 sps:$4 sm:$0xff]  }
 0x7be   : > { %6240 = vmatprep.subr.bf16.mxu1 %v12009_v16  ;;  %v12081_v16 = vld [vmem:[%s13578_s24 + $0x91c] ss:$40 sps:$4 sm:$0xff]  }
 0x7bf   : > { %6212 = vmatpush1.bf16.msra.mxu0 %v12004_v6  ;;  %v12076_v6 = vld [vmem:[%s13578_s24 + $0xaf8] ss:$40 sps:$4 sm:$0xff]  }
 0x7c0   : > { %6213 = vmatprep.subr.bf16.mxu0 %v12012_v17  ;;  %v12084_v17 = vld [vmem:[%s13578_s24 + $0xb4c] ss:$40 sps:$4 sm:$0xff]  }
 0x7c1   : > { %6241 = vmatpush1.bf16.msra.mxu1 %v12007_v18  ;;  %v12079_v18 = vld [vmem:[%s13578_s24 + $0x918] ss:$40 sps:$4 sm:$0xff]  }
 0x7c2   : > { %6242 = vmatprep.subr.bf16.mxu1 %v12015_v19  ;;  %v12087_v19 = vld [vmem:[%s13578_s24 + $0x96c] ss:$40 sps:$4 sm:$0xff]  }
 0x7c3   : > { %6214 = vmatpush1.bf16.msra.mxu0 %v12010_v20  ;;  %v12082_v20 = vld [vmem:[%s13578_s24 + $0xb48] ss:$40 sps:$4 sm:$0xff]  }
 0x7c4   : > { %6215 = vmatprep.subr.bf16.mxu0 %v12018_v21  ;;  %v12090_v21 = vld [vmem:[%s13578_s24 + $0xb9c] ss:$40 sps:$4 sm:$0xff]  }
 0x7c5   : > { %6243 = vmatpush1.bf16.msra.mxu1 %v12013_v8  ;;  %v12085_v8 = vld [vmem:[%s13578_s24 + $0x968] ss:$40 sps:$4 sm:$0xff]  }
 0x7c6   : > { %6244 = vmatprep.subr.bf16.mxu1 %v12021_v35  ;;  %v4112_v35 = vld [vmem:[%s13578_s24 + $0xbe8] sm:$0x33] }
 0x7c7   : > { %6216 = vmatpush1.bf16.msra.mxu0 %v12016_v24  ;;  %v12093_v24 = vld [vmem:[%s13578_s24 + $0x9bc] ss:$40 sps:$4 sm:$0xff]  }
 0x7c8   : > { %6217 = vmatprep.subr.bf16.mxu0 %v12024_v48  ;;  %v12088_v48 = vld [vmem:[%s13578_s24 + $0xb98] ss:$40 sps:$4 sm:$0xff]  }
 0x7c9   : > { %6245 = vmatpush1.bf16.msra.mxu1 %v12019_v29  ;;  %v10748_v29 = vcombine.high %v4112_v35, %v4112_v35 }
 0x7ca   : > { %6246 = vmatprep.subr.bf16.mxu1 %v12027_v38  ;;  %v10747_v38 = vcombine.low %v4112_v35, %v4112_v35  ;;  %v12161_v35 = vld [vmem:[%s13578_s24 + $0x834] ss:$40 sps:$4 sm:$0xff]  }
 0x7cb   : > { %6218 = vmatpush1.bf16.msra.mxu0 %v12022_v39  ;;  %v12091_v39 = vld [vmem:[%s13578_s24 + $0x9b8] ss:$40 sps:$4 sm:$0xff]  }
 0x7cc   : > { %6219 = vmatprep.subr.bf16.mxu0 %v12030_v1  ;;  %v12098_v1 = vld [vmem:[%s13578_s24 + $0x14] ss:$40 sps:$4 sm:$0xff]  }
 0x7cd   : > { %6247 = vmatpush1.bf16.msra.mxu1 %v12025_v40  ;;  %v6051_v40 = vsel %vm399_vm1, %v10747_v38, 0  ;;  %v12167_v38 = vld [vmem:[%s13578_s24 + $0x884] ss:$40 sps:$4 sm:$0xff]  }
 0x7ce   : > { %6248 = vmatprep.subr.bf16.mxu1 %v12033_v41  ;;  %v12101_v41 = vld [vmem:[%s13578_s24 + $0x514] ss:$40 sps:$4 sm:$0xff]  }
 0x7cf   : > { %6220 = vmatpush1.bf16.msra.mxu0 %v12028_v42  ;;  %v12096_v42 = vld [vmem:[%s13578_s24 + $0x10] ss:$40 sps:$4 sm:$0xff]  }
 0x7d0   : > { %6221 = vmatprep.subr.bf16.mxu0 %v12036_v43  ;;  %v12104_v43 = vld [vmem:[%s13578_s24 + $0x64] ss:$40 sps:$4 sm:$0xff]  }
 0x7d1   : > { %6249 = vmatpush1.bf16.msra.mxu1 %v12031_v44  ;;  %v12099_v44 = vld [vmem:[%s13578_s24 + $0x510] ss:$40 sps:$4 sm:$0xff]  }
 0x7d2   : > { %6250 = vmatprep.subr.bf16.mxu1 %v12039_v45  ;;  %v12107_v45 = vld [vmem:[%s13578_s24 + $0x564] ss:$40 sps:$4 sm:$0xff]  }
 0x7d3   : > { %6222 = vmatpush1.bf16.msra.mxu0 %v12034_v46  ;;  %v12102_v46 = vld [vmem:[%s13578_s24 + $0x60] ss:$40 sps:$4 sm:$0xff]  }
 0x7d4   : > { %6223 = vmatprep.subr.bf16.mxu0 %v12042_v47  ;;  %v12110_v47 = vld [vmem:[%s13578_s24 + $0xb4] ss:$40 sps:$4 sm:$0xff]  }
 0x7d5   : > { %6251 = vmatpush1.bf16.msra.mxu1 %v12037_v10  ;;  %v12105_v10 = vld [vmem:[%s13578_s24 + $0x560] ss:$40 sps:$4 sm:$0xff]  }
 0x7d6   : > { %6252 = vmatprep.subr.bf16.mxu1 %v12045_v31  ;;  %v12113_v31 = vld [vmem:[%s13578_s24 + $0x5b4] ss:$40 sps:$4 sm:$0xff]  }
 0x7d7   : > { %6224 = vmatpush1.bf16.msra.mxu0 %v12040_v50  ;;  %v12108_v50 = vld [vmem:[%s13578_s24 + $0xb0] ss:$40 sps:$4 sm:$0xff]  }
 0x7d8   : > { %6225 = vmatprep.subr.bf16.mxu0 %v12048_v7  ;;  %v12116_v7 = vld [vmem:[%s13578_s24 + $0x104] ss:$40 sps:$4 sm:$0xff]  }
 0x7d9   : > { %6253 = vmatpush1.bf16.msra.mxu1 %v12043_v52  ;;  %v12111_v52 = vld [vmem:[%s13578_s24 + $0x5b0] ss:$40 sps:$4 sm:$0xff]  }
 0x7da   : > { %6254 = vmatprep.subr.bf16.mxu1 %v12051_v53  ;;  %v12119_v53 = vld [vmem:[%s13578_s24 + $0x604] ss:$40 sps:$4 sm:$0xff]  }
 0x7db   : > { %6226 = vmatpush1.bf16.msra.mxu0 %v12046_v54  ;;  %v12114_v54 = vld [vmem:[%s13578_s24 + $0x100] ss:$40 sps:$4 sm:$0xff]  }
 0x7dc   : > { %6227 = vmatprep.subr.bf16.mxu0 %v12054_v49  ;;  %v12122_v49 = vld [vmem:[%s13578_s24 + $0x154] ss:$40 sps:$4 sm:$0xff]  }
 0x7dd   : > { %6255 = vmatpush1.bf16.msra.mxu1 %v12049_v56  ;;  %v12117_v56 = vld [vmem:[%s13578_s24 + $0x600] ss:$40 sps:$4 sm:$0xff]  }
 0x7de   : > { %6256 = vmatprep.subr.bf16.mxu1 %v12057_v57  ;;  %v12125_v57 = vld [vmem:[%s13578_s24 + $0x654] ss:$40 sps:$4 sm:$0xff]  }
 0x7df   : > { %6228 = vmatpush1.bf16.msra.mxu0 %v12052_v58  ;;  %v12120_v58 = vld [vmem:[%s13578_s24 + $0x150] ss:$40 sps:$4 sm:$0xff]  }
 0x7e0   : > { %6279 = vmatprep.subr.bf16.mxu0 %v12060_v59  ;;  %v12128_v59 = vld [vmem:[%s13578_s24 + $0x1a4] ss:$40 sps:$4 sm:$0xff]  }
 0x7e1   : > { %6257 = vmatpush1.bf16.msra.mxu1 %v12055_v51  ;;  %v12123_v51 = vld [vmem:[%s13578_s24 + $0x650] ss:$40 sps:$4 sm:$0xff]  }
 0x7e2   : > { %6230 = vmatmul.mubr.bf16.vlgmr.msra.gmra.mrb[28].mxu0 %v13700_v25  ;;  %6258 = vmatprep.subr.bf16.mxu1 %v12063_v60  ;;  %v12131_v60 = vld [vmem:[%s13578_s24 + $0x6a4] ss:$40 sps:$4 sm:$0xff]  }
 0x7e3   : > { %6280 = vmatpush1.bf16.msra.mxu0 %v12058_v28  ;;  %6311 = vmatprep.mubr.bf16.mxu0 %v12926_v3  ;;  %v12126_v28 = vld [vmem:[%s13578_s24 + $0x1a0] ss:$40 sps:$4 sm:$0xff]  }
 0x7e4   : > { %6281 = vmatprep.subr.bf16.mxu0 %v12066_v62  ;;  %v12134_v62 = vld [vmem:[%s13578_s24 + $0x1f4] ss:$40 sps:$4 sm:$0xff]  }
 0x7e5   : > { %6259 = vmatpush1.bf16.msra.mxu1 %v12061_v63  ;;  %v12129_v63 = vld [vmem:[%s13578_s24 + $0x6a0] ss:$40 sps:$4 sm:$0xff]  }
 0x7e6   : > { %6260 = vmatprep.subr.bf16.mxu1 %v12069_v0  ;;  %v12137_v0 = vld [vmem:[%s13578_s24 + $0x6f4] ss:$40 sps:$4 sm:$0xff]  }
 0x7e7   : > { %6282 = vmatpush1.bf16.msra.mxu0 %v12064_v5  ;;  %v12132_v5 = vld [vmem:[%s13578_s24 + $0x1f0] ss:$40 sps:$4 sm:$0xff]  }
 0x7e8   : > { %6283 = vmatprep.subr.bf16.mxu0 %v12072_v2  ;;  %v12140_v2 = vld [vmem:[%s13578_s24 + $0x244] ss:$40 sps:$4 sm:$0xff]  }
 0x7e9   : > { %6261 = vmatpush1.bf16.msra.mxu1 %v12067_v4  ;;  %v12135_v4 = vld [vmem:[%s13578_s24 + $0x6f0] ss:$40 sps:$4 sm:$0xff]  }
 0x7ea   : > { %6262 = vmatprep.subr.bf16.mxu1 %v12075_v11  ;;  %v12143_v11 = vld [vmem:[%s13578_s24 + $0x744] ss:$40 sps:$4 sm:$0xff]  }
 0x7eb   : > { %6284 = vmatpush1.bf16.msra.mxu0 %v12070_v34  ;;  %v12138_v34 = vld [vmem:[%s13578_s24 + $0x240] ss:$40 sps:$4 sm:$0xff]  }
 0x7ec   : > { %6285 = vmatprep.subr.bf16.mxu0 %v12078_v14  ;;  %v12146_v14 = vld [vmem:[%s13578_s24 + $0x294] ss:$40 sps:$4 sm:$0xff]  }
 0x7ed   : > { %6263 = vmatpush1.bf16.msra.mxu1 %v12073_v15  ;;  %v12141_v15 = vld [vmem:[%s13578_s24 + $0x740] ss:$40 sps:$4 sm:$0xff]  }
 0x7ee   : > { %6264 = vmatprep.subr.bf16.mxu1 %v12081_v16  ;;  %v12149_v16 = vld [vmem:[%s13578_s24 + $0x794] ss:$40 sps:$4 sm:$0xff]  }
 0x7ef   : > { %6286 = vmatpush1.bf16.msra.mxu0 %v12076_v6  ;;  %v12144_v6 = vld [vmem:[%s13578_s24 + $0x290] ss:$40 sps:$4 sm:$0xff]  }
 0x7f0   : > { %6287 = vmatprep.subr.bf16.mxu0 %v12084_v17  ;;  %v12152_v17 = vld [vmem:[%s13578_s24 + $0x2e4] ss:$40 sps:$4 sm:$0xff]  }
 0x7f1   : > { %6265 = vmatpush1.bf16.msra.mxu1 %v12079_v18  ;;  %v12147_v18 = vld [vmem:[%s13578_s24 + $0x790] ss:$40 sps:$4 sm:$0xff]  }
 0x7f2   : > { %6266 = vmatprep.subr.bf16.mxu1 %v12087_v19  ;;  %v12155_v19 = vld [vmem:[%s13578_s24 + $0x7e4] ss:$40 sps:$4 sm:$0xff]  }
 0x7f3   : > { %6288 = vmatpush1.bf16.msra.mxu0 %v12082_v20  ;;  %v12150_v20 = vld [vmem:[%s13578_s24 + $0x2e0] ss:$40 sps:$4 sm:$0xff]  }
 0x7f4   : > { %6289 = vmatprep.subr.bf16.mxu0 %v12090_v21  ;;  %v12158_v21 = vld [vmem:[%s13578_s24 + $0x334] ss:$40 sps:$4 sm:$0xff]  }
 0x7f5   : > { %6267 = vmatpush1.bf16.msra.mxu1 %v12085_v8  ;;  %v12153_v8 = vld [vmem:[%s13578_s24 + $0x7e0] ss:$40 sps:$4 sm:$0xff]  }
 0x7f6   : > { %6268 = vmatprep.subr.bf16.mxu1 %v12093_v24  ;;  %v12156_v24 = vld [vmem:[%s13578_s24 + $0x330] ss:$40 sps:$4 sm:$0xff]  }
 0x7f7   : > { %6290 = vmatpush1.bf16.msra.mxu0 %v12088_v48  ;;  %v12164_v48 = vld [vmem:[%s13578_s24 + $0x384] ss:$40 sps:$4 sm:$0xff]  }
 0x7f8   : > { %10757 = vmatprep.subr.msk.bf16.mxu0 %vm399_vm1, %v10748_v29  ;;  %v12159_v29 = vld [vmem:[%s13578_s24 + $0x830] ss:$40 sps:$4 sm:$0xff]  }
 0x7f9   : > { %6269 = vmatpush1.bf16.msra.mxu1 %v12091_v39  ;;  %v12162_v39 = vld [vmem:[%s13578_s24 + $0x380] ss:$40 sps:$4 sm:$0xff]  }
 0x7fa   : > { %6320 = vmatprep.subr.bf16.mxu1 %v12098_v1  ;;  %v12170_v1 = vld [vmem:[%s13578_s24 + $0x3d4] ss:$40 sps:$4 sm:$0xff]  }
 0x7fb   : > { %6292 = vmatpush1.bf16.msra.mxu0 %v6051_v40  ;;  %v12165_v40 = vld [vmem:[%s13578_s24 + $0x880] ss:$40 sps:$4 sm:$0xff]  }
 0x7fc   : > { %6271 = vmatmul.mubr.bf16.vlgmr.msra.gmra.mrb[28].mxu1 %v13708_v37  ;;  %6361 = vmatprep.subr.bf16.mxu0 %v12101_v41  ;;  %v12173_v41 = vld [vmem:[%s13578_s24 + $0x8d4] ss:$40 sps:$4 sm:$0xff]  }
 0x7fd   : > { %6321 = vmatpush1.bf16.msra.mxu1 %v12096_v42  ;;  %6352 = vmatprep.mubr.bf16.mxu1 %v13697_v22  ;;  %v12168_v42 = vld [vmem:[%s13578_s24 + $0x3d0] ss:$40 sps:$4 sm:$0xff]  }
 0x7fe   : > { %10758 = vmatmul.mubr.msk.bf16.vlgmr.msra.gmra.mrb[32].mxu0 %vm936_vm4, %v13749_v61  ;;  %6322 = vmatprep.subr.bf16.mxu1 %v12104_v43  ;;  %v12176_v43 = vld [vmem:[%s13578_s24 + $0x424] ss:$40 sps:$4 sm:$0xff]  }
 0x7ff   : > { %6362 = vmatpush1.bf16.msra.mxu0 %v12099_v44  ;;  %6393 = vmatprep.mubr.bf16.mxu0 %v13704_v27  ;;  %v12171_v44 = vld [vmem:[%s13578_s24 + $0x8d0] ss:$40 sps:$4 sm:$0xff]  }
 0x800   : > { %6363 = vmatprep.subr.bf16.mxu0 %v12107_v45  ;;  %v12179_v45 = vld [vmem:[%s13578_s24 + $0x924] ss:$40 sps:$4 sm:$0xff]  }
 0x801   : > { %6323 = vmatpush1.bf16.msra.mxu1 %v12102_v46  ;;  %v12174_v46 = vld [vmem:[%s13578_s24 + $0x420] ss:$40 sps:$4 sm:$0xff]  }
 0x802   : > { %6324 = vmatprep.subr.bf16.mxu1 %v12110_v47  ;;  %v12182_v47 = vld [vmem:[%s13578_s24 + $0x474] ss:$40 sps:$4 sm:$0xff]  }
 0x803   : > { %6364 = vmatpush1.bf16.msra.mxu0 %v12105_v10  ;;  %v12177_v10 = vld [vmem:[%s13578_s24 + $0x920] ss:$40 sps:$4 sm:$0xff]  }
 0x804   : > { %6365 = vmatprep.subr.bf16.mxu0 %v12113_v31  ;;  %v12185_v31 = vld [vmem:[%s13578_s24 + $0x974] ss:$40 sps:$4 sm:$0xff]  }
 0x805   : > { %6325 = vmatpush1.bf16.msra.mxu1 %v12108_v50  ;;  %v12180_v50 = vld [vmem:[%s13578_s24 + $0x470] ss:$40 sps:$4 sm:$0xff]  }
 0x806   : > { %6326 = vmatprep.subr.bf16.mxu1 %v12116_v7  ;;  %v12188_v7 = vld [vmem:[%s13578_s24 + $0x4c4] ss:$40 sps:$4 sm:$0xff]  }
 0x807   : > { %6366 = vmatpush1.bf16.msra.mxu0 %v12111_v52  ;;  %v12183_v52 = vld [vmem:[%s13578_s24 + $0x970] ss:$40 sps:$4 sm:$0xff]  }
 0x808   : > { %6367 = vmatprep.subr.bf16.mxu0 %v12119_v53  ;;  %v12191_v53 = vld [vmem:[%s13578_s24 + $0x9c4] ss:$40 sps:$4 sm:$0xff]  }
 0x809   : > { %6327 = vmatpush1.bf16.msra.mxu1 %v12114_v54  ;;  %v12186_v54 = vld [vmem:[%s13578_s24 + $0x4c0] ss:$40 sps:$4 sm:$0xff]  }
 0x80a   : > { %6328 = vmatprep.subr.bf16.mxu1 %v12122_v49  ;;  %v12194_v49 = vld [vmem:[%s13578_s24 + $0xa14] ss:$40 sps:$4 sm:$0xff]  }
 0x80b   : > { %6368 = vmatpush1.bf16.msra.mxu0 %v12117_v56  ;;  %v12189_v56 = vld [vmem:[%s13578_s24 + $0x9c0] ss:$40 sps:$4 sm:$0xff]  }
 0x80c   : > { %6369 = vmatprep.subr.bf16.mxu0 %v12125_v57  ;;  %v12197_v57 = vld [vmem:[%s13578_s24 + $0x1c] ss:$40 sps:$4 sm:$0xff]  }
 0x80d   : > { %6329 = vmatpush1.bf16.msra.mxu1 %v12120_v58  ;;  %v12192_v58 = vld [vmem:[%s13578_s24 + $0xa10] ss:$40 sps:$4 sm:$0xff]  }
 0x80e   : > { %6330 = vmatprep.subr.bf16.mxu1 %v12128_v59  ;;  %v12200_v59 = vld [vmem:[%s13578_s24 + $0xa64] ss:$40 sps:$4 sm:$0xff]  }
 0x80f   : > { %6370 = vmatpush1.bf16.msra.mxu0 %v12123_v51  ;;  %v12195_v51 = vld [vmem:[%s13578_s24 + $0x18] ss:$40 sps:$4 sm:$0xff]  }
 0x810   : > { %6371 = vmatprep.subr.bf16.mxu0 %v12131_v60  ;;  %v12203_v60 = vld [vmem:[%s13578_s24 + $0x6c] ss:$40 sps:$4 sm:$0xff]  }
 0x811   : > { %6331 = vmatpush1.bf16.msra.mxu1 %v12126_v28  ;;  %v12198_v28 = vld [vmem:[%s13578_s24 + $0xa60] ss:$40 sps:$4 sm:$0xff]  }
 0x812   : > { %6332 = vmatprep.subr.bf16.mxu1 %v12134_v62  ;;  %v12206_v62 = vld [vmem:[%s13578_s24 + $0xab4] ss:$40 sps:$4 sm:$0xff]  }
 0x813   : > { %6372 = vmatpush1.bf16.msra.mxu0 %v12129_v63  ;;  %v12201_v63 = vld [vmem:[%s13578_s24 + $0x68] ss:$40 sps:$4 sm:$0xff]  }
 0x814   : > { %6373 = vmatprep.subr.bf16.mxu0 %v12137_v0  ;;  %v12209_v0 = vld [vmem:[%s13578_s24 + $0xbc] ss:$40 sps:$4 sm:$0xff]  }
 0x815   : > { %6333 = vmatpush1.bf16.msra.mxu1 %v12132_v5  ;;  %v12204_v5 = vld [vmem:[%s13578_s24 + $0xab0] ss:$40 sps:$4 sm:$0xff]  }
 0x816   : > { %6334 = vmatprep.subr.bf16.mxu1 %v12140_v2  ;;  %v12212_v2 = vld [vmem:[%s13578_s24 + $0xb04] ss:$40 sps:$4 sm:$0xff]  }
 0x817   : > { %6374 = vmatpush1.bf16.msra.mxu0 %v12135_v4  ;;  %v12207_v4 = vld [vmem:[%s13578_s24 + $0xb8] ss:$40 sps:$4 sm:$0xff]  }
 0x818   : > { %6375 = vmatprep.subr.bf16.mxu0 %v12143_v11  ;;  %v12215_v11 = vld [vmem:[%s13578_s24 + $0x10c] ss:$40 sps:$4 sm:$0xff]  }
 0x819   : > { %6335 = vmatpush1.bf16.msra.mxu1 %v12138_v34  ;;  %v12210_v34 = vld [vmem:[%s13578_s24 + $0xb00] ss:$40 sps:$4 sm:$0xff]  }
 0x81a   : > { %6336 = vmatprep.subr.bf16.mxu1 %v12146_v14  ;;  %v12218_v14 = vld [vmem:[%s13578_s24 + $0xb54] ss:$40 sps:$4 sm:$0xff]  }
 0x81b   : > { %6376 = vmatpush1.bf16.msra.mxu0 %v12141_v15  ;;  %v12213_v15 = vld [vmem:[%s13578_s24 + $0x108] ss:$40 sps:$4 sm:$0xff]  }
 0x81c   : > { %6377 = vmatprep.subr.bf16.mxu0 %v12149_v16  ;;  %v12221_v16 = vld [vmem:[%s13578_s24 + $0x15c] ss:$40 sps:$4 sm:$0xff]  }
 0x81d   : > { %6337 = vmatpush1.bf16.msra.mxu1 %v12144_v6  ;;  %v12216_v6 = vld [vmem:[%s13578_s24 + $0xb50] ss:$40 sps:$4 sm:$0xff]  }
 0x81e   : > { %6338 = vmatprep.subr.bf16.mxu1 %v12152_v17  ;;  %v12224_v17 = vld [vmem:[%s13578_s24 + $0xba4] ss:$40 sps:$4 sm:$0xff]  }
 0x81f   : > { %6378 = vmatpush1.bf16.msra.mxu0 %v12147_v18  ;;  %v12219_v18 = vld [vmem:[%s13578_s24 + $0x158] ss:$40 sps:$4 sm:$0xff]  }
 0x820   : > { %6379 = vmatprep.subr.bf16.mxu0 %v12155_v19  ;;  %v4113_v19 = vld [vmem:[%s13578_s24 + $0xbf0] sm:$0x33] }
 0x821   : > { %6339 = vmatpush1.bf16.msra.mxu1 %v12150_v20  ;;  %v12227_v20 = vld [vmem:[%s13578_s24 + $0x1ac] ss:$40 sps:$4 sm:$0xff]  }
 0x822   : > { %6340 = vmatprep.subr.bf16.mxu1 %v12158_v21  ;;  %v12222_v21 = vld [vmem:[%s13578_s24 + $0xba0] ss:$40 sps:$4 sm:$0xff]  }
 0x823   : > { %6380 = vmatpush1.bf16.msra.mxu0 %v12153_v8  ;;  %v10750_v8 = vcombine.high %v4113_v19, %v4113_v19 }
 0x824   : > { %6381 = vmatprep.subr.bf16.mxu0 %v12161_v35  ;;  %v10749_v35 = vcombine.low %v4113_v19, %v4113_v19 }
 0x825   : > { %6341 = vmatpush1.bf16.msra.mxu1 %v12156_v24  ;;  %v12225_v24 = vld [vmem:[%s13578_s24 + $0x1a8] ss:$40 sps:$4 sm:$0xff]  }
 0x826   : > { %6342 = vmatprep.subr.bf16.mxu1 %v12164_v48  ;;  %v12232_v48 = vld [vmem:[%s13578_s24 + $0x1fc] ss:$40 sps:$4 sm:$0xff]  }
 0x827   : > { %6382 = vmatpush1.bf16.msra.mxu0 %v12159_v29  ;;  %v6057_v29 = vsel %vm399_vm1, %v10749_v35, 0 }
 0x828   : > { %6383 = vmatprep.subr.bf16.mxu0 %v12167_v38  ;;  %v12235_v38 = vld [vmem:[%s13578_s24 + $0x51c] ss:$40 sps:$4 sm:$0xff]  }
 0x829   : > { %6343 = vmatpush1.bf16.msra.mxu1 %v12162_v39  ;;  %v12230_v39 = vld [vmem:[%s13578_s24 + $0x1f8] ss:$40 sps:$4 sm:$0xff]  }
 0x82a   : > { %6344 = vmatprep.subr.bf16.mxu1 %v12170_v1  ;;  %v12238_v1 = vld [vmem:[%s13578_s24 + $0x24c] ss:$40 sps:$4 sm:$0xff]  }
 0x82b   : > { %6384 = vmatpush1.bf16.msra.mxu0 %v12165_v40  ;;  %v12233_v40 = vld [vmem:[%s13578_s24 + $0x518] ss:$40 sps:$4 sm:$0xff]  }
 0x82c   : > { %6385 = vmatprep.subr.bf16.mxu0 %v12173_v41  ;;  %v12241_v41 = vld [vmem:[%s13578_s24 + $0x56c] ss:$40 sps:$4 sm:$0xff]  }
 0x82d   : > { %6345 = vmatpush1.bf16.msra.mxu1 %v12168_v42  ;;  %v12236_v42 = vld [vmem:[%s13578_s24 + $0x248] ss:$40 sps:$4 sm:$0xff]  }
 0x82e   : > { %6346 = vmatprep.subr.bf16.mxu1 %v12176_v43  ;;  %v12244_v43 = vld [vmem:[%s13578_s24 + $0x29c] ss:$40 sps:$4 sm:$0xff]  }
 0x82f   : > { %6386 = vmatpush1.bf16.msra.mxu0 %v12171_v44  ;;  %v12239_v44 = vld [vmem:[%s13578_s24 + $0x568] ss:$40 sps:$4 sm:$0xff]  }
 0x830   : > { %6387 = vmatprep.subr.bf16.mxu0 %v12179_v45  ;;  %v12247_v45 = vld [vmem:[%s13578_s24 + $0x5bc] ss:$40 sps:$4 sm:$0xff]  }
 0x831   : > { %6347 = vmatpush1.bf16.msra.mxu1 %v12174_v46  ;;  %v12242_v46 = vld [vmem:[%s13578_s24 + $0x298] ss:$40 sps:$4 sm:$0xff]  }
 0x832   : > { %6348 = vmatprep.subr.bf16.mxu1 %v12182_v47  ;;  %v12250_v47 = vld [vmem:[%s13578_s24 + $0x2ec] ss:$40 sps:$4 sm:$0xff]  }
 0x833   : > { %6388 = vmatpush1.bf16.msra.mxu0 %v12177_v10  ;;  %v12245_v10 = vld [vmem:[%s13578_s24 + $0x5b8] ss:$40 sps:$4 sm:$0xff]  }
 0x834   : > { %6389 = vmatprep.subr.bf16.mxu0 %v12185_v31  ;;  %v12253_v31 = vld [vmem:[%s13578_s24 + $0x60c] ss:$40 sps:$4 sm:$0xff]  }
 0x835   : > { %6349 = vmatpush1.bf16.msra.mxu1 %v12180_v50  ;;  %v12248_v50 = vld [vmem:[%s13578_s24 + $0x2e8] ss:$40 sps:$4 sm:$0xff]  }
 0x836   : > { %6350 = vmatprep.subr.bf16.mxu1 %v12188_v7  ;;  %v12256_v7 = vld [vmem:[%s13578_s24 + $0x33c] ss:$40 sps:$4 sm:$0xff]  }
 0x837   : > { %6390 = vmatpush1.bf16.msra.mxu0 %v12183_v52  ;;  %v12251_v52 = vld [vmem:[%s13578_s24 + $0x608] ss:$40 sps:$4 sm:$0xff]  }
 0x838   : > { %6391 = vmatprep.subr.bf16.mxu0 %v12191_v53  ;;  %v12259_v53 = vld [vmem:[%s13578_s24 + $0x65c] ss:$40 sps:$4 sm:$0xff]  }
 0x839   : > { %6351 = vmatpush1.bf16.msra.mxu1 %v12186_v54  ;;  %v12254_v54 = vld [vmem:[%s13578_s24 + $0x338] ss:$40 sps:$4 sm:$0xff]  }
 0x83a   : > { %6402 = vmatprep.subr.bf16.mxu1 %v12194_v49  ;;  %v12262_v49 = vld [vmem:[%s13578_s24 + $0x38c] ss:$40 sps:$4 sm:$0xff]  }
 0x83b   : > { %6392 = vmatpush1.bf16.msra.mxu0 %v12189_v56  ;;  %v12257_v56 = vld [vmem:[%s13578_s24 + $0x658] ss:$40 sps:$4 sm:$0xff]  }
 0x83c   : > { %6353 = vmatmul.mubr.bf16.vlgmr.msra.gmra.mrb[32].mxu1 %v13700_v25  ;;  %6443 = vmatprep.subr.bf16.mxu0 %v12197_v57  ;;  %v12265_v57 = vld [vmem:[%s13578_s24 + $0x6ac] ss:$40 sps:$4 sm:$0xff]  }
 0x83d   : > { %6403 = vmatpush1.bf16.msra.mxu1 %v12192_v58  ;;  %6434 = vmatprep.mubr.bf16.mxu1 %v12926_v3  ;;  %v12260_v58 = vld [vmem:[%s13578_s24 + $0x388] ss:$40 sps:$4 sm:$0xff]  }
 0x83e   : > { %6394 = vmatmul.mubr.bf16.vlgmr.msra.gmra.mrb[36].mxu0 %v13708_v37  ;;  %6404 = vmatprep.subr.bf16.mxu1 %v12200_v59  ;;  %v12268_v59 = vld [vmem:[%s13578_s24 + $0x3dc] ss:$40 sps:$4 sm:$0xff]  }
 0x83f   : > { %6444 = vmatpush1.bf16.msra.mxu0 %v12195_v51  ;;  %6475 = vmatprep.mubr.bf16.mxu0 %v13697_v22  ;;  %v12263_v51 = vld [vmem:[%s13578_s24 + $0x6a8] ss:$40 sps:$4 sm:$0xff]  }
 0x840   : > { %6445 = vmatprep.subr.bf16.mxu0 %v12203_v60  ;;  %v12271_v60 = vld [vmem:[%s13578_s24 + $0x6fc] ss:$40 sps:$4 sm:$0xff]  }
 0x841   : > { %6405 = vmatpush1.bf16.msra.mxu1 %v12198_v28  ;;  %v12266_v28 = vld [vmem:[%s13578_s24 + $0x3d8] ss:$40 sps:$4 sm:$0xff]  }
 0x842   : > { %6406 = vmatprep.subr.bf16.mxu1 %v12206_v62  ;;  %v12274_v62 = vld [vmem:[%s13578_s24 + $0x42c] ss:$40 sps:$4 sm:$0xff]  }
 0x843   : > { %6446 = vmatpush1.bf16.msra.mxu0 %v12201_v63  ;;  %v12269_v63 = vld [vmem:[%s13578_s24 + $0x6f8] ss:$40 sps:$4 sm:$0xff]  }
 0x844   : > { %6447 = vmatprep.subr.bf16.mxu0 %v12209_v0  ;;  %v12277_v0 = vld [vmem:[%s13578_s24 + $0x74c] ss:$40 sps:$4 sm:$0xff]  }
 0x845   : > { %6407 = vmatpush1.bf16.msra.mxu1 %v12204_v5  ;;  %v12272_v5 = vld [vmem:[%s13578_s24 + $0x428] ss:$40 sps:$4 sm:$0xff]  }
 0x846   : > { %6408 = vmatprep.subr.bf16.mxu1 %v12212_v2  ;;  %v12280_v2 = vld [vmem:[%s13578_s24 + $0x47c] ss:$40 sps:$4 sm:$0xff]  }
 0x847   : > { %6448 = vmatpush1.bf16.msra.mxu0 %v12207_v4  ;;  %v12275_v4 = vld [vmem:[%s13578_s24 + $0x748] ss:$40 sps:$4 sm:$0xff]  }
 0x848   : > { %6449 = vmatprep.subr.bf16.mxu0 %v12215_v11  ;;  %v12283_v11 = vld [vmem:[%s13578_s24 + $0x79c] ss:$40 sps:$4 sm:$0xff]  }
 0x849   : > { %6409 = vmatpush1.bf16.msra.mxu1 %v12210_v34 }
 0x84a   : > { %6410 = vmatprep.subr.bf16.mxu1 %v12218_v14  ;;  %v12278_v14 = vld [vmem:[%s13578_s24 + $0x478] ss:$40 sps:$4 sm:$0xff]  }
 0x84b   : > { %6450 = vmatpush1.bf16.msra.mxu0 %v12213_v15 }
 0x84c   : > { %6451 = vmatprep.subr.bf16.mxu0 %v12221_v16  ;;  %v12286_v16 = vld [vmem:[%s13578_s24 + $0x4cc] ss:$40 sps:$4 sm:$0xff]  }
 0x84d   : > { %6411 = vmatpush1.bf16.msra.mxu1 %v12216_v6 }
 0x84e   : > { %6412 = vmatprep.subr.bf16.mxu1 %v12224_v17 }
 0x84f   : > { %6452 = vmatpush1.bf16.msra.mxu0 %v12219_v18  ;;  %v12281_v18 = vld [vmem:[%s13578_s24 + $0x798] ss:$40 sps:$4 sm:$0xff]  }
 0x850   : > { %6453 = vmatprep.subr.bf16.mxu0 %v12227_v20 }
 0x851   : > { %6413 = vmatpush1.bf16.msra.mxu1 %v12222_v21 }
 0x852   : > { %10759 = vmatprep.subr.msk.bf16.mxu1 %vm399_vm1, %v10750_v8  ;;  %v12289_v8 = vld [vmem:[%s13578_s24 + $0x7ec] ss:$40 sps:$4 sm:$0xff]  }
 0x853   : > { %6454 = vmatpush1.bf16.msra.mxu0 %v12225_v24 }
 0x854   : > { %6455 = vmatprep.subr.bf16.mxu0 %v12232_v48  ;;  %v12284_v48 = vld [vmem:[%s13578_s24 + $0x4c8] ss:$40 sps:$4 sm:$0xff]  }
 0x855   : > { %6415 = vmatpush1.bf16.msra.mxu1 %v6057_v29 }
 0x856   : > { %6484 = vmatprep.subr.bf16.mxu1 %v12235_v38  ;;  %v12292_v38 = vld [vmem:[%s13578_s24 + $0xa1c] ss:$40 sps:$4 sm:$0xff]  }
 0x857   : > { %6456 = vmatpush1.bf16.msra.mxu0 %v12230_v39  ;;  %v12287_v39 = vld [vmem:[%s13578_s24 + $0x7e8] ss:$40 sps:$4 sm:$0xff]  }
 0x858   : > { %10760 = vmatmul.mubr.msk.bf16.vlgmr.msra.gmra.mrb[36].mxu1 %vm936_vm4, %v13749_v61  ;;  %6457 = vmatprep.subr.bf16.mxu0 %v12238_v1  ;;  %v12295_v1 = vld [vmem:[%s13578_s24 + $0x83c] ss:$40 sps:$4 sm:$0xff]  }
 0x859   : > { %6485 = vmatpush1.bf16.msra.mxu1 %v12233_v40  ;;  %6516 = vmatprep.mubr.bf16.mxu1 %v13704_v27  ;;  %v12290_v40 = vld [vmem:[%s13578_s24 + $0xa18] ss:$40 sps:$4 sm:$0xff]  }
 0x85a   : > { %6486 = vmatprep.subr.bf16.mxu1 %v12241_v41  ;;  %v12298_v41 = vld [vmem:[%s13578_s24 + $0xa6c] ss:$40 sps:$4 sm:$0xff]  }
 0x85b   : > { %6458 = vmatpush1.bf16.msra.mxu0 %v12236_v42  ;;  %v12293_v42 = vld [vmem:[%s13578_s24 + $0x838] ss:$40 sps:$4 sm:$0xff]  }
 0x85c   : > { %6459 = vmatprep.subr.bf16.mxu0 %v12244_v43  ;;  %v12301_v43 = vld [vmem:[%s13578_s24 + $0x88c] ss:$40 sps:$4 sm:$0xff]  }
 0x85d   : > { %6487 = vmatpush1.bf16.msra.mxu1 %v12239_v44  ;;  %v12296_v44 = vld [vmem:[%s13578_s24 + $0xa68] ss:$40 sps:$4 sm:$0xff]  }
 0x85e   : > { %6488 = vmatprep.subr.bf16.mxu1 %v12247_v45  ;;  %v12304_v45 = vld [vmem:[%s13578_s24 + $0xabc] ss:$40 sps:$4 sm:$0xff]  }
 0x85f   : > { %6460 = vmatpush1.bf16.msra.mxu0 %v12242_v46  ;;  %v12299_v46 = vld [vmem:[%s13578_s24 + $0x888] ss:$40 sps:$4 sm:$0xff]  }
 0x860   : > { %6461 = vmatprep.subr.bf16.mxu0 %v12250_v47  ;;  %v12307_v47 = vld [vmem:[%s13578_s24 + $0x8dc] ss:$40 sps:$4 sm:$0xff]  }
 0x861   : > { %6489 = vmatpush1.bf16.msra.mxu1 %v12245_v10  ;;  %v12302_v10 = vld [vmem:[%s13578_s24 + $0xab8] ss:$40 sps:$4 sm:$0xff]  }
 0x862   : > { %6490 = vmatprep.subr.bf16.mxu1 %v12253_v31  ;;  %v12310_v31 = vld [vmem:[%s13578_s24 + $0xb0c] ss:$40 sps:$4 sm:$0xff]  }
 0x863   : > { %6462 = vmatpush1.bf16.msra.mxu0 %v12248_v50  ;;  %v12305_v50 = vld [vmem:[%s13578_s24 + $0x8d8] ss:$40 sps:$4 sm:$0xff]  }
 0x864   : > { %6463 = vmatprep.subr.bf16.mxu0 %v12256_v7  ;;  %v12313_v7 = vld [vmem:[%s13578_s24 + $0x92c] ss:$40 sps:$4 sm:$0xff]  }
 0x865   : > { %6491 = vmatpush1.bf16.msra.mxu1 %v12251_v52  ;;  %v12308_v52 = vld [vmem:[%s13578_s24 + $0xb08] ss:$40 sps:$4 sm:$0xff]  }
 0x866   : > { %6492 = vmatprep.subr.bf16.mxu1 %v12259_v53  ;;  %v12316_v53 = vld [vmem:[%s13578_s24 + $0xb5c] ss:$40 sps:$4 sm:$0xff]  }
 0x867   : > { %6464 = vmatpush1.bf16.msra.mxu0 %v12254_v54  ;;  %v12311_v54 = vld [vmem:[%s13578_s24 + $0x928] ss:$40 sps:$4 sm:$0xff]  }
 0x868   : > { %6465 = vmatprep.subr.bf16.mxu0 %v12262_v49  ;;  %v12319_v49 = vld [vmem:[%s13578_s24 + $0x97c] ss:$40 sps:$4 sm:$0xff]  }
 0x869   : > { %6493 = vmatpush1.bf16.msra.mxu1 %v12257_v56  ;;  %v12314_v56 = vld [vmem:[%s13578_s24 + $0xb58] ss:$40 sps:$4 sm:$0xff]  }
 0x86a   : > { %6494 = vmatprep.subr.bf16.mxu1 %v12265_v57  ;;  %v12322_v57 = vld [vmem:[%s13578_s24 + $0xbac] ss:$40 sps:$4 sm:$0xff]  }
 0x86b   : > { %6466 = vmatpush1.bf16.msra.mxu0 %v12260_v58  ;;  %v12317_v58 = vld [vmem:[%s13578_s24 + $0x978] ss:$40 sps:$4 sm:$0xff]  }
 0x86c   : > { %6467 = vmatprep.subr.bf16.mxu0 %v12268_v59  ;;  %v4114_v59 = vld [vmem:[%s13578_s24 + $0xbf8] sm:$0x33] }
 0x86d   : > { %6495 = vmatpush1.bf16.msra.mxu1 %v12263_v51  ;;  %v12325_v51 = vld [vmem:[%s13578_s24 + $0x9cc] ss:$40 sps:$4 sm:$0xff]  }
 0x86e   : > { %6496 = vmatprep.subr.bf16.mxu1 %v12271_v60 }
 0x86f   : > { %6468 = vmatpush1.bf16.msra.mxu0 %v12266_v28  ;;  %v12320_v28 = vld [vmem:[%s13578_s24 + $0xba8] ss:$40 sps:$4 sm:$0xff]  }
 0x870   : > { %6469 = vmatprep.subr.bf16.mxu0 %v12274_v62 }
 0x871   : > { %6497 = vmatpush1.bf16.msra.mxu1 %v12269_v63 }
 0x872   : > { %6498 = vmatprep.subr.bf16.mxu1 %v12277_v0  ;;  %v10752_v0 = vcombine.high %v4114_v59, %v4114_v59 }
 0x873   : > { %6470 = vmatpush1.bf16.msra.mxu0 %v12272_v5  ;;  %v6108_v34 = vpop.f32.mrb[20].mxu1  ;;  %v10751_v5 = vcombine.low %v4114_v59, %v4114_v59  ;;  %v12384_v59 = vld [vmem:[%s13578_s24 + $0x2f4] ss:$40 sps:$4 sm:$0xff]  }
 0x874   : > { %v6110_v15 = vpop.f32.mrb[21].mxu1  ;;  %6471 = vmatprep.subr.bf16.mxu0 %v12280_v2 }
 0x875   : > { %6499 = vmatpush1.bf16.msra.mxu1 %v12275_v4  ;;  %v6112_v6 = vpop.f32.mrb[22].mxu1  ;;  %v6149_v17 = vpop.f32.mrb[24].mxu0 }
 0x876   : > { %v6150_v19 = vadd.f32 %v6149_v17, %v6108_v34  ;;  %v6113_v20 = vpop.f32.mrb[23].mxu1  ;;  %v6151_v21 = vpop.f32.mrb[25].mxu0  ;;  %6500 = vmatprep.subr.bf16.mxu1 %v12283_v11  ;;  %v12323_v11 = vld [vmem:[%s13578_s24 + $0x9c8] ss:$40 sps:$4 sm:$0xff]   ;;  %v12336_v17 = vld [vmem:[%s13578_s24 + $0x74] ss:$40 sps:$4 sm:$0xff]  }
 0x877   : > { %v6152_v35 = vadd.f32 %v6151_v21, %v6110_v15  ;;  %6472 = vmatpush1.bf16.msra.mxu0 %v12278_v14  ;;  %v6153_v24 = vpop.f32.mrb[26].mxu0  ;;  %v12330_v14 = vld [vmem:[%s13578_s24 + $0x24] ss:$40 sps:$4 sm:$0xff]   ;;  %v6063_v15 = vsel %vm399_vm1, %v10751_v5, 0  ;;  %v12328_v6 = vld [vmem:[%s13578_s24 + $0x20] ss:$40 sps:$4 sm:$0xff]  }
 0x878   : > { %v6154_v29 = vpop.f32.mrb[27].mxu0  ;;  %6473 = vmatprep.subr.bf16.mxu0 %v12286_v16  ;;  %v12333_v16 = vld [vmem:[%s13578_s24 + $0x524] ss:$40 sps:$4 sm:$0xff]   ;;  %v12334_v20 = vld [vmem:[%s13578_s24 + $0x70] ss:$40 sps:$4 sm:$0xff]  }
 0x879   : > { %6501 = vmatpush1.bf16.msra.mxu1 %v12281_v18  ;;  %v12331_v18 = vld [vmem:[%s13578_s24 + $0x520] ss:$40 sps:$4 sm:$0xff]   ;;  %v12342_v21 = vld [vmem:[%s13578_s24 + $0xc4] ss:$40 sps:$4 sm:$0xff]   ;;  %v12351_v29 = vld [vmem:[%s13578_s24 + $0x614] ss:$40 sps:$4 sm:$0xff]  }
 0x87a   : > { %6502 = vmatprep.subr.bf16.mxu1 %v12289_v8  ;;  %v12337_v8 = vld [vmem:[%s13578_s24 + $0x570] ss:$40 sps:$4 sm:$0xff]   ;;  %v12340_v24 = vld [vmem:[%s13578_s24 + $0xc0] ss:$40 sps:$4 sm:$0xff]   ;;  %v12390_v5 = vld [vmem:[%s13578_s24 + $0x344] ss:$40 sps:$4 sm:$0xff]  }
 0x87b   : > { %6474 = vmatpush1.bf16.msra.mxu0 %v12284_v48  ;;  %v12343_v48 = vld [vmem:[%s13578_s24 + $0x5c0] ss:$40 sps:$4 sm:$0xff]  }
 0x87c   : > { %6525 = vmatprep.subr.bf16.mxu0 %v12292_v38  ;;  %v12346_v38 = vld [vmem:[%s13578_s24 + $0x110] ss:$40 sps:$4 sm:$0xff]  }
 0x87d   : > { %6503 = vmatpush1.bf16.msra.mxu1 %v12287_v39  ;;  %v12349_v39 = vld [vmem:[%s13578_s24 + $0x610] ss:$40 sps:$4 sm:$0xff]  }
 0x87e   : > { %6476 = vmatmul.mubr.bf16.vlgmr.msra.gmra.mrb[40].mxu0 %v13700_v25  ;;  %6504 = vmatprep.subr.bf16.mxu1 %v12295_v1  ;;  %v12357_v1 = vld [vmem:[%s13578_s24 + $0x664] ss:$40 sps:$4 sm:$0xff]  }
 0x87f   : > { %6526 = vmatpush1.bf16.msra.mxu0 %v12290_v40  ;;  %6557 = vmatprep.mubr.bf16.mxu0 %v12926_v3  ;;  %v12352_v40 = vld [vmem:[%s13578_s24 + $0x160] ss:$40 sps:$4 sm:$0xff]  }
 0x880   : > { %6527 = vmatprep.subr.bf16.mxu0 %v12298_v41  ;;  %v12360_v41 = vld [vmem:[%s13578_s24 + $0x1b4] ss:$40 sps:$4 sm:$0xff]  }
 0x881   : > { %6505 = vmatpush1.bf16.msra.mxu1 %v12293_v42  ;;  %v12355_v42 = vld [vmem:[%s13578_s24 + $0x660] ss:$40 sps:$4 sm:$0xff]  }
 0x882   : > { %6506 = vmatprep.subr.bf16.mxu1 %v12301_v43  ;;  %v12363_v43 = vld [vmem:[%s13578_s24 + $0x6b4] ss:$40 sps:$4 sm:$0xff]  }
 0x883   : > { %6528 = vmatpush1.bf16.msra.mxu0 %v12296_v44  ;;  %v12358_v44 = vld [vmem:[%s13578_s24 + $0x1b0] ss:$40 sps:$4 sm:$0xff]  }
 0x884   : > { %6529 = vmatprep.subr.bf16.mxu0 %v12304_v45  ;;  %v12366_v45 = vld [vmem:[%s13578_s24 + $0x204] ss:$40 sps:$4 sm:$0xff]  }
 0x885   : > { %6507 = vmatpush1.bf16.msra.mxu1 %v12299_v46  ;;  %v12361_v46 = vld [vmem:[%s13578_s24 + $0x6b0] ss:$40 sps:$4 sm:$0xff]  }
 0x886   : > { %6508 = vmatprep.subr.bf16.mxu1 %v12307_v47  ;;  %v12369_v47 = vld [vmem:[%s13578_s24 + $0x704] ss:$40 sps:$4 sm:$0xff]  }
 0x887   : > { %6530 = vmatpush1.bf16.msra.mxu0 %v12302_v10  ;;  %v12364_v10 = vld [vmem:[%s13578_s24 + $0x200] ss:$40 sps:$4 sm:$0xff]  }
 0x888   : > { %6531 = vmatprep.subr.bf16.mxu0 %v12310_v31  ;;  %v12372_v31 = vld [vmem:[%s13578_s24 + $0x254] ss:$40 sps:$4 sm:$0xff]  }
 0x889   : > { %6509 = vmatpush1.bf16.msra.mxu1 %v12305_v50  ;;  %v12367_v50 = vld [vmem:[%s13578_s24 + $0x700] ss:$40 sps:$4 sm:$0xff]  }
 0x88a   : > { %6510 = vmatprep.subr.bf16.mxu1 %v12313_v7  ;;  %v12375_v7 = vld [vmem:[%s13578_s24 + $0x754] ss:$40 sps:$4 sm:$0xff]  }
 0x88b   : > { %6532 = vmatpush1.bf16.msra.mxu0 %v12308_v52  ;;  %v12370_v52 = vld [vmem:[%s13578_s24 + $0x250] ss:$40 sps:$4 sm:$0xff]  }
 0x88c   : > { %6533 = vmatprep.subr.bf16.mxu0 %v12316_v53  ;;  %v12378_v53 = vld [vmem:[%s13578_s24 + $0x2a4] ss:$40 sps:$4 sm:$0xff]  }
 0x88d   : > { %6511 = vmatpush1.bf16.msra.mxu1 %v12311_v54  ;;  %v12373_v54 = vld [vmem:[%s13578_s24 + $0x750] ss:$40 sps:$4 sm:$0xff]  }
 0x88e   : > { %6512 = vmatprep.subr.bf16.mxu1 %v12319_v49  ;;  %v12381_v49 = vld [vmem:[%s13578_s24 + $0x7a4] ss:$40 sps:$4 sm:$0xff]  }
 0x88f   : > { %v6190_v60 = vpop.f32.mrb[24].mxu1  ;;  %6534 = vmatpush1.bf16.msra.mxu0 %v12314_v56 }
 0x890   : > { %v13987_v62 = vadd.f32 %v6190_v60, %v6150_v19  ;;  %v6192_v63 = vpop.f32.mrb[25].mxu1  ;;  %6535 = vmatprep.subr.bf16.mxu0 %v12322_v57  ;;  %v12339_v19 = vld [vmem:[%s13578_s24 + $0x574] ss:$40 sps:$4 sm:$0xff]   ;;  %v12376_v57 = vld [vmem:[%s13578_s24 + $0x2a0] ss:$40 sps:$4 sm:$0xff]  }
 0x891   : > { %v13989_v2 = vadd.f32 %v6192_v63, %v6152_v35  ;;  %v6194_v4 = vpop.f32.mrb[26].mxu1  ;;  %6513 = vmatpush1.bf16.msra.mxu1 %v12317_v58  ;;  %v12345_v35 = vld [vmem:[%s13578_s24 + $0x5c4] ss:$40 sps:$4 sm:$0xff]   ;;  %v12379_v60 = vld [vmem:[%s13578_s24 + $0x7a0] ss:$40 sps:$4 sm:$0xff]  }
 0x892   : > { %v6195_v34 = vpop.f32.mrb[27].mxu1  ;;  %6514 = vmatprep.subr.bf16.mxu1 %v12325_v51  ;;  %v12387_v63 = vld [vmem:[%s13578_s24 + $0x7f4] ss:$40 sps:$4 sm:$0xff]   ;;  %v12385_v4 = vld [vmem:[%s13578_s24 + $0x7f0] ss:$40 sps:$4 sm:$0xff]  }
 0x893   : > { %6536 = vmatpush1.bf16.msra.mxu0 %v12320_v28  ;;  %v12388_v34 = vld [vmem:[%s13578_s24 + $0x340] ss:$40 sps:$4 sm:$0xff]  }
 0x894   : > { %10761 = vmatprep.subr.msk.bf16.mxu0 %vm399_vm1, %v10752_v0  ;;  %v12382_v0 = vld [vmem:[%s13578_s24 + $0x2f0] ss:$40 sps:$4 sm:$0xff]  }
 0x895   : > { %6515 = vmatpush1.bf16.msra.mxu1 %v12323_v11  ;;  %v12393_v11 = vld [vmem:[%s13578_s24 + $0x844] ss:$40 sps:$4 sm:$0xff]  }
 0x896   : > { %6566 = vmatprep.subr.bf16.mxu1 %v12330_v14  ;;  %v12396_v14 = vld [vmem:[%s13578_s24 + $0x394] ss:$40 sps:$4 sm:$0xff]  }
 0x897   : > { %6538 = vmatpush1.bf16.msra.mxu0 %v6063_v15  ;;  %v12391_v15 = vld [vmem:[%s13578_s24 + $0x840] ss:$40 sps:$4 sm:$0xff]  }
 0x898   : > { %6517 = vmatmul.mubr.bf16.vlgmr.msra.gmra.mrb[40].mxu1 %v13708_v37  ;;  %6607 = vmatprep.subr.bf16.mxu0 %v12333_v16  ;;  %v12399_v16 = vld [vmem:[%s13578_s24 + $0x894] ss:$40 sps:$4 sm:$0xff]  }
 0x899   : > { %6567 = vmatpush1.bf16.msra.mxu1 %v12328_v6  ;;  %6598 = vmatprep.mubr.bf16.mxu1 %v13697_v22  ;;  %v12348_v22 = vld [vmem:[%s13578_s24 + $0x114] ss:$40 sps:$4 sm:$0xff]   ;;  %v12394_v6 = vld [vmem:[%s13578_s24 + $0x390] ss:$40 sps:$4 sm:$0xff]  }
 0x89a   : > { %10762 = vmatmul.mubr.msk.bf16.vlgmr.msra.gmra.mrb[44].mxu0 %vm936_vm4, %v13749_v61  ;;  %6568 = vmatprep.subr.bf16.mxu1 %v12336_v17  ;;  %v12402_v17 = vld [vmem:[%s13578_s24 + $0x3e4] ss:$40 sps:$4 sm:$0xff]  }
 0x89b   : > { %6608 = vmatpush1.bf16.msra.mxu0 %v12331_v18  ;;  %6639 = vmatprep.mubr.bf16.mxu0 %v13704_v27  ;;  %v12354_v27 = vld [vmem:[%s13578_s24 + $0x164] ss:$40 sps:$4 sm:$0xff]   ;;  %v12397_v18 = vld [vmem:[%s13578_s24 + $0x890] ss:$40 sps:$4 sm:$0xff]  }
 0x89c   : > { %6609 = vmatprep.subr.bf16.mxu0 %v12339_v19  ;;  %v12405_v19 = vld [vmem:[%s13578_s24 + $0x8e4] ss:$40 sps:$4 sm:$0xff]  }
 0x89d   : > { %6569 = vmatpush1.bf16.msra.mxu1 %v12334_v20  ;;  %v12400_v20 = vld [vmem:[%s13578_s24 + $0x3e0] ss:$40 sps:$4 sm:$0xff]  }
 0x89e   : > { %6570 = vmatprep.subr.bf16.mxu1 %v12342_v21  ;;  %v12408_v21 = vld [vmem:[%s13578_s24 + $0x434] ss:$40 sps:$4 sm:$0xff]  }
 0x89f   : > { %6610 = vmatpush1.bf16.msra.mxu0 %v12337_v8  ;;  %v12403_v8 = vld [vmem:[%s13578_s24 + $0x8e0] ss:$40 sps:$4 sm:$0xff]  }
 0x8a0   : > { %6611 = vmatprep.subr.bf16.mxu0 %v12345_v35  ;;  %v12411_v35 = vld [vmem:[%s13578_s24 + $0x934] ss:$40 sps:$4 sm:$0xff]  }
 0x8a1   : > { %6571 = vmatpush1.bf16.msra.mxu1 %v12340_v24  ;;  %v12406_v24 = vld [vmem:[%s13578_s24 + $0x430] ss:$40 sps:$4 sm:$0xff]  }
 0x8a2   : > { %6572 = vmatprep.subr.bf16.mxu1 %v12348_v22  ;;  %v12414_v22 = vld [vmem:[%s13578_s24 + $0x484] ss:$40 sps:$4 sm:$0xff]  }
 0x8a3   : > { %6612 = vmatpush1.bf16.msra.mxu0 %v12343_v48  ;;  %v12409_v48 = vld [vmem:[%s13578_s24 + $0x930] ss:$40 sps:$4 sm:$0xff]  }
 0x8a4   : > { %6613 = vmatprep.subr.bf16.mxu0 %v12351_v29  ;;  %v12417_v29 = vld [vmem:[%s13578_s24 + $0x984] ss:$40 sps:$4 sm:$0xff]  }
 0x8a5   : > { %6573 = vmatpush1.bf16.msra.mxu1 %v12346_v38  ;;  %v12412_v38 = vld [vmem:[%s13578_s24 + $0x480] ss:$40 sps:$4 sm:$0xff]  }
 0x8a6   : > { %6574 = vmatprep.subr.bf16.mxu1 %v12354_v27  ;;  %v12420_v27 = vld [vmem:[%s13578_s24 + $0x4d4] ss:$40 sps:$4 sm:$0xff]  }
 0x8a7   : > { %6614 = vmatpush1.bf16.msra.mxu0 %v12349_v39 }
 0x8a8   : > { %6615 = vmatprep.subr.bf16.mxu0 %v12357_v1  ;;  %v12415_v1 = vld [vmem:[%s13578_s24 + $0x980] ss:$40 sps:$4 sm:$0xff]  }
 0x8a9   : > { %6575 = vmatpush1.bf16.msra.mxu1 %v12352_v40 }
 0x8aa   : > { %6576 = vmatprep.subr.bf16.mxu1 %v12360_v41 }
 0x8ab   : > { %6616 = vmatpush1.bf16.msra.mxu0 %v12355_v42  ;;  %v12423_v42 = vld [vmem:[%s13578_s24 + $0x9d4] ss:$40 sps:$4 sm:$0xff]  }
 0x8ac   : > { %6617 = vmatprep.subr.bf16.mxu0 %v12363_v43 }
 0x8ad   : > { %6577 = vmatpush1.bf16.msra.mxu1 %v12358_v44 }
 0x8ae   : > { %6578 = vmatprep.subr.bf16.mxu1 %v12366_v45 }
 0x8af   : > { %6618 = vmatpush1.bf16.msra.mxu0 %v12361_v46  ;;  %v12418_v46 = vld [vmem:[%s13578_s24 + $0x4d0] ss:$40 sps:$4 sm:$0xff]  }
 0x8b0   : > { %6619 = vmatprep.subr.bf16.mxu0 %v12369_v47 }
 0x8b1   : > { %6579 = vmatpush1.bf16.msra.mxu1 %v12364_v10 }
 0x8b2   : > { %6580 = vmatprep.subr.bf16.mxu1 %v12372_v31 }
 0x8b3   : > { %6620 = vmatpush1.bf16.msra.mxu0 %v12367_v50  ;;  %v12426_v50 = vld [vmem:[%s13578_s24 + $0xa24] ss:$40 sps:$4 sm:$0xff]  }
 0x8b4   : > { %6621 = vmatprep.subr.bf16.mxu0 %v12375_v7 }
 0x8b5   : > { %v6231_v56 = vpop.f32.mrb[28].mxu0  ;;  %6581 = vmatpush1.bf16.msra.mxu1 %v12370_v52 }
 0x8b6   : > { %v6233_v58 = vpop.f32.mrb[29].mxu0  ;;  %6582 = vmatprep.subr.bf16.mxu1 %v12378_v53  ;;  %v12421_v53 = vld [vmem:[%s13578_s24 + $0x9d0] ss:$40 sps:$4 sm:$0xff]  }
 0x8b7   : > { %v6235_v51 = vpop.f32.mrb[30].mxu0  ;;  %6622 = vmatpush1.bf16.msra.mxu0 %v12373_v54 }
 0x8b8   : > { %v6236_v28 = vpop.f32.mrb[31].mxu0  ;;  %6623 = vmatprep.subr.bf16.mxu0 %v12381_v49  ;;  %v12424_v49 = vld [vmem:[%s13578_s24 + $0xa20] ss:$40 sps:$4 sm:$0xff]   ;;  %v12435_v51 = vld [vmem:[%s13578_s24 + $0xb14] ss:$40 sps:$4 sm:$0xff]  }
 0x8b9   : > { %6583 = vmatpush1.bf16.msra.mxu1 %v12376_v57  ;;  %v12427_v57 = vld [vmem:[%s13578_s24 + $0xa70] ss:$40 sps:$4 sm:$0xff]   ;;  %v12436_v28 = vld [vmem:[%s13578_s24 + $0xb60] ss:$40 sps:$4 sm:$0xff]  }
 0x8ba   : > { %6584 = vmatprep.subr.bf16.mxu1 %v12384_v59  ;;  %v12430_v59 = vld [vmem:[%s13578_s24 + $0xac0] ss:$40 sps:$4 sm:$0xff]  }
 0x8bb   : > { %6624 = vmatpush1.bf16.msra.mxu0 %v12379_v60  ;;  %v12433_v60 = vld [vmem:[%s13578_s24 + $0xb10] ss:$40 sps:$4 sm:$0xff]  }
 0x8bc   : > { %6625 = vmatprep.subr.bf16.mxu0 %v12387_v63  ;;  %v12441_v63 = vld [vmem:[%s13578_s24 + $0xbb4] ss:$40 sps:$4 sm:$0xff]  }
 0x8bd   : > { %6585 = vmatpush1.bf16.msra.mxu1 %v12382_v0  ;;  %v4115_v0 = vld [vmem:[%s13578_s24 + $0xc00] sm:$0x33] }
 0x8be   : > { %6586 = vmatprep.subr.bf16.mxu1 %v12390_v5  ;;  %v12439_v5 = vld [vmem:[%s13578_s24 + $0xbb0] ss:$40 sps:$4 sm:$0xff]  }
 0x8bf   : > { %6626 = vmatpush1.bf16.msra.mxu0 %v12385_v4  ;;  %v10753_v4 = vcombine.low %v4115_v0, %v4115_v0 }
 0x8c0   : > { %6627 = vmatprep.subr.bf16.mxu0 %v12393_v11 }
 0x8c1   : > { %6587 = vmatpush1.bf16.msra.mxu1 %v12388_v34  ;;  %v6069_v11 = vsel %vm399_vm1, %v10753_v4, 0  ;;  %v12446_v34 = vld [vmem:[%s14090_s28 + $0x4] ss:$20 sps:$4 sm:$0xff]  }
 0x8c2   : > { %6588 = vmatprep.subr.bf16.mxu1 %v12396_v14  ;;  %v12444_v14 = vld [vmem:[%s14090_s28] ss:$20 sps:$4 sm:$0xff]  }
 0x8c3   : > { %6628 = vmatpush1.bf16.msra.mxu0 %v12391_v15  ;;  %v12447_v15 = vld [vmem:[%s14090_s28 + $0x8] ss:$20 sps:$4 sm:$0xff]  }
 0x8c4   : > { %6629 = vmatprep.subr.bf16.mxu0 %v12399_v16  ;;  %v12449_v16 = vld [vmem:[%s14090_s28 + $0xc] ss:$20 sps:$4 sm:$0xff]  }
 0x8c5   : > { %6589 = vmatpush1.bf16.msra.mxu1 %v12394_v6  ;;  %v12452_v6 = vld [vmem:[%s14090_s28 + $0x2c] ss:$20 sps:$4 sm:$0xff]  }
 0x8c6   : > { %6590 = vmatprep.subr.bf16.mxu1 %v12402_v17  ;;  %v12455_v17 = vld [vmem:[%s14090_s28 + $0x34] ss:$20 sps:$4 sm:$0xff]  }
 0x8c7   : > { %6630 = vmatpush1.bf16.msra.mxu0 %v12397_v18  ;;  %v12450_v18 = vld [vmem:[%s14090_s28 + $0x28] ss:$20 sps:$4 sm:$0xff]  }
 0x8c8   : > { %6631 = vmatprep.subr.bf16.mxu0 %v12405_v19  ;;  %v12453_v19 = vld [vmem:[%s14090_s28 + $0x30] ss:$20 sps:$4 sm:$0xff]  }
 0x8c9   : > { %6591 = vmatpush1.bf16.msra.mxu1 %v12400_v20  ;;  %v12458_v20 = vld [vmem:[%s14090_s28 + $0x54] ss:$20 sps:$4 sm:$0xff]  }
 0x8ca   : > { %6592 = vmatprep.subr.bf16.mxu1 %v12408_v21  ;;  %v12461_v21 = vld [vmem:[%s14090_s28 + $0x5c] ss:$20 sps:$4 sm:$0xff]  }
 0x8cb   : > { %6632 = vmatpush1.bf16.msra.mxu0 %v12403_v8  ;;  %v12456_v8 = vld [vmem:[%s14090_s28 + $0x50] ss:$20 sps:$4 sm:$0xff]  }
 0x8cc   : > { %6633 = vmatprep.subr.bf16.mxu0 %v12411_v35  ;;  %v12459_v35 = vld [vmem:[%s14090_s28 + $0x58] ss:$20 sps:$4 sm:$0xff]  }
 0x8cd   : > { %6593 = vmatpush1.bf16.msra.mxu1 %v12406_v24  ;;  %v12467_v24 = vld [vmem:[%s14090_s28 + $0x84] ss:$20 sps:$4 sm:$0xff]  }
 0x8ce   : > { %6594 = vmatprep.subr.bf16.mxu1 %v12414_v22  ;;  %v12462_v22 = vld [vmem:[%s14090_s28 + $0x78] ss:$20 sps:$4 sm:$0xff]  }
 0x8cf   : > { %v6272_v39 = vpop.f32.mrb[28].mxu1  ;;  %6634 = vmatpush1.bf16.msra.mxu0 %v12409_v48  ;;  %v12465_v48 = vld [vmem:[%s14090_s28 + $0x80] ss:$20 sps:$4 sm:$0xff]  }
 0x8d0   : > { %v6273_v40 = vadd.f32 %v6272_v39, %v6231_v56  ;;  %v6274_v41 = vpop.f32.mrb[29].mxu1  ;;  %6635 = vmatprep.subr.bf16.mxu0 %v12417_v29  ;;  %v12429_v56 = vld [vmem:[%s13578_s24 + $0xa74] ss:$40 sps:$4 sm:$0xff]   ;;  %v12470_v29 = vld [vmem:[%s14090_s28 + $0xa4] ss:$20 sps:$4 sm:$0xff]  }
 0x8d1   : > { %v6275_v43 = vadd.f32 %v6274_v41, %v6233_v58  ;;  %v6276_v44 = vpop.f32.mrb[30].mxu1  ;;  %v6313_v45 = vpop.f32.mrb[32].mxu0  ;;  %6595 = vmatpush1.bf16.msra.mxu1 %v12412_v38  ;;  %v12432_v58 = vld [vmem:[%s13578_s24 + $0xac4] ss:$40 sps:$4 sm:$0xff]   ;;  %v12471_v39 = vld [vmem:[%s14090_s28 + $0xa8] ss:$20 sps:$4 sm:$0xff]  }
 0x8d2   : > { %v14062_v47 = vadd.f32 %v6313_v45, %v6273_v40  ;;  %v6277_v10 = vpop.f32.mrb[31].mxu1  ;;  %v6315_v31 = vpop.f32.mrb[33].mxu0  ;;  %6596 = vmatprep.subr.bf16.mxu1 %v12420_v27  ;;  %v12473_v38 = vld [vmem:[%s14090_s28 + $0xac] ss:$20 sps:$4 sm:$0xff]   ;;  %v12479_v41 = vld [vmem:[%s14090_s28 + $0xd4] ss:$20 sps:$4 sm:$0xff]  }
 0x8d3   : > { %v14065_v7 = vadd.f32 %v6315_v31, %v6275_v43  ;;  %v6317_v52 = vpop.f32.mrb[34].mxu0  ;;  %6636 = vmatpush1.bf16.msra.mxu0 %v12415_v1  ;;  %v12468_v27 = vld [vmem:[%s14090_s28 + $0xa0] ss:$20 sps:$4 sm:$0xff]   ;;  %v12474_v1 = vld [vmem:[%s14090_s28 + $0xc8] ss:$20 sps:$4 sm:$0xff]  }
 0x8d4   : > { %v6318_v54 = vpop.f32.mrb[35].mxu0  ;;  %6637 = vmatprep.subr.bf16.mxu0 %v12423_v42  ;;  %v12476_v40 = vld [vmem:[%s14090_s28 + $0xcc] ss:$20 sps:$4 sm:$0xff]   ;;  %v12482_v42 = vld [vmem:[%s14090_s28 + $0xf4] ss:$20 sps:$4 sm:$0xff]  }
 0x8d5   : > { %6597 = vmatpush1.bf16.msra.mxu1 %v12418_v46  ;;  %v12477_v43 = vld [vmem:[%s14090_s28 + $0xd0] ss:$20 sps:$4 sm:$0xff]   ;;  %v12483_v10 = vld [vmem:[%s14090_s28 + $0xf8] ss:$20 sps:$4 sm:$0xff]   ;;  %v12492_v54 = vld [vmem:[%s14090_s28 + $0x140] ss:$20 sps:$4 sm:$0xff]  }
 0x8d6   : > { %6648 = vmatprep.subr.bf16.mxu1 %v12426_v50  ;;  %v12480_v44 = vld [vmem:[%s14090_s28 + $0xf0] ss:$20 sps:$4 sm:$0xff]   ;;  %v12486_v31 = vld [vmem:[%s14090_s28 + $0x118] ss:$20 sps:$4 sm:$0xff]  }
 0x8d7   : > { %6638 = vmatpush1.bf16.msra.mxu0 %v12421_v53  ;;  %v12485_v45 = vld [vmem:[%s14090_s28 + $0xfc] ss:$20 sps:$4 sm:$0xff]   ;;  %v12491_v50 = vld [vmem:[%s14090_s28 + $0x124] ss:$20 sps:$4 sm:$0xff]   ;;  %v12489_v53 = vld [vmem:[%s14090_s28 + $0x120] ss:$20 sps:$4 sm:$0xff]  }
 0x8d8   : > { %6599 = vmatmul.mubr.bf16.vlgmr.msra.gmra.mrb[44].mxu1 %v13700_v25  ;;  %v12438_v25 = vld [vmem:[%s13578_s24 + $0xb64] ss:$40 sps:$4 sm:$0xff]   ;;  %8156 = vmatprep.subr.bf16.mxu0 %v12446_v34  ;;  %v12488_v46 = vld [vmem:[%s14090_s28 + $0x11c] ss:$20 sps:$4 sm:$0xff]  }
 0x8d9   : > { %6649 = vmatpush1.bf16.msra.mxu1 %v12424_v49  ;;  %6680 = vmatprep.mubr.bf16.mxu1 %v12926_v3  ;;  %v12494_v52 = vld [vmem:[%s14090_s28 + $0x144] ss:$20 sps:$4 sm:$0xff]   ;;  %v12497_v49 = vld [vmem:[%s14090_s28 + $0x14c] ss:$20 sps:$4 sm:$0xff]  }
 0x8da   : > { %6640 = vmatmul.mubr.bf16.vlgmr.msra.gmra.mrb[48].mxu0 %v13708_v37  ;;  %6650 = vmatprep.subr.bf16.mxu1 %v12429_v56  ;;  %v10754_v37 = vcombine.high %v4115_v0, %v4115_v0 }
 0x8db   : > { %8157 = vmatpush1.bf16.msra.mxu0 %v12444_v14  ;;  %v12501_v14 = vld [vmem:[%s14090_s28 + $0x170] ss:$20 sps:$4 sm:$0xff]  }
 0x8dc   : > { %8158 = vmatprep.subr.bf16.mxu0 %v12452_v6  ;;  %v12507_v6 = vld [vmem:[%s14090_s28 + $0x198] ss:$20 sps:$4 sm:$0xff]  }
 0x8dd   : > { %6651 = vmatpush1.bf16.msra.mxu1 %v12427_v57  ;;  %v12500_v57 = vld [vmem:[%s14090_s28 + $0x16c] ss:$20 sps:$4 sm:$0xff]  }
 0x8de   : > { %6652 = vmatprep.subr.bf16.mxu1 %v12432_v58 }
 0x8df   : > { %8159 = vmatpush1.bf16.msra.mxu0 %v12450_v18  ;;  %v12510_v18 = vld [vmem:[%s14090_s28 + $0x1b8] ss:$20 sps:$4 sm:$0xff]  }
 0x8e0   : > { %8160 = vmatprep.subr.bf16.mxu0 %v12458_v20  ;;  %v12518_v20 = vld [vmem:[%s14090_s28 + $0x1e4] ss:$20 sps:$4 sm:$0xff]  }
 0x8e1   : > { %6653 = vmatpush1.bf16.msra.mxu1 %v12430_v59 }
 0x8e2   : > { %6654 = vmatprep.subr.bf16.mxu1 %v12435_v51 }
 0x8e3   : > { %8161 = vmatpush1.bf16.msra.mxu0 %v12456_v8  ;;  %v12516_v8 = vld [vmem:[%s14090_s28 + $0x1e0] ss:$20 sps:$4 sm:$0xff]  }
 0x8e5   : > { %6655 = vmatpush1.bf16.msra.mxu1 %v12433_v60  ;;  %v12495_v60 = vld [vmem:[%s14090_s28 + $0x148] ss:$20 sps:$4 sm:$0xff]  }
 0x8e6   : > { %6656 = vmatprep.subr.bf16.mxu1 %v12438_v25  ;;  %v12498_v25 = vld [vmem:[%s14090_s28 + $0x168] ss:$20 sps:$4 sm:$0xff]  }
 0x8e9   : > { %6657 = vmatpush1.bf16.msra.mxu1 %v12436_v28 }
 0x8ea   : > { %6658 = vmatprep.subr.bf16.mxu1 %v12441_v63 }
 0x8ed   : > { %6659 = vmatpush1.bf16.msra.mxu1 %v12439_v5  ;;  %v12503_v5 = vld [vmem:[%s14090_s28 + $0x174] ss:$20 sps:$4 sm:$0xff]  }
 0x8ee   : > { %10763 = vmatprep.subr.msk.bf16.mxu1 %vm399_vm1, %v10754_v37 }
 0x8f1   : > { %6661 = vmatpush1.bf16.msra.mxu1 %v6069_v11  ;;  %v12506_v11 = vld [vmem:[%s14090_s28 + $0x194] ss:$20 sps:$4 sm:$0xff]  }
 0x8f2   : > { %8279 = vmatprep.subr.bf16.mxu1 %v12449_v16  ;;  %v12509_v16 = vld [vmem:[%s14090_s28 + $0x19c] ss:$20 sps:$4 sm:$0xff]  }
 0x8f4   : > { %10764 = vmatmul.mubr.msk.bf16.vlgmr.msra.gmra.mrb[48].mxu1 %vm936_vm4, %v13749_v61  ;;  %v12464_v61 = vld [vmem:[%s14090_s28 + $0x7c] ss:$20 sps:$4 sm:$0xff]  }
 0x8f5   : > { %8280 = vmatpush1.bf16.msra.mxu1 %v12447_v15  ;;  %8162 = vmatprep.subr.bf16.mxu0 %v12464_v61  ;;  %v12504_v15 = vld [vmem:[%s14090_s28 + $0x190] ss:$20 sps:$4 sm:$0xff]   ;;  %v12524_v61 = vld [vmem:[%s14090_s28 + $0x20c] ss:$20 sps:$4 sm:$0xff]  }
 0x8f6   : > { %8281 = vmatprep.subr.bf16.mxu1 %v12455_v17  ;;  %8163 = vmatpush1.bf16.msra.mxu0 %v12462_v22  ;;  %v12512_v17 = vld [vmem:[%s14090_s28 + $0x1bc] ss:$20 sps:$4 sm:$0xff]  }
 0x8f7   : > { %8164 = vmatprep.subr.bf16.mxu0 %v12470_v29  ;;  %v12522_v22 = vld [vmem:[%s14090_s28 + $0x208] ss:$20 sps:$4 sm:$0xff]  }
 0x8f8   : > { %v12530_v29 = vld [vmem:[%s14090_s28 + $0x234] ss:$20 sps:$4 sm:$0xff]  }
 0x8f9   : > { %8282 = vmatpush1.bf16.msra.mxu1 %v12453_v19  ;;  %v12515_v19 = vld [vmem:[%s14090_s28 + $0x1c4] ss:$20 sps:$4 sm:$0xff]  }
 0x8fa   : > { %8283 = vmatprep.subr.bf16.mxu1 %v12461_v21  ;;  %8165 = vmatpush1.bf16.msra.mxu0 %v12468_v27  ;;  %v12513_v21 = vld [vmem:[%s14090_s28 + $0x1c0] ss:$20 sps:$4 sm:$0xff]   ;;  %v10768_v27 = vld [vmem:[%s13004_s18 + $0x2a] ss:$8 sm:$0x10] }
 0x8fb   : > { %8166 = vmatprep.subr.bf16.mxu0 %v12476_v40  ;;  %v12533_v40 = vld [vmem:[%s14090_s28 + $0x23c] ss:$20 sps:$4 sm:$0xff]  }
 0x8fd   : > { %8284 = vmatpush1.bf16.msra.mxu1 %v12459_v35  ;;  %v12521_v35 = vld [vmem:[%s14090_s28 + $0x1ec] ss:$20 sps:$4 sm:$0xff]  }
 0x8fe   : > { %8285 = vmatprep.subr.bf16.mxu1 %v12467_v24  ;;  %8167 = vmatpush1.bf16.msra.mxu0 %v12474_v1  ;;  %v12519_v24 = vld [vmem:[%s14090_s28 + $0x1e8] ss:$20 sps:$4 sm:$0xff]   ;;  %v12528_v1 = vld [vmem:[%s14090_s28 + $0x230] ss:$20 sps:$4 sm:$0xff]  }
 0x8ff   : > { %8168 = vmatprep.subr.bf16.mxu0 %v12482_v42  ;;  %v12531_v42 = vld [vmem:[%s14090_s28 + $0x238] ss:$20 sps:$4 sm:$0xff]  }
 0x901   : > { %8286 = vmatpush1.bf16.msra.mxu1 %v12465_v48  ;;  %v12527_v48 = vld [vmem:[%s14090_s28 + $0x214] ss:$20 sps:$4 sm:$0xff]  }
 0x902   : > { %8287 = vmatprep.subr.bf16.mxu1 %v12473_v38  ;;  %8169 = vmatpush1.bf16.msra.mxu0 %v12480_v44  ;;  %v10767_v38 = vld [vmem:[%s13004_s18 + $0x2a] ss:$8 sm:$0xf] }
 0x903   : > { %8170 = vmatprep.subr.bf16.mxu0 %v12488_v46  ;;  %v12539_v46 = vld [vmem:[%s14090_s28 + $0x264] ss:$20 sps:$4 sm:$0xff]  }
 0x905   : > { %8288 = vmatpush1.bf16.msra.mxu1 %v12471_v39  ;;  %v12525_v39 = vld [vmem:[%s14090_s28 + $0x210] ss:$20 sps:$4 sm:$0xff]  }
 0x906   : > { %8289 = vmatprep.subr.bf16.mxu1 %v12479_v41  ;;  %8171 = vmatpush1.bf16.msra.mxu0 %v12486_v31  ;;  %v14155_v41 = vor.u32 %v10768_v27, %v10767_v38 }
 0x907   : > { %8172 = vmatprep.subr.bf16.mxu0 %v12494_v52  ;;  %v12537_v52 = vld [vmem:[%s14090_s28 + $0x260] ss:$20 sps:$4 sm:$0xff]  }
 0x908   : > { %v6732_v44 = vrot.slane %v14155_v41, %v13100_v26 }
 0x909   : > { %8290 = vmatpush1.bf16.msra.mxu1 %v12477_v43 }
 0x90a   : > { %8291 = vmatprep.subr.bf16.mxu1 %v12485_v45  ;;  %8173 = vmatpush1.bf16.msra.mxu0 %v12492_v54  ;;  %v12536_v45 = vld [vmem:[%s14090_s28 + $0x25c] ss:$20 sps:$4 sm:$0xff]  }
 0x90b   : > { %8174 = vmatprep.subr.bf16.mxu0 %v12500_v57 }
 0x90d   : > { %8292 = vmatpush1.bf16.msra.mxu1 %v12483_v10 }
 0x90e   : > { %8293 = vmatprep.subr.bf16.mxu1 %v12491_v50  ;;  %8175 = vmatpush1.bf16.msra.mxu0 %v12498_v25  ;;  %v12534_v50 = vld [vmem:[%s14090_s28 + $0x258] ss:$20 sps:$4 sm:$0xff]  }
 0x90f   : > { %v6354_v56 = vpop.f32.mrb[32].mxu1  ;;  %8176 = vmatprep.subr.bf16.mxu0 %v12506_v11 }
 0x910   : > { %v6356_v58 = vpop.f32.mrb[33].mxu1 }
 0x911   : > { %v6358_v59 = vpop.f32.mrb[34].mxu1  ;;  %v6395_v51 = vpop.f32.mrb[36].mxu0  ;;  %8294 = vmatpush1.bf16.msra.mxu1 %v12489_v53 }
 0x912   : > { %v6396_v28 = vadd.f32 %v6395_v51, %v6354_v56  ;;  %v6359_v63 = vpop.f32.mrb[35].mxu1  ;;  %v6397_v0 = vpop.f32.mrb[37].mxu0  ;;  %8295 = vmatprep.subr.bf16.mxu1 %v12497_v49  ;;  %8177 = vmatpush1.bf16.msra.mxu0 %v12504_v15  ;;  %v10766_v59 = vld [vmem:[%s13004_s18 + $0x29] ss:$8 sm:$0x10] }
 0x913   : > { %v6398_v37 = vadd.f32 %v6397_v0, %v6356_v58  ;;  %v6399_v4 = vpop.f32.mrb[38].mxu0  ;;  %8178 = vmatprep.subr.bf16.mxu0 %v12512_v17  ;;  %v10765_v58 = vld [vmem:[%s13004_s18 + $0x29] ss:$8 sm:$0xf] }
 0x914   : > { %v6400_v34 = vpop.f32.mrb[39].mxu0  ;;  %v14168_v25 = vor.u32 %v10766_v59, %v10765_v58  ;;  %v12542_v63 = vld [vmem:[%s14090_s28 + $0x284] ss:$20 sps:$4 sm:$0xff]   ;;  %v12545_v0 = vld [vmem:[%s14090_s28 + $0x28c] ss:$20 sps:$4 sm:$0xff]  }
 0x915   : > { %8296 = vmatpush1.bf16.msra.mxu1 %v12495_v60 }
 0x916   : > { %8297 = vmatprep.subr.bf16.mxu1 %v12503_v5  ;;  %8179 = vmatpush1.bf16.msra.mxu0 %v12510_v18  ;;  %v6736_v18 = vrot.slane %v14155_v41, %v13105_v32  ;;  %v6705_v58 = vrot.slane %v14168_v25, %v13108_v33 }
 0x917   : > { %8180 = vmatprep.subr.bf16.mxu0 %v12518_v20 }
 0x919   : > { %8298 = vmatpush1.bf16.msra.mxu1 %v12501_v14 }
 0x91a   : > { %8299 = vmatprep.subr.bf16.mxu1 %v12509_v16  ;;  %8181 = vmatpush1.bf16.msra.mxu0 %v12516_v8 }
 0x91b   : > { %8182 = vmatprep.subr.bf16.mxu0 %v12524_v61 }
 0x91d   : > { %8300 = vmatpush1.bf16.msra.mxu1 %v12507_v6 }
 0x91e   : > { %8301 = vmatprep.subr.bf16.mxu1 %v12515_v19  ;;  %8183 = vmatpush1.bf16.msra.mxu0 %v12522_v22 }
 0x91f   : > { %8184 = vmatprep.subr.bf16.mxu0 %v12530_v29 }
 0x921   : > { %8302 = vmatpush1.bf16.msra.mxu1 %v12513_v21 }
 0x922   : > { %8303 = vmatprep.subr.bf16.mxu1 %v12521_v35  ;;  %8185 = vmatpush1.bf16.msra.mxu0 %v12528_v1  ;;  %v10774_v1 = vld [vmem:[%s13004_s18 + $0x2b] ss:$8 sm:$0xf] }
 0x923   : > { %8186 = vmatprep.subr.bf16.mxu0 %v12536_v45 }
 0x925   : > { %8304 = vmatpush1.bf16.msra.mxu1 %v12519_v24 }
 0x926   : > { %8305 = vmatprep.subr.bf16.mxu1 %v12527_v48  ;;  %8187 = vmatpush1.bf16.msra.mxu0 %v12534_v50 }
 0x927   : > { %8197 = vmatprep.subr.bf16.mxu0 %v12542_v63  ;;  %v6721_v63 = vadd.f32 %v6705_v58, %v14062_v47  ;;  %v12566_v58 = vld [vmem:[%s14090_s28 + $0x324] ss:$20 sps:$4 sm:$0xff]  }
 0x929   : > { %8306 = vmatpush1.bf16.msra.mxu1 %v12525_v39 }
 0x92a   : > { %8307 = vmatprep.subr.bf16.mxu1 %v12533_v40  ;;  %v10775_v40 = vld [vmem:[%s13004_s18 + $0x2b] ss:$8 sm:$0x10] }
 0x92b   : > { %v6436_v43 = vpop.f32.mrb[36].mxu1 }
 0x92c   : > { %v14162_v10 = vadd.f32 %v6436_v43, %v6396_v28  ;;  %v6438_v31 = vpop.f32.mrb[37].mxu1  ;;  %v6697_v28 = vrot.slane %v14168_v25, %v13100_v26  ;;  %v10776_v43 = vld [vmem:[%s13004_s18 + $0x2c] ss:$8 sm:$0xf] }
 0x92d   : > { %v6439_v53 = vadd.f32 %v6438_v31, %v6398_v37  ;;  %v6440_v54 = vpop.f32.mrb[38].mxu1  ;;  %8308 = vmatpush1.bf16.msra.mxu1 %v12531_v42  ;;  %v14181_v42 = vor.u32 %v10775_v40, %v10774_v1  ;;  %v12548_v1 = vld [vmem:[%s14090_s28 + $0x2ac] ss:$20 sps:$4 sm:$0xff]   ;;  %v12551_v40 = vld [vmem:[%s14090_s28 + $0x2b4] ss:$20 sps:$4 sm:$0xff]  }
 0x92e   : > { %v6441_v49 = vpop.f32.mrb[39].mxu1  ;;  %8309 = vmatprep.subr.bf16.mxu1 %v12539_v46  ;;  %v6719_v5 = vadd.f32 %v6697_v28, %v13987_v62  ;;  %v6740_v62 = vrot.slane %v14155_v41, %v13108_v33 }
 0x92f   : > { %v6754_v56 = vadd.f32 %v6732_v44, %v6439_v53  ;;  %v10777_v44 = vld [vmem:[%s13004_s18 + $0x2c] ss:$8 sm:$0x10]  ;;  %v6802_v46 = vrot.slane %v14181_v42, %v13100_v26 }
 0x930   : > { %v14185_v45 = vor.u32 %v10777_v44, %v10776_v43  ;;  %v12546_v44 = vld [vmem:[%s14090_s28 + $0x2a8] ss:$20 sps:$4 sm:$0xff]  }
 0x931   : > { %v10769_v57 = vmul.f32 -1.442695, %v6754_v56  ;;  %8310 = vmatpush1.bf16.msra.mxu1 %v12537_v52 }
 0x932   : > { %8320 = vmatprep.subr.bf16.mxu1 %v12545_v0  ;;  %v6837_v49 = vrot.slane %v14185_v45, %v13100_v26 }
 0x933   : > { %12820 = vpow2.f32 %v10769_v57  ;;  %v6701_v57 = vrot.slane %v14168_v25, %v13105_v32 }
 0x93d   : > { %v12821_v51 = vpop.eup %12820 }
 0x93e   : > { %v6774_v60 = vadd.f32 1.0, %v12821_v51  ;;  %v6720_v51 = vadd.f32 %v6701_v57, %v13989_v2  ;;  %v12561_v57 = vld [vmem:[%s14090_s28 + $0x300] ss:$20 sps:$4 sm:$0xff]  }
 0x940   : > { %12822 = vrcp.f32 %v6774_v60  ;;  %v6806_v60 = vrot.slane %v14181_v42, %v13105_v32 }
 0x94a   : > { %v12823_v37 = vpop.eup %12822 }
 0x94b   : > { %v6789_v4 = vmul.f32 %v12823_v37, %v6719_v5  ;;  %v6841_v37 = vrot.slane %v14185_v45, %v13105_v32 }
 0x94d   : > { %v6824_v54 = vmul.f32 %v6802_v46, %v6789_v4  ;;  %v12549_v46 = vld [vmem:[%s14090_s28 + $0x2b0] ss:$20 sps:$4 sm:$0xff]  }
 0x94f   : > { %v6859_v56 = vadd.f32 %v6837_v49, %v6824_v54  ;;  %v12560_v54 = vld [vmem:[%s14090_s28 + $0x2fc] ss:$20 sps:$4 sm:$0xff]   ;;  %v12563_v49 = vld [vmem:[%s14090_s28 + $0x304] ss:$20 sps:$4 sm:$0xff]  }
 0x951   : > { %v6477_v11 = vpop.f32.mrb[40].mxu0  ;;  %v10778_v59 = vmul.f32 -1.442695, %v6859_v56 }
 0x952   : > { %v6479_v34 = vpop.f32.mrb[41].mxu0 }
 0x953   : > { %v6481_v14 = vpop.f32.mrb[42].mxu0 }
 0x954   : > { %v6482_v15 = vpop.f32.mrb[43].mxu0 }
 0x96b   : > { %v6518_v16 = vpop.f32.mrb[40].mxu1 }
 0x96c   : > { %v6519_v6 = vadd.f32 %v6518_v16, %v6477_v11  ;;  %v6520_v17 = vpop.f32.mrb[41].mxu1 }
 0x96d   : > { %v6521_v19 = vadd.f32 %v6520_v17, %v6479_v34  ;;  %v6522_v20 = vpop.f32.mrb[42].mxu1  ;;  %v6559_v21 = vpop.f32.mrb[44].mxu0 }
 0x96e   : > { %v6560_v8 = vadd.f32 %v6559_v21, %v6519_v6  ;;  %v6523_v35 = vpop.f32.mrb[43].mxu1  ;;  %v6561_v61 = vpop.f32.mrb[45].mxu0 }
 0x96f   : > { %v6562_v24 = vadd.f32 %v6561_v61, %v6521_v19  ;;  %v6563_v22 = vpop.f32.mrb[46].mxu0 }
 0x970   : > { %v6755_v48 = vadd.f32 %v6736_v18, %v6560_v8  ;;  %v6564_v29 = vpop.f32.mrb[47].mxu0 }
 0x971   : > { %v6756_v38 = vadd.f32 %v6740_v62, %v6562_v24  ;;  %v12543_v29 = vld [vmem:[%s14090_s28 + $0x288] ss:$20 sps:$4 sm:$0xff]  }
 0x972   : > { %v10770_v27 = vmul.f32 -1.442695, %v6755_v48  ;;  %v12540_v48 = vld [vmem:[%s14090_s28 + $0x280] ss:$20 sps:$4 sm:$0xff]  }
 0x973   : > { %v10771_v39 = vmul.f32 -1.442695, %v6756_v38 }
 0x974   : > { %12824 = vpow2.f32 %v10770_v27 }
 0x975   : > { %12826 = vpow2.f32 %v10771_v39 }
 0x97e   : > { %v12825_v31 = vpop.eup %12824 }
 0x97f   : > { %v12827_v50 = vpop.eup %12826  ;;  %v6775_v52 = vadd.f32 1.0, %v12825_v31  ;;  %v12554_v31 = vld [vmem:[%s14090_s28 + $0x2d4] ss:$20 sps:$4 sm:$0xff]  }
 0x980   : > { %v6776_v53 = vadd.f32 1.0, %v12827_v50  ;;  %v12557_v50 = vld [vmem:[%s14090_s28 + $0x2dc] ss:$20 sps:$4 sm:$0xff]  }
 0x981   : > { %12828 = vrcp.f32 %v6775_v52  ;;  %v12552_v52 = vld [vmem:[%s14090_s28 + $0x2d0] ss:$20 sps:$4 sm:$0xff]  }
 0x982   : > { %12830 = vrcp.f32 %v6776_v53  ;;  %v12555_v53 = vld [vmem:[%s14090_s28 + $0x2d8] ss:$20 sps:$4 sm:$0xff]  }
 0x983   : > { %12832 = vpow2.f32 %v10778_v59  ;;  %v12569_v59 = vld [vmem:[%s14090_s28 + $0x32c] ss:$20 sps:$4 sm:$0xff]  }
 0x98b   : > { %v12829_v28 = vpop.eup %12828 }
 0x98c   : > { %v12831_v0 = vpop.eup %12830  ;;  %v6790_v5 = vmul.f32 %v12829_v28, %v6720_v51  ;;  %v12564_v51 = vld [vmem:[%s14090_s28 + $0x320] ss:$20 sps:$4 sm:$0xff]  }
 0x98d   : > { %v14201_v4 = vmul.f32 %v12831_v0, %v6721_v63  ;;  %v12833_v15 = vpop.eup %12832  ;;  %v12572_v28 = vld [vmem:[%s14090_s28 + $0x34c] ss:$20 sps:$4 sm:$0xff]   ;;  %v12575_v63 = vld [vmem:[%s14090_s28 + $0x354] ss:$20 sps:$4 sm:$0xff]  }
 0x98e   : > { %v6825_v11 = vmul.f32 %v6806_v60, %v6790_v5  ;;  %v6879_v2 = vadd.f32 1.0, %v12833_v15  ;;  %v12567_v60 = vld [vmem:[%s14090_s28 + $0x328] ss:$20 sps:$4 sm:$0xff]   ;;  %v12573_v5 = vld [vmem:[%s14090_s28 + $0x350] ss:$20 sps:$4 sm:$0xff]  }
 0x98f   : > { %v12570_v0 = vld [vmem:[%s14090_s28 + $0x348] ss:$20 sps:$4 sm:$0xff]   ;;  %v12579_v15 = vld [vmem:[%s14090_s28 + $0x378] ss:$20 sps:$4 sm:$0xff]  }
 0x990   : > { %v6860_v34 = vadd.f32 %v6841_v37, %v6825_v11  ;;  %v12578_v37 = vld [vmem:[%s14090_s28 + $0x374] ss:$20 sps:$4 sm:$0xff]   ;;  %v12581_v11 = vld [vmem:[%s14090_s28 + $0x37c] ss:$20 sps:$4 sm:$0xff]  }
 0x992   : > { %v10779_v14 = vmul.f32 -1.442695, %v6860_v34 }
 0x994   : > { %12834 = vpow2.f32 %v10779_v14  ;;  %v12576_v14 = vld [vmem:[%s14090_s28 + $0x370] ss:$20 sps:$4 sm:$0xff]  }
 0x995   : > { %12836 = vrcp.f32 %v6879_v2 }
 0x99e   : > { %v12835_v16 = vpop.eup %12834 }
 0x99f   : > { %v6880_v6 = vadd.f32 1.0, %v12835_v16  ;;  %v12837_v47 = vpop.eup %12836  ;;  %v6748_v16 = vrot.slane %v14155_v41, %v13132_v13 }
 0x9a0   : > { %v6894_v19 = vmul.f32 %v12837_v47, %v6859_v56  ;;  %v12558_v56 = vld [vmem:[%s14090_s28 + $0x2f8] ss:$20 sps:$4 sm:$0xff]  }
 0x9a1   : > { %12838 = vrcp.f32 %v6880_v6  ;;  %v12584_v6 = vld [vmem:[%s14090_s28 + $0x39c] ss:$20 sps:$4 sm:$0xff]   ;;  %v12587_v47 = vld [vmem:[%s14090_s28 + $0x3a4] ss:$20 sps:$4 sm:$0xff]  }
 0x9a2   : > { %v14211_v39 = vpack.c.bf16 %v6894_v19, %v6894_v19 }
 0x9ab   : > { %v12839_v17 = vpop.eup %12838  ;;  %v6600_v18 = vpop.f32.mrb[44].mxu1 }
 0x9ac   : > { %v6602_v20 = vpop.f32.mrb[45].mxu1  ;;  %v6895_v21 = vmul.f32 %v12839_v17, %v6860_v34  ;;  %v6744_v34 = vrot.slane %v14155_v41, %v13111_v36  ;;  %v12585_v41 = vld [vmem:[%s14090_s28 + $0x3a0] ss:$20 sps:$4 sm:$0xff]  }
 0x9ad   : > { %v6604_v62 = vpop.f32.mrb[46].mxu1  ;;  %v6641_v8 = vpop.f32.mrb[48].mxu0 }
 0x9ae   : > { %v14203_v35 = vadd.f32 %v6641_v8, %v6600_v18  ;;  %v6605_v61 = vpop.f32.mrb[47].mxu1  ;;  %v6643_v24 = vpop.f32.mrb[49].mxu0  ;;  %v14205_v22 = vpack.c.bf16 %v6895_v21, %v6895_v21  ;;  %v12582_v8 = vld [vmem:[%s14090_s28 + $0x398] ss:$20 sps:$4 sm:$0xff]  }
 0x9af   : > { %v14209_v38 = vadd.f32 %v6643_v24, %v6602_v20  ;;  %v6645_v27 = vpop.f32.mrb[50].mxu0  ;;  %v12590_v24 = vld [vmem:[%s14090_s28 + $0x3c4] ss:$20 sps:$4 sm:$0xff]  }
 0x9b0   : > { %v6646_v43 = vpop.f32.mrb[51].mxu0  ;;  %8188 = vmatprep.mubr.bf16.mxu0 %v14205_v22  ;;  %8311 = vmatprep.mubr.bf16.mxu1 %v14205_v22  ;;  %v12591_v27 = vld [vmem:[%s14090_s28 + $0x3c8] ss:$20 sps:$4 sm:$0xff]  }
 0x9b1   : > { %8189 = vmatmul.mubr.bf16.vlgmr.msra.gmra.mrb[52].mxu0 %v14211_v39  ;;  %8312 = vmatmul.mubr.bf16.vlgmr.msra.gmra.mrb[52].mxu1 %v14211_v39  ;;  %v12594_v43 = vld [vmem:[%s14090_s28 + $0x3e8] ss:$20 sps:$4 sm:$0xff]  }
 0x9b2   : > { %8198 = vmatpush1.bf16.msra.mxu0 %v12540_v48  ;;  %8321 = vmatpush1.bf16.msra.mxu1 %v12543_v29 }
 0x9b3   : > { %8199 = vmatprep.subr.bf16.mxu0 %v12548_v1  ;;  %8322 = vmatprep.subr.bf16.mxu1 %v12551_v40  ;;  %v12596_v1 = vld [vmem:[%s14090_s28 + $0x3ec] ss:$20 sps:$4 sm:$0xff]   ;;  %v12599_v40 = vld [vmem:[%s14090_s28 + $0x3f4] ss:$20 sps:$4 sm:$0xff]  }
 0x9b6   : > { %8200 = vmatpush1.bf16.msra.mxu0 %v12546_v44  ;;  %8323 = vmatpush1.bf16.msra.mxu1 %v12549_v46  ;;  %v12597_v44 = vld [vmem:[%s14090_s28 + $0x3f0] ss:$20 sps:$4 sm:$0xff]   ;;  %v12602_v46 = vld [vmem:[%s14090_s28 + $0x414] ss:$20 sps:$4 sm:$0xff]  }
 0x9b7   : > { %8201 = vmatprep.subr.bf16.mxu0 %v12554_v31  ;;  %8324 = vmatprep.subr.bf16.mxu1 %v12557_v50  ;;  %v12605_v31 = vld [vmem:[%s14090_s28 + $0x41c] ss:$20 sps:$4 sm:$0xff]  }
 0x9b8   : > { %v12600_v50 = vld [vmem:[%s14090_s28 + $0x410] ss:$20 sps:$4 sm:$0xff]  }
 0x9ba   : > { %8202 = vmatpush1.bf16.msra.mxu0 %v12552_v52  ;;  %8325 = vmatpush1.bf16.msra.mxu1 %v12555_v53  ;;  %v12603_v52 = vld [vmem:[%s14090_s28 + $0x418] ss:$20 sps:$4 sm:$0xff]   ;;  %v12608_v53 = vld [vmem:[%s14090_s28 + $0x43c] ss:$20 sps:$4 sm:$0xff]  }
 0x9bb   : > { %8203 = vmatprep.subr.bf16.mxu0 %v12560_v54  ;;  %8326 = vmatprep.subr.bf16.mxu1 %v12563_v49  ;;  %v12611_v54 = vld [vmem:[%s14090_s28 + $0x444] ss:$20 sps:$4 sm:$0xff]   ;;  %v6810_v49 = vrot.slane %v14181_v42, %v13108_v33 }
 0x9be   : > { %8204 = vmatpush1.bf16.msra.mxu0 %v12558_v56  ;;  %8327 = vmatpush1.bf16.msra.mxu1 %v12561_v57 }
 0x9bf   : > { %8205 = vmatprep.subr.bf16.mxu0 %v12566_v58  ;;  %8328 = vmatprep.subr.bf16.mxu1 %v12569_v59 }
 0x9c2   : > { %8206 = vmatpush1.bf16.msra.mxu0 %v12564_v51  ;;  %8329 = vmatpush1.bf16.msra.mxu1 %v12567_v60  ;;  %v12606_v51 = vld [vmem:[%s14090_s28 + $0x438] ss:$20 sps:$4 sm:$0xff]   ;;  %v12609_v60 = vld [vmem:[%s14090_s28 + $0x440] ss:$20 sps:$4 sm:$0xff]  }
 0x9c3   : > { %8207 = vmatprep.subr.bf16.mxu0 %v12572_v28  ;;  %8330 = vmatprep.subr.bf16.mxu1 %v12575_v63  ;;  %v12614_v28 = vld [vmem:[%s14090_s28 + $0x464] ss:$20 sps:$4 sm:$0xff]   ;;  %v12617_v63 = vld [vmem:[%s14090_s28 + $0x46c] ss:$20 sps:$4 sm:$0xff]  }
 0x9c6   : > { %8208 = vmatpush1.bf16.msra.mxu0 %v12570_v0  ;;  %8331 = vmatpush1.bf16.msra.mxu1 %v12573_v5  ;;  %v6826_v0 = vmul.f32 %v6810_v49, %v14201_v4  ;;  %v6845_v5 = vrot.slane %v14185_v45, %v13108_v33  ;;  %v6709_v4 = vrot.slane %v14168_v25, %v13111_v36 }
 0x9c7   : > { %v6682_v2 = vpop.f32.mrb[48].mxu1  ;;  %8209 = vmatprep.subr.bf16.mxu0 %v12578_v37  ;;  %8332 = vmatprep.subr.bf16.mxu1 %v12581_v11  ;;  %v12612_v37 = vld [vmem:[%s14090_s28 + $0x460] ss:$20 sps:$4 sm:$0xff]   ;;  %v12615_v11 = vld [vmem:[%s14090_s28 + $0x468] ss:$20 sps:$4 sm:$0xff]  }
 0x9c8   : > { %v6683_v17 = vadd.f32 %v6682_v2, %v14203_v35  ;;  %v6684_v18 = vpop.f32.mrb[49].mxu1  ;;  %v12593_v35 = vld [vmem:[%s14090_s28 + $0x3cc] ss:$20 sps:$4 sm:$0xff]   ;;  %v6713_v2 = vrot.slane %v14168_v25, %v13132_v13 }
 0x9c9   : > { %v6685_v19 = vadd.f32 %v6684_v18, %v14209_v38  ;;  %v6686_v20 = vpop.f32.mrb[50].mxu1  ;;  %v12588_v38 = vld [vmem:[%s14090_s28 + $0x3c0] ss:$20 sps:$4 sm:$0xff]  }
 0x9ca   : > { %v6757_v21 = vadd.f32 %v6744_v34, %v6683_v17  ;;  %v6687_v62 = vpop.f32.mrb[51].mxu1  ;;  %8210 = vmatpush1.bf16.msra.mxu0 %v12576_v14  ;;  %8333 = vmatpush1.bf16.msra.mxu1 %v12579_v15  ;;  %v12620_v34 = vld [vmem:[%s14090_s28 + $0x48c] ss:$20 sps:$4 sm:$0xff]   ;;  %v12623_v14 = vld [vmem:[%s14090_s28 + $0x494] ss:$20 sps:$4 sm:$0xff]   ;;  %v6861_v15 = vadd.f32 %v6845_v5, %v6826_v0  ;;  %v6814_v20 = vrot.slane %v14181_v42, %v13111_v36 }
 0x9cb   : > { %v6758_v61 = vadd.f32 %v6748_v16, %v6685_v19  ;;  %8211 = vmatprep.subr.bf16.mxu0 %v12584_v6  ;;  %8334 = vmatprep.subr.bf16.mxu1 %v12587_v47  ;;  %v12618_v16 = vld [vmem:[%s14090_s28 + $0x488] ss:$20 sps:$4 sm:$0xff]   ;;  %v12621_v6 = vld [vmem:[%s14090_s28 + $0x490] ss:$20 sps:$4 sm:$0xff]   ;;  %v6722_v19 = vadd.f32 %v6709_v4, %v14065_v7  ;;  %v6723_v25 = vadd.f32 %v6713_v2, %v14162_v10  ;;  %v12651_v4 = vld [vmem:[%s14090_s28 + $0x558] ss:$20 sps:$4 sm:$0xff]  }
 0x9cc   : > { %v10772_v48 = vmul.f32 -1.442695, %v6757_v21  ;;  %v12626_v47 = vld [vmem:[%s14090_s28 + $0x4b4] ss:$20 sps:$4 sm:$0xff]   ;;  %v12629_v17 = vld [vmem:[%s14090_s28 + $0x4bc] ss:$20 sps:$4 sm:$0xff]  }
 0x9cd   : > { %v10773_v29 = vmul.f32 -1.442695, %v6758_v61  ;;  %v10780_v18 = vmul.f32 -1.442695, %v6861_v15  ;;  %v12647_v0 = vld [vmem:[%s14090_s28 + $0x534] ss:$20 sps:$4 sm:$0xff]  }
 0x9ce   : > { %12840 = vpow2.f32 %v10772_v48  ;;  %8212 = vmatpush1.bf16.msra.mxu0 %v12582_v8  ;;  %8335 = vmatpush1.bf16.msra.mxu1 %v12585_v41  ;;  %v12624_v8 = vld [vmem:[%s14090_s28 + $0x4b0] ss:$20 sps:$4 sm:$0xff]   ;;  %v12627_v41 = vld [vmem:[%s14090_s28 + $0x4b8] ss:$20 sps:$4 sm:$0xff]   ;;  %v12642_v5 = vld [vmem:[%s14090_s28 + $0x528] ss:$20 sps:$4 sm:$0xff]  }
 0x9cf   : > { %12842 = vpow2.f32 %v10773_v29  ;;  %8213 = vmatprep.subr.bf16.mxu0 %v12590_v24  ;;  %8336 = vmatprep.subr.bf16.mxu1 %v12593_v35  ;;  %v6849_v24 = vrot.slane %v14185_v45, %v13111_v36  ;;  %v12632_v35 = vld [vmem:[%s14090_s28 + $0x4dc] ss:$20 sps:$4 sm:$0xff]   ;;  %v12635_v48 = vld [vmem:[%s14090_s28 + $0x4e4] ss:$20 sps:$4 sm:$0xff]  }
 0x9d0   : > { %v12630_v29 = vld [vmem:[%s14090_s28 + $0x4d8] ss:$20 sps:$4 sm:$0xff]  }
 0x9d2   : > { %8214 = vmatpush1.bf16.msra.mxu0 %v12588_v38  ;;  %8337 = vmatpush1.bf16.msra.mxu1 %v12591_v27  ;;  %v12633_v38 = vld [vmem:[%s14090_s28 + $0x4e0] ss:$20 sps:$4 sm:$0xff]  }
 0x9d3   : > { %8215 = vmatprep.subr.bf16.mxu0 %v12596_v1  ;;  %8338 = vmatprep.subr.bf16.mxu1 %v12599_v40  ;;  %v12638_v1 = vld [vmem:[%s14090_s28 + $0x504] ss:$20 sps:$4 sm:$0xff]   ;;  %v12641_v40 = vld [vmem:[%s14090_s28 + $0x50c] ss:$20 sps:$4 sm:$0xff]  }
 0x9d6   : > { %8216 = vmatpush1.bf16.msra.mxu0 %v12594_v43  ;;  %8339 = vmatpush1.bf16.msra.mxu1 %v12597_v44 }
 0x9d7   : > { %8217 = vmatprep.subr.bf16.mxu0 %v12602_v46  ;;  %8340 = vmatprep.subr.bf16.mxu1 %v12605_v31  ;;  %v6818_v46 = vrot.slane %v14181_v42, %v13132_v13 }
 0x9d8   : > { %v12841_v56 = vpop.eup %12840 }
 0x9d9   : > { %v12843_v57 = vpop.eup %12842  ;;  %v6777_v58 = vadd.f32 1.0, %v12841_v56 }
 0x9da   : > { %v6778_v59 = vadd.f32 1.0, %v12843_v57  ;;  %8218 = vmatpush1.bf16.msra.mxu0 %v12600_v50  ;;  %8341 = vmatpush1.bf16.msra.mxu1 %v12603_v52  ;;  %v6853_v52 = vrot.slane %v14185_v45, %v13132_v13  ;;  %v12636_v45 = vld [vmem:[%s14090_s28 + $0x500] ss:$20 sps:$4 sm:$0xff]  }
 0x9db   : > { %12844 = vrcp.f32 %v6777_v58  ;;  %8219 = vmatprep.subr.bf16.mxu0 %v12608_v53  ;;  %8342 = vmatprep.subr.bf16.mxu1 %v12611_v54 }
 0x9dc   : > { %12846 = vrcp.f32 %v6778_v59 }
 0x9dd   : > { %12848 = vpow2.f32 %v10780_v18  ;;  %v12662_v18 = vld [vmem:[%s14090_s28 + $0x5a4] ss:$20 sps:$4 sm:$0xff]  }
 0x9de   : > { %8220 = vmatpush1.bf16.msra.mxu0 %v12606_v51  ;;  %8343 = vmatpush1.bf16.msra.mxu1 %v12609_v60  ;;  %v12639_v60 = vld [vmem:[%s14090_s28 + $0x508] ss:$20 sps:$4 sm:$0xff]  }
 0x9df   : > { %8221 = vmatprep.subr.bf16.mxu0 %v12614_v28  ;;  %8344 = vmatprep.subr.bf16.mxu1 %v12617_v63  ;;  %v12644_v63 = vld [vmem:[%s14090_s28 + $0x52c] ss:$20 sps:$4 sm:$0xff]  }
 0x9e2   : > { %8222 = vmatpush1.bf16.msra.mxu0 %v12612_v37  ;;  %8345 = vmatpush1.bf16.msra.mxu1 %v12615_v11  ;;  %v12645_v37 = vld [vmem:[%s14090_s28 + $0x530] ss:$20 sps:$4 sm:$0xff]  }
 0x9e3   : > { %8223 = vmatprep.subr.bf16.mxu0 %v12620_v34  ;;  %8346 = vmatprep.subr.bf16.mxu1 %v12623_v14  ;;  %v12650_v34 = vld [vmem:[%s14090_s28 + $0x554] ss:$20 sps:$4 sm:$0xff]   ;;  %v12653_v14 = vld [vmem:[%s14090_s28 + $0x55c] ss:$20 sps:$4 sm:$0xff]  }
 0x9e5   : > { %v12845_v21 = vpop.eup %12844 }
 0x9e6   : > { %v12847_v62 = vpop.eup %12846  ;;  %8224 = vmatpush1.bf16.msra.mxu0 %v12618_v16  ;;  %8347 = vmatpush1.bf16.msra.mxu1 %v12621_v6  ;;  %v6792_v61 = vmul.f32 %v12845_v21, %v6722_v19  ;;  %v12656_v16 = vld [vmem:[%s14090_s28 + $0x57c] ss:$20 sps:$4 sm:$0xff]   ;;  %v12659_v6 = vld [vmem:[%s14090_s28 + $0x584] ss:$20 sps:$4 sm:$0xff]   ;;  %v12665_v19 = vld [vmem:[%s14090_s28 + $0x5ac] ss:$20 sps:$4 sm:$0xff]  }
 0x9e7   : > { %v6793_v7 = vmul.f32 %v12847_v62, %v6723_v25  ;;  %8225 = vmatprep.subr.bf16.mxu0 %v12626_v47  ;;  %8348 = vmatprep.subr.bf16.mxu1 %v12629_v17  ;;  %v12849_v44 = vpop.eup %12848  ;;  %v12654_v47 = vld [vmem:[%s14090_s28 + $0x578] ss:$20 sps:$4 sm:$0xff]   ;;  %v12657_v17 = vld [vmem:[%s14090_s28 + $0x580] ss:$20 sps:$4 sm:$0xff]   ;;  %v12663_v21 = vld [vmem:[%s14090_s28 + $0x5a8] ss:$20 sps:$4 sm:$0xff]  }
 0x9e8   : > { %v6827_v10 = vmul.f32 %v6814_v20, %v6792_v61  ;;  %v6881_v31 = vadd.f32 1.0, %v12849_v44  ;;  %v12660_v20 = vld [vmem:[%s14090_s28 + $0x5a0] ss:$20 sps:$4 sm:$0xff]   ;;  %v12666_v61 = vld [vmem:[%s14090_s28 + $0x5c8] ss:$20 sps:$4 sm:$0xff]  }
 0x9e9   : > { %v6828_v50 = vmul.f32 %v6818_v46, %v6793_v7  ;;  %v12668_v25 = vld [vmem:[%s14090_s28 + $0x5cc] ss:$20 sps:$4 sm:$0xff]   ;;  %v12671_v62 = vld [vmem:[%s14090_s28 + $0x5d4] ss:$20 sps:$4 sm:$0xff]   ;;  %v12678_v44 = vld [vmem:[%s14090_s28 + $0x10] ss:$20 sps:$4 sm:$0xff]  }
 0x9ea   : > { %8226 = vmatpush1.bf16.msra.mxu0 %v12624_v8  ;;  %8349 = vmatpush1.bf16.msra.mxu1 %v12627_v41  ;;  %v6862_v27 = vadd.f32 %v6849_v24, %v6827_v10  ;;  %v7134_v8 = vld [vmem:[%s14090_s28 + $0x5f0] sm:$0x33]  ;;  %v7135_v41 = vld [vmem:[%s14090_s28 + $0x5f8] sm:$0x33] }
 0x9eb   : > { %8227 = vmatprep.subr.bf16.mxu0 %v12632_v35  ;;  %8350 = vmatprep.subr.bf16.mxu1 %v12635_v48  ;;  %v14304_v49 = vadd.f32 %v6853_v52, %v6828_v50  ;;  %v12669_v24 = vld [vmem:[%s14090_s28 + $0x5d0] ss:$20 sps:$4 sm:$0xff]   ;;  %v10975_v7 = vcombine.high %v7134_v8, %v7134_v8  ;;  %v10977_v35 = vcombine.high %v7135_v41, %v7135_v41  ;;  %v12680_v50 = vld [vmem:[%s14090_s28 + $0x178] ss:$20 sps:$4 sm:$0xff]  }
 0x9ec   : > { %v10781_v43 = vmul.f32 -1.442695, %v6862_v27  ;;  %v10974_v48 = vcombine.low %v7134_v8, %v7134_v8  ;;  %v10976_v10 = vcombine.low %v7135_v41, %v7135_v41  ;;  %v12681_v52 = vld [vmem:[%s14090_s28 + $0x3f8] ss:$20 sps:$4 sm:$0xff]  }
 0x9ed   : > { %v10782_v56 = vmul.f32 -1.442695, %v14304_v49 }
 0x9ee   : > { %8228 = vmatpush1.bf16.msra.mxu0 %v12630_v29  ;;  %8351 = vmatpush1.bf16.msra.mxu1 %v12633_v38  ;;  %12850 = vpow2.f32 %v10781_v43  ;;  %v8142_v38 = vsel %vm399_vm1, %v10974_v48, 0  ;;  %v12677_v43 = vld [vmem:[%s14090_s28 + $0x3d0] ss:$20 sps:$4 sm:$0xff]  }
 0x9ef   : > { %8238 = vmatprep.subr.bf16.mxu0 %v12638_v1  ;;  %8361 = vmatprep.subr.bf16.mxu1 %v12641_v40  ;;  %12852 = vrcp.f32 %v6881_v31  ;;  %v12676_v40 = vld [vmem:[%s14090_s28 + $0x150] ss:$20 sps:$4 sm:$0xff]  }
 0x9f0   : > { %v12679_v31 = vld [vmem:[%s14090_s28 + $0x290] ss:$20 sps:$4 sm:$0xff]  }
 0x9f8   : > { %v12851_v53 = vpop.eup %12850 }
 0x9f9   : > { %v6882_v54 = vadd.f32 1.0, %v12851_v53  ;;  %v12853_v57 = vpop.eup %12852  ;;  %v12682_v53 = vld [vmem:[%s14090_s28 + $0x38] ss:$20 sps:$4 sm:$0xff]  }
 0x9fa   : > { %v6896_v58 = vmul.f32 %v12853_v57, %v6861_v15  ;;  %v12648_v15 = vld [vmem:[%s14090_s28 + $0x550] ss:$20 sps:$4 sm:$0xff]   ;;  %v12686_v57 = vld [vmem:[%s14090_s28 + $0x60] ss:$20 sps:$4 sm:$0xff]  }
 0x9fb   : > { %12854 = vrcp.f32 %v6882_v54  ;;  %v12683_v54 = vld [vmem:[%s14090_s28 + $0x2b8] ss:$20 sps:$4 sm:$0xff]  }
 0x9fc   : > { %12856 = vpow2.f32 %v10782_v56  ;;  %v14311_v28 = vpack.c.bf16 %v6896_v58, %v6896_v58  ;;  %v12685_v56 = vld [vmem:[%s14090_s28 + $0x420] ss:$20 sps:$4 sm:$0xff]   ;;  %v12689_v58 = vld [vmem:[%s14090_s28 + $0x448] ss:$20 sps:$4 sm:$0xff]  }
 0xa05   : > { %v12855_v42 = vpop.eup %12854 }
 0xa06   : > { %v6897_v59 = vmul.f32 %v12855_v42, %v6862_v27  ;;  %v12857_v11 = vpop.eup %12856  ;;  %v8148_v27 = vsel %vm399_vm1, %v10976_v10, 0  ;;  %v12688_v42 = vld [vmem:[%s14090_s28 + $0x1c8] ss:$20 sps:$4 sm:$0xff]  }
 0xa07   : > { %v6883_v2 = vadd.f32 1.0, %v12857_v11  ;;  %v12698_v11 = vld [vmem:[%s14090_s28 + $0xd8] ss:$20 sps:$4 sm:$0xff]  }
 0xa08   : > { %v14307_v51 = vpack.c.bf16 %v6897_v59, %v6897_v59  ;;  %v12690_v59 = vld [vmem:[%s14090_s28 + $0x88] ss:$20 sps:$4 sm:$0xff]  }
 0xa09   : > { %12858 = vrcp.f32 %v6883_v2  ;;  %v12703_v2 = vld [vmem:[%s14090_s28 + $0x380] ss:$20 sps:$4 sm:$0xff]  }
 0xa0a   : > { %8229 = vmatprep.mubr.bf16.mxu0 %v14307_v51  ;;  %8352 = vmatprep.mubr.bf16.mxu1 %v14307_v51 }
 0xa0b   : > { %8230 = vmatmul.mubr.bf16.vlgmr.msra.gmra.mrb[52].mxu0 %v14311_v28  ;;  %8353 = vmatmul.mubr.bf16.vlgmr.msra.gmra.mrb[52].mxu1 %v14311_v28 }
 0xa0c   : > { %8239 = vmatpush1.bf16.msra.mxu0 %v12636_v45  ;;  %8362 = vmatpush1.bf16.msra.mxu1 %v12639_v60  ;;  %v12692_v45 = vld [vmem:[%s14090_s28 + $0x1f0] ss:$20 sps:$4 sm:$0xff]  }
 0xa0d   : > { %8240 = vmatprep.subr.bf16.mxu0 %v12644_v63  ;;  %8363 = vmatprep.subr.bf16.mxu1 %v12647_v0  ;;  %v12693_v60 = vld [vmem:[%s14090_s28 + $0x470] ss:$20 sps:$4 sm:$0xff]  }
 0xa0e   : > { %8270 = vmatprep.mubr.bf16.mxu0 %v12926_v3  ;;  %8393 = vmatprep.mubr.bf16.mxu1 %v12926_v3  ;;  %v12694_v63 = vld [vmem:[%s14090_s28 + $0xb0] ss:$20 sps:$4 sm:$0xff]  }
 0xa0f   : > { %v12695_v0 = vld [vmem:[%s14090_s28 + $0x330] ss:$20 sps:$4 sm:$0xff]  }
 0xa10   : > { %8241 = vmatpush1.bf16.msra.mxu0 %v12642_v5  ;;  %8364 = vmatpush1.bf16.msra.mxu1 %v12645_v37  ;;  %v12696_v5 = vld [vmem:[%s14090_s28 + $0x218] ss:$20 sps:$4 sm:$0xff]  }
 0xa11   : > { %8242 = vmatprep.subr.bf16.mxu0 %v12650_v34  ;;  %8365 = vmatprep.subr.bf16.mxu1 %v12653_v14  ;;  %v12697_v37 = vld [vmem:[%s14090_s28 + $0x498] ss:$20 sps:$4 sm:$0xff]   ;;  %v12700_v14 = vld [vmem:[%s14090_s28 + $0x240] ss:$20 sps:$4 sm:$0xff]  }
 0xa12   : > { %v12699_v34 = vld [vmem:[%s14090_s28 + $0x358] ss:$20 sps:$4 sm:$0xff]  }
 0xa13   : > { %v12859_v29 = vpop.eup %12858 }
 0xa14   : > { %8243 = vmatpush1.bf16.msra.mxu0 %v12648_v15  ;;  %8366 = vmatpush1.bf16.msra.mxu1 %v12651_v4  ;;  %v6898_v1 = vmul.f32 %v12859_v29, %v14304_v49  ;;  %v12684_v49 = vld [vmem:[%s14090_s28 + $0x1a0] ss:$20 sps:$4 sm:$0xff]  }
 0xa15   : > { %8244 = vmatprep.subr.bf16.mxu0 %v12656_v16  ;;  %8367 = vmatprep.subr.bf16.mxu1 %v12659_v6  ;;  %v12701_v15 = vld [vmem:[%s14090_s28 + $0x4c0] ss:$20 sps:$4 sm:$0xff]   ;;  %v12704_v16 = vld [vmem:[%s14090_s28 + $0x268] ss:$20 sps:$4 sm:$0xff]  }
 0xa16   : > { %v14349_v46 = vpack.c.bf16 %v6898_v1, %v6898_v1  ;;  %v12702_v4 = vld [vmem:[%s14090_s28 + $0x100] ss:$20 sps:$4 sm:$0xff]   ;;  %v12705_v6 = vld [vmem:[%s14090_s28 + $0x4e8] ss:$20 sps:$4 sm:$0xff]  }
 0xa18   : > { %8245 = vmatpush1.bf16.msra.mxu0 %v12654_v47  ;;  %8368 = vmatpush1.bf16.msra.mxu1 %v12657_v17  ;;  %v12706_v47 = vld [vmem:[%s14090_s28 + $0x128] ss:$20 sps:$4 sm:$0xff]  }
 0xa19   : > { %8246 = vmatprep.subr.bf16.mxu0 %v12662_v18  ;;  %8369 = vmatprep.subr.bf16.mxu1 %v12665_v19  ;;  %v12707_v17 = vld [vmem:[%s14090_s28 + $0x3a8] ss:$20 sps:$4 sm:$0xff]   ;;  %v12708_v18 = vld [vmem:[%s14090_s28 + $0x510] ss:$20 sps:$4 sm:$0xff]   ;;  %v12709_v19 = vld [vmem:[%s14090_s28 + $0x538] ss:$20 sps:$4 sm:$0xff]  }
 0xa1c   : > { %8247 = vmatpush1.bf16.msra.mxu0 %v12660_v20  ;;  %8370 = vmatpush1.bf16.msra.mxu1 %v12663_v21  ;;  %v12710_v20 = vld [vmem:[%s14090_s28 + $0x560] ss:$20 sps:$4 sm:$0xff]   ;;  %v12711_v21 = vld [vmem:[%s14090_s28 + $0x588] ss:$20 sps:$4 sm:$0xff]  }
 0xa1d   : > { %8248 = vmatprep.subr.bf16.mxu0 %v12668_v25  ;;  %8371 = vmatprep.subr.bf16.mxu1 %v12671_v62  ;;  %v12714_v25 = vld [vmem:[%s14090_s28 + $0x600] ss:$0 sps:$4 sm:$0x33]  }
 0xa1e   : > { %v8154_v62 = vsel %vm399_vm1, %v12714_v25, 0 }
 0xa20   : > { %8249 = vmatpush1.bf16.msra.mxu0 %v12666_v61  ;;  %8372 = vmatpush1.bf16.msra.mxu1 %v12669_v24 }
 0xa21   : > { %10979 = vmatprep.subr.msk.bf16.mxu0 %vm399_vm1, %v10975_v7  ;;  %10981 = vmatprep.subr.msk.bf16.mxu1 %vm399_vm1, %v10977_v35 }
 0xa24   : > { %8251 = vmatpush1.bf16.msra.mxu0 %v8142_v38  ;;  %8374 = vmatpush1.bf16.msra.mxu1 %v8148_v27 }
 0xa25   : > { %11203 = vmatprep.subr.bf16.mxu0 %v12676_v40  ;;  %11225 = vmatprep.subr.bf16.mxu1 %v12677_v43  ;;  %v10984_v43 = vld [vmem:[%s13004_s18 + $0x2d] ss:$8 sm:$0xf] }
 0xa27   : > { %10980 = vmatmul.mubr.msk.bf16.vlgmr.msra.gmra.mrb[52].mxu0 %vm936_vm4, %v14349_v46  ;;  %10982 = vmatmul.mubr.msk.bf16.vlgmr.msra.gmra.mrb[52].mxu1 %vm936_vm4, %v14349_v46 }
 0xa28   : > { %11204 = vmatpush3.bf16.msra.mxu0 %v12678_v44  ;;  %8434 = vmatprep.mubr.bf16.mxu0 %v14205_v22  ;;  %v12687_v22 = vld [vmem:[%s14090_s28 + $0x2e0] ss:$20 sps:$4 sm:$0xff]   ;;  %v10985_v44 = vld [vmem:[%s13004_s18 + $0x2d] ss:$8 sm:$0x10] }
 0xa29   : > { %11226 = vmatpush3.bf16.msra.mxu1 %v12679_v31  ;;  %8474 = vmatprep.mubr.bf16.mxu1 %v14307_v51  ;;  %v12691_v51 = vld [vmem:[%s14090_s28 + $0x308] ss:$20 sps:$4 sm:$0xff]   ;;  %v8558_v31 = vor.u32 %v10985_v44, %v10984_v43 }
 0xa2a   : > { %11205 = vmatprep.subr.bf16.mxu0 %v12680_v50  ;;  %11227 = vmatprep.subr.bf16.mxu1 %v12681_v52 }
 0xa2b   : > { %v8567_v50 = vrot.slane %v8558_v31, %v13105_v32  ;;  %v8571_v52 = vrot.slane %v8558_v31, %v13108_v33 }
 0xa2c   : > { %11206 = vmatpush3.bf16.msra.mxu0 %v12682_v53  ;;  %v8575_v53 = vrot.slane %v8558_v31, %v13111_v36 }
 0xa2d   : > { %11228 = vmatpush3.bf16.msra.mxu1 %v12683_v54  ;;  %11207 = vmatprep.subr.bf16.mxu0 %v12684_v49 }
 0xa2e   : > { %11229 = vmatprep.subr.bf16.mxu1 %v12685_v56 }
 0xa30   : > { %11208 = vmatpush3.bf16.msra.mxu0 %v12686_v57 }
 0xa31   : > { %11230 = vmatpush3.bf16.msra.mxu1 %v12687_v22  ;;  %11209 = vmatprep.subr.bf16.mxu0 %v12688_v42 }
 0xa32   : > { %11231 = vmatprep.subr.bf16.mxu1 %v12689_v58 }
 0xa34   : > { %11210 = vmatpush3.bf16.msra.mxu0 %v12690_v59  ;;  %v8581_v59 = vcombine.low %v8571_v52, %v8575_v53 }
 0xa35   : > { %11232 = vmatpush3.bf16.msra.mxu1 %v12691_v51  ;;  %11211 = vmatprep.subr.bf16.mxu0 %v12692_v45 }
 0xa36   : > { %11233 = vmatprep.subr.bf16.mxu1 %v12693_v60 }
 0xa38   : > { %11212 = vmatpush3.bf16.msra.mxu0 %v12694_v63 }
 0xa39   : > { %11234 = vmatpush3.bf16.msra.mxu1 %v12695_v0  ;;  %11213 = vmatprep.subr.bf16.mxu0 %v12696_v5 }
 0xa3a   : > { %11235 = vmatprep.subr.bf16.mxu1 %v12697_v37  ;;  %v8595_v37 = vrot.slane %v8581_v59, %v13020_v9 }
 0xa3c   : > { %11214 = vmatpush3.bf16.msra.mxu0 %v12698_v11 }
 0xa3d   : > { %11236 = vmatpush3.bf16.msra.mxu1 %v12699_v34  ;;  %11215 = vmatprep.subr.bf16.mxu0 %v12700_v14 }
 0xa3e   : > { %11237 = vmatprep.subr.bf16.mxu1 %v12701_v15 }
 0xa40   : > { %11216 = vmatpush3.bf16.msra.mxu0 %v12702_v4 }
 0xa41   : > { %11238 = vmatpush3.bf16.msra.mxu1 %v12703_v2  ;;  %11217 = vmatprep.subr.bf16.mxu0 %v12704_v16  ;;  %v8579_v16 = vrot.slane %v8558_v31, %v13132_v13 }
 0xa42   : > { %11239 = vmatprep.subr.bf16.mxu1 %v12705_v6 }
 0xa44   : > { %11218 = vmatpush3.bf16.msra.mxu0 %v12706_v47 }
 0xa45   : > { %11240 = vmatpush3.bf16.msra.mxu1 %v12707_v17  ;;  %11372 = vmatprep.subr.bf16.mxu0 %v12924_v23 }
 0xa47   : > { %8435 = vmatmul.mubr.bf16.vlgmr.msra.gmra.mrb[56].mxu0 %v14211_v39  ;;  %v12712_v39 = vld [vmem:[%s14090_s28 + $0x5b0] ss:$20 sps:$4 sm:$0xff]  }
 0xa48   : > { %8475 = vmatmul.mubr.bf16.vlgmr.msra.gmra.mrb[56].mxu1 %v14311_v28  ;;  %11373 = vmatpush3.bf16.msra.mxu0 %v12708_v18  ;;  %v12713_v28 = vld [vmem:[%s14090_s28 + $0x5d8] ss:$20 sps:$4 sm:$0xff]  }
 0xa49   : > { %11374 = vmatprep.subr.bf16.mxu0 %v12924_v23  ;;  %11386 = vmatprep.mubr.msk.bf16.mxu0 %vm12925_vm3, %v12924_v23 }
 0xa4c   : > { %11375 = vmatpush3.bf16.msra.mxu0 %v12709_v19 }
 0xa4d   : > { %11376 = vmatprep.subr.bf16.mxu0 %v12924_v23 }
 0xa50   : > { %11377 = vmatpush3.bf16.msra.mxu0 %v12710_v20 }
 0xa51   : > { %11378 = vmatprep.subr.bf16.mxu0 %v12924_v23 }
 0xa54   : > { %11379 = vmatpush3.bf16.msra.mxu0 %v12711_v21 }
 0xa55   : > { %11380 = vmatprep.subr.bf16.mxu0 %v12924_v23 }
 0xa58   : > { %11381 = vmatpush3.bf16.msra.mxu0 %v12712_v39 }
 0xa59   : > { %11382 = vmatprep.subr.bf16.mxu0 %v12924_v23 }
 0xa5c   : > { %11383 = vmatpush3.bf16.msra.mxu0 %v12713_v28  ;;  %v8603_v28 = vrot.slane %v8579_v16, %v13020_v9  ;;  %v12725_v16 = vld [vmem:[%s14443_s15 + $0xd0] sm:$0xff]  }
 0xa5d   : > { %11384 = vmatprep.subr.bf16.mxu0 %v12924_v23 }
 0xa60   : > { %11385 = vmatpush3.bf16.msra.mxu0 %v8154_v62 }
 0xa63   : > { %11387 = vmatmul.mubr.msk.bf16.vlgmr.msra.gmra.mrb[60].mxu0 %vm936_vm4, %v14349_v46  ;;  %v8563_v46 = vrot.slane %v8558_v31, %v13100_v26 }
 0xa65   : > { %v8580_v58 = vcombine.low %v8563_v46, %v8567_v50 }
 0xa67   : > { %v8588_v5 = vrot.slane %v8580_v58, %v13020_v9 }
 0xa69   : > { %v8596_v34 = vcombine.low %v8588_v5, %v8595_v37  ;;  %v12718_v5 = vld [vmem:[%s14443_s15 + $0x48] sm:$0xff]   ;;  %v12719_v37 = vld [vmem:[%s14443_s15 + $0x80] sm:$0xff]  }
 0xafa   : > { %v8272_v8 = vpop.f32.mrb[52].mxu0  ;;  %v8395_v41 = vpop.f32.mrb[52].mxu1 }
 0xafb   : > { %v8274_v61 = vpop.f32.mrb[53].mxu0  ;;  %v8397_v24 = vpop.f32.mrb[53].mxu1 }
 0xafc   : > { %v8527_v7 = vcombine.low %v8272_v8, %v8274_v61  ;;  %v8528_v35 = vcombine.low %v8395_v41, %v8397_v24  ;;  %v8276_v48 = vpop.f32.mrb[54].mxu0  ;;  %v8399_v10 = vpop.f32.mrb[54].mxu1 }
 0xafd   : > { %v8277_v29 = vpop.f32.mrb[55].mxu0  ;;  %v8400_v38 = vpop.f32.mrb[55].mxu1 }
 0xafe   : > { %v8535_v27 = vrot.slane %v8527_v7, %v13020_v9  ;;  %v8542_v1 = vrot.slane %v8528_v35, %v13020_v9  ;;  %v12716_v38 = vld [vmem:[%s14443_s15] sm:$0xff]  }
 0xb00   : > { %v8543_v40 = vcombine.low %v8535_v27, %v8542_v1 }
 0xb02   : > { %v8553_v11 = vadd.f32 %v8543_v40, %v13554_v12 }
 0xb04   : > { %v14418_v14 = vadd.f32 %v8596_v34, %v8553_v11  ;;  %v12720_v11 = vld [vmem:[%s14443_s15 + $0x8] sm:$0xff]  }
 0xb05   : > { %v12721_v34 = vld [vmem:[%s14443_s15 + $0xc8] sm:$0xff]  }
 0xb06   : > { %v8617_v15 = vrot.slane %v14418_v14, %v13020_v9  ;;  %v8610_v2 = vcombine.high %v14418_v14, %v14418_v14 }
 0xb08   : > { %v8625_v4 = vcombine.high %v8617_v15, %v8617_v15  ;;  %v8624_v19 = vrot.slane %v8610_v2, %v13020_v9  ;;  %v8639_v12 = vsel %vm399_vm1, %v8617_v15, 0.0  ;;  %v12722_v15 = vld [vmem:[%s14443_s15 + $0x50] sm:$0xff]  }
 0xb09   : > { %v12724_v2 = vld [vmem:[%s14443_s15 + $0x10] sm:$0xff]  }
 0xb0a   : > { %v8640_v6 = vsel %vm399_vm1, %v8625_v4, 0.0  ;;  %v8626_v8 = vcombine.high %v8624_v19, %v8624_v19  ;;  %v8642_v41 = vsel %vm399_vm1, %v8624_v19, 0.0  ;;  %v12723_v4 = vld [vmem:[%s14443_s15 + $0x88] sm:$0xff]   ;;  %v12730_v19 = vld [vmem:[%s14443_s15 + $0x60] sm:$0xff]  }
 0xb0b   : > { %v8641_v21 = vadd.f32 %v8640_v6, %v8639_v12  ;;  %v12726_v6 = vld [vmem:[%s14443_s15 + $0x58] sm:$0xff]  }
 0xb0c   : > { %v8644_v35 = vsel %vm399_vm1, %v8626_v8, 0.0  ;;  %v12731_v12 = vld [vmem:[%s14443_s15 + $0x98] sm:$0xff]   ;;  %v12738_v8 = vld [vmem:[%s14443_s15 + $0x70] sm:$0xff]  }
 0xb0d   : > { %v8643_v61 = vadd.f32 %v8642_v41, %v8641_v21  ;;  %v12733_v21 = vld [vmem:[%s14443_s15 + $0xe0] sm:$0xff]   ;;  %v12739_v41 = vld [vmem:[%s14443_s15 + $0xa8] sm:$0xff]  }
 0xb0f   : > { %v8645_v48 = vadd.f32 %v8644_v35, %v8643_v61  ;;  %v12740_v61 = vld [vmem:[%s14443_s15 + $0x30] sm:$0xff]   ;;  %v12742_v35 = vld [vmem:[%s14443_s15 + $0x78] sm:$0xff]  }
 0xb1a   : > { %v11219_v54 = vpop.f32.mrb[56].mxu0 }
 0xb1b   : > { %v11241_v49 = vpop.f32.mrb[56].mxu1  ;;  %v11220_v56 = vpop.f32.mrb[57].mxu0 }
 0xb1c   : > { %v11221_v57 = vadd.f32 %v11220_v56, %v11219_v54  ;;  %v11242_v22 = vpop.f32.mrb[57].mxu1  ;;  %v11222_v42 = vpop.f32.mrb[58].mxu0 }
 0xb1d   : > { %v11243_v51 = vadd.f32 %v11242_v22, %v11241_v49  ;;  %v11244_v45 = vpop.f32.mrb[58].mxu1  ;;  %v11223_v60 = vpop.f32.mrb[59].mxu0 }
 0xb1e   : > { %v11245_v63 = vpop.f32.mrb[59].mxu1 }
 0xb1f   : > { %v8477_v0 = vadd.f32 %v11243_v51, %v11221_v57 }
 0xb36   : > { %v8516_v47 = vpop.f32.mrb[60].mxu0 }
 0xb37   : > { %v8517_v17 = vadd.f32 %v8516_v47, %v8477_v0  ;;  %v11388_v18 = vpop.f32.mrb[61].mxu0  ;;  %v12717_v0 = vld [vmem:[%s14443_s15 + $0xc0] sm:$0xff]   ;;  %v12727_v47 = vld [vmem:[%s14443_s15 + $0x90] sm:$0xff]  }
 0xb38   : > { %v8519_v20 = vpop.f32.mrb[62].mxu0  ;;  %11277 = vmatprep.subr.bf16.mxu0 %v12717_v0  ;;  %v12729_v18 = vld [vmem:[%s14443_s15 + $0xd8] sm:$0xff]  }
 0xb39   : > { %v8550_v39 = vrot.slane %v8517_v17, %v13020_v9  ;;  %v11389_v25 = vpop.f32.mrb[63].mxu0  ;;  %11278 = vmatpush3.bf16.msra.mxu0 %v12719_v37  ;;  %v12728_v17 = vld [vmem:[%s14443_s15 + $0x18] sm:$0xff]   ;;  %v12732_v20 = vld [vmem:[%s14443_s15 + $0x20] sm:$0xff]  }
 0xb3a   : > { %11279 = vmatprep.subr.bf16.mxu0 %v12721_v34  ;;  %v12736_v25 = vld [vmem:[%s14443_s15 + $0x28] sm:$0xff]  }
 0xb3b   : > { %v8554_v62 = vadd.f32 %v8550_v39, %v13568_v55  ;;  %v12715_v55 = vld [vmem:[%s14443_s15 + $0x40] sm:$0xff]   ;;  %v12734_v39 = vld [vmem:[%s14443_s15 + $0x68] sm:$0xff]  }
 0xb3c   : > { %11255 = vmatprep.subr.bf16.mxu1 %v12715_v55  ;;  %v12746_v55 = vld [vmem:[%s14443_s15 + $0xb8] sm:$0xff]  }
 0xb3d   : > { %v14432_v24 = vadd.f32 %v8603_v28, %v8554_v62  ;;  %11256 = vmatpush3.bf16.msra.mxu1 %v12716_v38  ;;  %11280 = vmatpush3.bf16.msra.mxu0 %v12723_v4  ;;  %v12735_v28 = vld [vmem:[%s14443_s15 + $0xa0] sm:$0xff]   ;;  %v12737_v62 = vld [vmem:[%s14443_s15 + $0xe8] sm:$0xff]  }
 0xb3e   : > { %11257 = vmatprep.subr.bf16.mxu1 %v12718_v5  ;;  %11281 = vmatprep.subr.bf16.mxu0 %v12725_v16  ;;  %v10986_v38 = vld [vmem:[%s13004_s18 + $0x2e] ss:$8 sm:$0xf] }
 0xb3f   : > { %v8633_v7 = vrot.slane %v14432_v24, %v13020_v9 }
 0xb41   : > { %v8646_v10 = vsel %vm407_vm2, %v8633_v7, 0.0  ;;  %11258 = vmatpush3.bf16.msra.mxu1 %v12720_v11  ;;  %11282 = vmatpush3.bf16.msra.mxu0 %v12727_v47  ;;  %v12741_v7 = vld [vmem:[%s14443_s15 + $0xf0] sm:$0xff]  }
 0xb42   : > { %v8647_v29 = vadd.f32 %v8646_v10, %v8645_v48  ;;  %11259 = vmatprep.subr.bf16.mxu1 %v12722_v15  ;;  %11283 = vmatprep.subr.bf16.mxu0 %v12729_v18  ;;  %v12743_v48 = vld [vmem:[%s14443_s15 + $0xb0] sm:$0xff]   ;;  %v12744_v10 = vld [vmem:[%s14443_s15 + $0x38] sm:$0xff]  }
 0xb44   : > { %8648 = vadd.xlane.f32.xlu0 %v8647_v29  ;;  %v12745_v29 = vld [vmem:[%s14443_s15 + $0xf8] sm:$0xff]  }
 0xb45   : > { %11260 = vmatpush3.bf16.msra.mxu1 %v12724_v2  ;;  %11284 = vmatpush3.bf16.msra.mxu0 %v12731_v12 }
 0xb46   : > { %11261 = vmatprep.subr.bf16.mxu1 %v12726_v6  ;;  %11285 = vmatprep.subr.bf16.mxu0 %v12733_v21  ;;  %v12747_v21 = vld [vmem:[%s14443_s15 + $0x100] sm:$0xff]  }
 0xb49   : > { %11262 = vmatpush3.bf16.msra.mxu1 %v12728_v17  ;;  %11286 = vmatpush3.bf16.msra.mxu0 %v12735_v28 }
 0xb4a   : > { %11263 = vmatprep.subr.bf16.mxu1 %v12730_v19  ;;  %11287 = vmatprep.subr.bf16.mxu0 %v12737_v62  ;;  %v12748_v62 = vld [vmem:[%s14443_s15 + $0x108] sm:$0xff]  }
 0xb4d   : > { %11264 = vmatpush3.bf16.msra.mxu1 %v12732_v20  ;;  %11288 = vmatpush3.bf16.msra.mxu0 %v12739_v41 }
 0xb4e   : > { %11265 = vmatprep.subr.bf16.mxu1 %v12734_v39  ;;  %11289 = vmatprep.subr.bf16.mxu0 %v12741_v7 }
 0xb51   : > { %11266 = vmatpush3.bf16.msra.mxu1 %v12736_v25  ;;  %11290 = vmatpush3.bf16.msra.mxu0 %v12743_v48 }
 0xb52   : > { %11267 = vmatprep.subr.bf16.mxu1 %v12738_v8  ;;  %11291 = vmatprep.subr.bf16.mxu0 %v12745_v29  ;;  %v12749_v8 = vld [vmem:[%s14443_s15 + $0x110] sm:$0xff]  }
 0xb55   : > { %11268 = vmatpush3.bf16.msra.mxu1 %v12740_v61  ;;  %11292 = vmatpush3.bf16.msra.mxu0 %v12746_v55  ;;  %v12750_v61 = vld [vmem:[%s14443_s15 + $0x118] sm:$0xff]  }
 0xb56   : > { %11269 = vmatprep.subr.bf16.mxu1 %v12742_v35 }
 0xb59   : > { %11270 = vmatpush3.bf16.msra.mxu1 %v12744_v10  ;;  %v12751_v10 = vld [vmem:[%s14443_s15 + $0x120] sm:$0xff]  }
 0xb5a   : > { %11390 = vmatprep.subr.bf16.mxu1 %v12924_v23 }
 0xbd1   : > { %v8649_v27 = vpop.xlane.xlu0 %8648 }
 0xbd2   : > { %v8650_v1 = vmul.f32 0.001633987, %v8649_v27  ;;  %v10987_v27 = vld [vmem:[%s13004_s18 + $0x2e] ss:$8 sm:$0x10] }
 0xbd4   : > { %v8658_v40 = vrot.slane %v8650_v1, %v13045_v30  ;;  %v10988_v1 = vld [vmem:[%s13004_s18 + $0x2f] ss:$8 sm:$0xf] }
 0xbd6   : > { %v14449_v43 = vsub.f32 %v14418_v14, %v8658_v40  ;;  %v14452_v44 = vsub.f32 %v14432_v24, %v8658_v40  ;;  %v10989_v40 = vld [vmem:[%s13004_s18 + $0x2f] ss:$8 sm:$0x10] }
 0xbd8   : > { %v8662_v31 = vmul.f32 %v14449_v43, %v14449_v43  ;;  %v8663_v52 = vmul.f32 %v14452_v44, %v14452_v44 }
 0xbda   : > { %v8666_v46 = vcombine.high %v8662_v31, %v8662_v31  ;;  %v8673_v50 = vrot.slane %v8662_v31, %v13020_v9  ;;  %v8689_v42 = vrot.slane %v8663_v52, %v13020_v9  ;;  %v8776_v52 = vor.u32 %v10989_v40, %v10988_v1 }
 0xbdc   : > { %v8680_v53 = vrot.slane %v8666_v46, %v13020_v9  ;;  %v8681_v54 = vcombine.high %v8673_v50, %v8673_v50  ;;  %v8695_v56 = vsel %vm399_vm1, %v8673_v50, 0.0  ;;  %v8702_v60 = vsel %vm407_vm2, %v8689_v42, 0.0 }
 0xbdd   : > { %v8723_v46 = vor.u32 %v10987_v27, %v10986_v38  ;;  %v8785_v42 = vrot.slane %v8776_v52, %v13105_v32  ;;  %v8797_v48 = vrot.slane %v8776_v52, %v13132_v13  ;;  %v12752_v38 = vld [vmem:[%s14443_s15 + $0x128] sm:$0xff]   ;;  %v12753_v27 = vld [vmem:[%s14443_s15 + $0x130] ss:$0 sps:$4 sm:$0x33]  }
 0xbde   : > { %v8682_v49 = vcombine.high %v8680_v53, %v8680_v53  ;;  %v8696_v57 = vsel %vm399_vm1, %v8681_v54, 0.0  ;;  %v8698_v58 = vsel %vm399_vm1, %v8680_v53, 0.0  ;;  %v9177_v1 = vsel %vm399_vm1, %v12753_v27, 0 }
 0xbdf   : > { %v8697_v22 = vadd.f32 %v8696_v57, %v8695_v56  ;;  %v8728_v54 = vrot.slane %v8723_v46, %v13100_v26  ;;  %v8736_v56 = vrot.slane %v8723_v46, %v13108_v33  ;;  %v8740_v57 = vrot.slane %v8723_v46, %v13111_v36 }
 0xbe0   : > { %v8700_v51 = vsel %vm399_vm1, %v8682_v49, 0.0  ;;  %v8732_v49 = vrot.slane %v8723_v46, %v13105_v32  ;;  %v8744_v41 = vrot.slane %v8723_v46, %v13132_v13  ;;  %v8821_v55 = vrot.slane %v8797_v48, %v13020_v9  ;;  %v12756_v46 = vld [vmem:[%s14547_s17 + $0x4] ss:$20 sps:$4 sm:$0xff]  }
 0xbe1   : > { %v8699_v59 = vadd.f32 %v8698_v58, %v8697_v22  ;;  %v8781_v22 = vrot.slane %v8776_v52, %v13100_v26  ;;  %v8789_v58 = vrot.slane %v8776_v52, %v13108_v33  ;;  %9595 = vmatprep.subr.bf16.mxu0 %v12756_v46 }
 0xbe2   : > { %v8768_v35 = vrot.slane %v8744_v41, %v13020_v9 }
 0xbe3   : > { %v8701_v45 = vadd.f32 %v8700_v51, %v8699_v59  ;;  %v8793_v59 = vrot.slane %v8776_v52, %v13111_v36  ;;  %v8745_v51 = vcombine.low %v8728_v54, %v8732_v49  ;;  %v12759_v52 = vld [vmem:[%s14547_s17 + $0xc] ss:$20 sps:$4 sm:$0xff]   ;;  %v12760_v54 = vld [vmem:[%s14547_s17 + $0x28] ss:$20 sps:$4 sm:$0xff]  }
 0xbe4   : > { %v12765_v49 = vld [vmem:[%s14547_s17 + $0x34] ss:$20 sps:$4 sm:$0xff]  }
 0xbe5   : > { %v8703_v63 = vadd.f32 %v8702_v60, %v8701_v45  ;;  %v8746_v45 = vcombine.low %v8736_v56, %v8740_v57  ;;  %v8798_v60 = vcombine.low %v8781_v22, %v8785_v42  ;;  %v8753_v0 = vrot.slane %v8745_v51, %v13020_v9  ;;  %v12763_v56 = vld [vmem:[%s14547_s17 + $0x30] ss:$20 sps:$4 sm:$0xff]   ;;  %v12768_v57 = vld [vmem:[%s14547_s17 + $0x54] ss:$20 sps:$4 sm:$0xff]   ;;  %v12772_v51 = vld [vmem:[%s14547_s17 + $0x78] ss:$20 sps:$4 sm:$0xff]  }
 0xbe6   : > { %v12766_v22 = vld [vmem:[%s14547_s17 + $0x50] ss:$20 sps:$4 sm:$0xff]  }
 0xbe7   : > { %8704 = vadd.xlane.f32.xlu1 %v8703_v63  ;;  %v8799_v63 = vcombine.low %v8789_v58, %v8793_v59  ;;  %v8760_v5 = vrot.slane %v8746_v45, %v13020_v9  ;;  %v8806_v37 = vrot.slane %v8798_v60, %v13020_v9  ;;  %v12771_v42 = vld [vmem:[%s14547_s17 + $0x5c] ss:$20 sps:$4 sm:$0xff]   ;;  %v12769_v58 = vld [vmem:[%s14547_s17 + $0x58] ss:$20 sps:$4 sm:$0xff]   ;;  %v12775_v60 = vld [vmem:[%s14547_s17 + $0x80] ss:$20 sps:$4 sm:$0xff]  }
 0xbe8   : > { %v12774_v59 = vld [vmem:[%s14547_s17 + $0x7c] ss:$20 sps:$4 sm:$0xff]   ;;  %v12777_v45 = vld [vmem:[%s14547_s17 + $0x84] ss:$20 sps:$4 sm:$0xff]  }
 0xbe9   : > { %v8813_v11 = vrot.slane %v8799_v63, %v13020_v9  ;;  %v8761_v4 = vcombine.low %v8753_v0, %v8760_v5  ;;  %v12780_v63 = vld [vmem:[%s14547_s17 + $0xa4] ss:$20 sps:$4 sm:$0xff]   ;;  %v12778_v0 = vld [vmem:[%s14547_s17 + $0xa0] ss:$20 sps:$4 sm:$0xff]  }
 0xbea   : > { %v12783_v5 = vld [vmem:[%s14547_s17 + $0xac] ss:$20 sps:$4 sm:$0xff]  }
 0xbeb   : > { %v8814_v16 = vcombine.low %v8806_v37, %v8813_v11  ;;  %v12781_v37 = vld [vmem:[%s14547_s17 + $0xa8] ss:$20 sps:$4 sm:$0xff]   ;;  %v12786_v11 = vld [vmem:[%s14547_s17 + $0xcc] ss:$20 sps:$4 sm:$0xff]  }
 0xc74   : > { %v8705_v31 = vpop.xlane.xlu1 %8704 }
 0xc75   : > { %v8706_v50 = vmul.f32 0.001633987, %v8705_v31 }
 0xc77   : > { %v8707_v53 = vadd.f32 1e-05, %v8706_v50  ;;  %v12754_v50 = vld [vmem:[%s14547_s17] ss:$20 sps:$4 sm:$0xff]  }
 0xc79   : > { %12860 = vrsqrt.f32 %v8707_v53  ;;  %v12762_v53 = vld [vmem:[%s14547_s17 + $0x2c] ss:$20 sps:$4 sm:$0xff]  }
 0xc83   : > { %v12861_v34 = vpop.eup %12860 }
 0xc84   : > { %v8716_v15 = vrot.slane %v12861_v34, %v13045_v30  ;;  %v12784_v34 = vld [vmem:[%s14547_s17 + $0xc8] ss:$20 sps:$4 sm:$0xff]  }
 0xc86   : > { %v8718_v2 = vmul.f32 %v8716_v15, %v14449_v43  ;;  %v8719_v7 = vmul.f32 %v8716_v15, %v14452_v44  ;;  %v12789_v15 = vld [vmem:[%s14547_s17 + $0xd4] ss:$20 sps:$4 sm:$0xff]  }
 0xc88   : > { %v8771_v6 = vmul.f32 %v8761_v4, %v8718_v2  ;;  %v8772_v29 = vmul.f32 %v8768_v35, %v8719_v7  ;;  %v12787_v4 = vld [vmem:[%s14547_s17 + $0xd0] ss:$20 sps:$4 sm:$0xff]   ;;  %v12792_v2 = vld [vmem:[%s14547_s17 + $0xf4] ss:$20 sps:$4 sm:$0xff]  }
 0xc8a   : > { %v8824_v47 = vadd.f32 %v8814_v16, %v8771_v6  ;;  %v8825_v44 = vadd.f32 %v8821_v55, %v8772_v29  ;;  %v12790_v16 = vld [vmem:[%s14547_s17 + $0xf0] ss:$20 sps:$4 sm:$0xff]  }
 0xc8b   : > { %v12795_v6 = vld [vmem:[%s14547_s17 + $0xfc] ss:$20 sps:$4 sm:$0xff]  }
 0xc8c   : > { %v8835_v17 = vrot.slane %v8824_v47, %v13020_v9  ;;  %v8828_v18 = vcombine.high %v8824_v47, %v8824_v47  ;;  %v8851_v40 = vrot.slane %v8825_v44, %v13020_v9  ;;  %v12793_v47 = vld [vmem:[%s14547_s17 + $0xf8] ss:$20 sps:$4 sm:$0xff]  }
 0xc8e   : > { %v8843_v19 = vcombine.high %v8835_v17, %v8835_v17  ;;  %v8842_v12 = vrot.slane %v8828_v18, %v13020_v9  ;;  %v8857_v28 = vpack.c.bf16 %v8835_v17, %v8835_v17  ;;  %v8861_v31 = vpack.c.bf16 %v8851_v40, %v8851_v40  ;;  %v12798_v17 = vld [vmem:[%s14547_s17 + $0x11c] ss:$20 sps:$4 sm:$0xff]   ;;  %v12796_v18 = vld [vmem:[%s14547_s17 + $0x118] ss:$20 sps:$4 sm:$0xff]  }
 0xc90   : > { %v8858_v20 = vpack.c.bf16 %v8843_v19, %v8843_v19  ;;  %v8844_v39 = vcombine.high %v8842_v12, %v8842_v12  ;;  %v8859_v43 = vpack.c.bf16 %v8842_v12, %v8842_v12  ;;  %v12801_v19 = vld [vmem:[%s14547_s17 + $0x124] ss:$20 sps:$4 sm:$0xff]   ;;  %v12799_v12 = vld [vmem:[%s14547_s17 + $0x120] ss:$20 sps:$4 sm:$0xff]  }
 0xc92   : > { %9211 = vmatprep.mubr.bf16.mxu1 %v8858_v20  ;;  %v8860_v25 = vpack.c.bf16 %v8844_v39, %v8844_v39 }
 0xc93   : > { %9212 = vmatmul.mubr.bf16.vlgmr.msra.gmra.mrb[60].mxu1 %v8857_v28 }
 0xc94   : > { %11391 = vmatpush3.bf16.msra.mxu1 %v12747_v21  ;;  %9251 = vmatprep.mubr.bf16.mxu0 %v8860_v25  ;;  %v8941_v21 = vld [vmem:[%s13004_s18 + $0x50] ss:$0 sm:$0xff] }
 0xc95   : > { %9252 = vmatmul.mubr.bf16.vlgmr.msra.gmra.mrb[64].mxu0 %v8859_v43  ;;  %11392 = vmatprep.subr.bf16.mxu1 %v12924_v23 }
 0xc96   : > { %11404 = vmatprep.mubr.msk.bf16.mxu1 %vm12925_vm3, %v12924_v23  ;;  %9627 = vmatprep.mubr.bf16.mxu0 %v12926_v3 }
 0xc97   : > { %9596 = vmatpush1.bf16.msra.mxu0 %v12754_v50  ;;  %v12802_v50 = vld [vmem:[%s14547_s17 + $0x10] ss:$20 sps:$4 sm:$0xff]  }
 0xc98   : > { %11393 = vmatpush3.bf16.msra.mxu1 %v12748_v62  ;;  %9597 = vmatprep.subr.bf16.mxu0 %v12762_v53  ;;  %v12804_v53 = vld [vmem:[%s14547_s17 + $0x60] ss:$20 sps:$4 sm:$0xff]  }
 0xc99   : > { %11394 = vmatprep.subr.bf16.mxu1 %v12924_v23 }
 0xc9b   : > { %9598 = vmatpush1.bf16.msra.mxu0 %v12760_v54  ;;  %v12805_v54 = vld [vmem:[%s14547_s17 + $0x88] ss:$20 sps:$4 sm:$0xff]  }
 0xc9c   : > { %11395 = vmatpush3.bf16.msra.mxu1 %v12749_v8  ;;  %9599 = vmatprep.subr.bf16.mxu0 %v12768_v57  ;;  %v12808_v57 = vld [vmem:[%s14547_s17 + $0x100] ss:$20 sps:$4 sm:$0xff]  }
 0xc9d   : > { %11396 = vmatprep.subr.bf16.mxu1 %v12924_v23 }
 0xc9f   : > { %9600 = vmatpush1.bf16.msra.mxu0 %v12766_v22  ;;  %v12809_v22 = vld [vmem:[%s14547_s17 + $0x128] ss:$20 sps:$4 sm:$0xff]  }
 0xca0   : > { %11397 = vmatpush3.bf16.msra.mxu1 %v12750_v61  ;;  %9601 = vmatprep.subr.bf16.mxu0 %v12774_v59 }
 0xca1   : > { %11398 = vmatprep.subr.bf16.mxu1 %v12924_v23 }
 0xca3   : > { %9602 = vmatpush1.bf16.msra.mxu0 %v12772_v51 }
 0xca4   : > { %11399 = vmatpush3.bf16.msra.mxu1 %v12751_v10  ;;  %9603 = vmatprep.subr.bf16.mxu0 %v12780_v63 }
 0xca5   : > { %11400 = vmatprep.subr.bf16.mxu1 %v12924_v23 }
 0xca7   : > { %9604 = vmatpush1.bf16.msra.mxu0 %v12778_v0 }
 0xca8   : > { %11401 = vmatpush3.bf16.msra.mxu1 %v12752_v38  ;;  %9605 = vmatprep.subr.bf16.mxu0 %v12786_v11 }
 0xca9   : > { %11402 = vmatprep.subr.bf16.mxu1 %v12924_v23 }
 0xcab   : > { %9606 = vmatpush1.bf16.msra.mxu0 %v12784_v34 }
 0xcac   : > { %11403 = vmatpush3.bf16.msra.mxu1 %v9177_v1  ;;  %9607 = vmatprep.subr.bf16.mxu0 %v12792_v2 }
 0xcad   : > { %9636 = vmatprep.subr.bf16.mxu1 %v12759_v52  ;;  %v12803_v52 = vld [vmem:[%s14547_s17 + $0x38] ss:$20 sps:$4 sm:$0xff]  }
 0xcaf   : > { %11405 = vmatmul.mubr.msk.bf16.vlgmr.msra.gmra.mrb[64].mxu1 %vm936_vm4, %v8861_v31  ;;  %9608 = vmatpush1.bf16.msra.mxu0 %v12790_v16 }
 0xcb0   : > { %9668 = vmatprep.mubr.bf16.mxu1 %v12926_v3  ;;  %v12757_v3 = vld [vmem:[%s14547_s17 + $0x8] ss:$20 sps:$4 sm:$0xff]   ;;  %9609 = vmatprep.subr.bf16.mxu0 %v12798_v17 }
 0xcb1   : > { %9637 = vmatpush1.bf16.msra.mxu1 %v12757_v3 }
 0xcb2   : > { %9638 = vmatprep.subr.bf16.mxu1 %v12765_v49  ;;  %v12806_v49 = vld [vmem:[%s14547_s17 + $0xb0] ss:$20 sps:$4 sm:$0xff]  }
 0xcb3   : > { %9610 = vmatpush1.bf16.msra.mxu0 %v12796_v18 }
 0xcb4   : > { %11408 = vmatprep.subr.bf16.mxu0 %v12924_v23 }
 0xcb5   : > { %9639 = vmatpush1.bf16.msra.mxu1 %v12763_v56  ;;  %v12807_v56 = vld [vmem:[%s14547_s17 + $0xd8] ss:$20 sps:$4 sm:$0xff]  }
 0xcb6   : > { %9640 = vmatprep.subr.bf16.mxu1 %v12771_v42  ;;  %v11033_v42 = vld [vmem:[%s13004_s18 + $0x51] ss:$8 sm:$0xf] }
 0xcb9   : > { %9641 = vmatpush1.bf16.msra.mxu1 %v12769_v58  ;;  %v11034_v58 = vld [vmem:[%s13004_s18 + $0x51] ss:$8 sm:$0x10] }
 0xcba   : > { %9642 = vmatprep.subr.bf16.mxu1 %v12777_v45  ;;  %v9360_v59 = vor.u32 %v11034_v58, %v11033_v42 }
 0xcbc   : > { %v9365_v51 = vrot.slane %v9360_v59, %v13100_v26  ;;  %v9373_v45 = vrot.slane %v9360_v59, %v13108_v33  ;;  %v9377_v63 = vrot.slane %v9360_v59, %v13111_v36 }
 0xcbd   : > { %9643 = vmatpush1.bf16.msra.mxu1 %v12775_v60  ;;  %v9369_v60 = vrot.slane %v9360_v59, %v13105_v32 }
 0xcbe   : > { %9644 = vmatprep.subr.bf16.mxu1 %v12783_v5 }
 0xcc1   : > { %9645 = vmatpush1.bf16.msra.mxu1 %v12781_v37 }
 0xcc2   : > { %9646 = vmatprep.subr.bf16.mxu1 %v12789_v15 }
 0xcc5   : > { %9647 = vmatpush1.bf16.msra.mxu1 %v12787_v4 }
 0xcc6   : > { %9648 = vmatprep.subr.bf16.mxu1 %v12795_v6 }
 0xcc9   : > { %9649 = vmatpush1.bf16.msra.mxu1 %v12793_v47 }
 0xcca   : > { %9650 = vmatprep.subr.bf16.mxu1 %v12801_v19 }
 0xccd   : > { %9651 = vmatpush1.bf16.msra.mxu1 %v12799_v12 }
 0xd66   : > { %v11271_v20 = vpop.f32.mrb[60].mxu1 }
 0xd67   : > { %v11272_v39 = vpop.f32.mrb[61].mxu1 }
 0xd68   : > { %v11273_v28 = vadd.f32 %v11272_v39, %v11271_v20  ;;  %v11274_v25 = vpop.f32.mrb[62].mxu1  ;;  %v11293_v43 = vpop.f32.mrb[64].mxu0 }
 0xd69   : > { %v11275_v62 = vpop.f32.mrb[63].mxu1  ;;  %v11294_v8 = vpop.f32.mrb[65].mxu0 }
 0xd6a   : > { %v9214_v41 = vadd.f32 %v11273_v28, %v8941_v21  ;;  %v11295_v61 = vadd.f32 %v11294_v8, %v11293_v43  ;;  %v11296_v7 = vpop.f32.mrb[66].mxu0  ;;  %v9381_v43 = vrot.slane %v9360_v59, %v13132_v13 }
 0xd6b   : > { %v11297_v35 = vpop.f32.mrb[67].mxu0 }
 0xd6c   : > { %v9254_v48 = vadd.f32 %v11295_v61, %v9214_v41 }
 0xd82   : > { %v9293_v10 = vpop.f32.mrb[64].mxu1 }
 0xd83   : > { %v9294_v29 = vadd.f32 %v9293_v10, %v9254_v48  ;;  %v11406_v55 = vpop.f32.mrb[65].mxu1 }
 0xd84   : > { %v9296_v38 = vpop.f32.mrb[66].mxu1 }
 0xd85   : > { %v11031_v27 = vmul.f32 -1.442695, %v9294_v29  ;;  %v11407_v44 = vpop.f32.mrb[67].mxu1 }
 0xd87   : > { %12862 = vpow2.f32 %v11031_v27 }
 0xd91   : > { %v12863_v1 = vpop.eup %12862 }
 0xd92   : > { %v9302_v40 = vadd.f32 1.0, %v12863_v1 }
 0xd94   : > { %12864 = vrcp.f32 %v9302_v40 }
 0xd9e   : > { %v12865_v31 = vpop.eup %12864 }
 0xd9f   : > { %v9305_v46 = vmul.f32 %v12865_v31, %v9294_v29 }
 0xda1   : > { %v9306_v3 = vpack.c.bf16 %v9305_v46, %v9305_v46 }
 0xda3   : > { %9628 = vmatmul.mubr.bf16.vlgmr.msra.gmra.mrb[68].mxu0 %v9306_v3  ;;  %9669 = vmatmul.mubr.bf16.vlgmr.msra.gmra.mrb[68].mxu1 %v9306_v3 }
 0xda4   : > { %11409 = vmatpush3.bf16.msra.mxu0 %v12802_v50  ;;  %11424 = vmatprep.mubr.msk.bf16.mxu0 %vm12925_vm3, %v12924_v23 }
 0xda5   : > { %11410 = vmatprep.subr.bf16.mxu0 %v12924_v23 }
 0xda8   : > { %11411 = vmatpush3.bf16.msra.mxu0 %v12803_v52 }
 0xda9   : > { %11412 = vmatprep.subr.bf16.mxu0 %v12924_v23 }
 0xdac   : > { %11413 = vmatpush3.bf16.msra.mxu0 %v12804_v53 }
 0xdad   : > { %11414 = vmatprep.subr.bf16.mxu0 %v12924_v23 }
 0xdb0   : > { %11415 = vmatpush3.bf16.msra.mxu0 %v12805_v54 }
 0xdb1   : > { %11416 = vmatprep.subr.bf16.mxu0 %v12924_v23 }
 0xdb4   : > { %11417 = vmatpush3.bf16.msra.mxu0 %v12806_v49 }
 0xdb5   : > { %11418 = vmatprep.subr.bf16.mxu0 %v12924_v23 }
 0xdb8   : > { %11419 = vmatpush3.bf16.msra.mxu0 %v12807_v56 }
 0xdb9   : > { %11420 = vmatprep.subr.bf16.mxu0 %v12924_v23 }
 0xdbc   : > { %11421 = vmatpush3.bf16.msra.mxu0 %v12808_v57 }
 0xdbd   : > { %11422 = vmatprep.subr.bf16.mxu0 %v12924_v23 }
 0xdc0   : > { %11423 = vmatpush3.bf16.msra.mxu0 %v12809_v22 }
 0xdc3   : > { %11425 = vmatmul.mubr.bf16.vlgmr.msra.gmra.mrb[72].mxu0 %v9306_v3 }
 0xe76   : > { %v9629_v0 = vpop.f32.mrb[68].mxu0  ;;  %v9670_v5 = vpop.f32.mrb[68].mxu1 }
 0xe77   : > { %v9630_v37 = vadd.f32 %v9629_v0, %v9365_v51  ;;  %v9671_v11 = vadd.f32 %v9670_v5, %v9373_v45  ;;  %v9631_v34 = vpop.f32.mrb[69].mxu0  ;;  %v9672_v15 = vpop.f32.mrb[69].mxu1 }
 0xe78   : > { %v9632_v23 = vadd.f32 %v9631_v34, %v9369_v60  ;;  %v9673_v4 = vadd.f32 %v9672_v15, %v9377_v63  ;;  %v9633_v2 = vpop.f32.mrb[70].mxu0  ;;  %v9674_v16 = vpop.f32.mrb[70].mxu1 }
 0xe79   : > { %v9634_v6 = vpop.f32.mrb[71].mxu0  ;;  %v9675_v47 = vpop.f32.mrb[71].mxu1  ;;  %v11077_v2 = vld [vmem:[%s13004_s18 + $0x53] ss:$8 sm:$0xf] }
 0xe7a   : > { %v9722_v17 = vcombine.low %v9630_v37, %v9632_v23  ;;  %v9723_v18 = vcombine.low %v9671_v11, %v9673_v4  ;;  %v11075_v23 = vld [vmem:[%s13004_s18 + $0x52] ss:$8 sm:$0xf]  ;;  %v11078_v16 = vld [vmem:[%s13004_s18 + $0x53] ss:$8 sm:$0x10] }
 0xe7b   : > { %v11076_v4 = vld [vmem:[%s13004_s18 + $0x52] ss:$8 sm:$0x10]  ;;  %s9980_s18 = sshll.u32 %s12927_s30, 4  ;;  %s9981_s18 = int_to_ptr.vmem [resolvable:$true] %s9980_s18 }
 0xe7c   : > { %v9730_v19 = vrot.slane %v9722_v17, %v13020_v9  ;;  %v9737_v12 = vrot.slane %v9723_v18, %v13020_v9  ;;  %v9865_v47 = vor.u32 %v11076_v4, %v11075_v23  ;;  %v9918_v18 = vor.u32 %v11078_v16, %v11077_v2  ;;  %s12868_s19 = scalar_lea.vmem %s9981_s18, 160  ;;  %p12875_p10 = scmp.lt.s32.totalorder %s9981_s18, %s9981_s18 }
 0xe7d   : > { %p12869_p7 = scmp.ne.s32.totalorder %s9981_s18, %s12868_s19  ;;  %p12876_p11 = scmp.lt.s32.totalorder %s12868_s19, %s12868_s19 }
 0xe7e   : > { %v9738_v20 = vcombine.low %v9730_v19, %v9737_v12  ;;  %v9870_v12 = vrot.slane %v9865_v47, %v13100_v26 }
 0xe7f   : > { %p12870_p8 = pnand %p12869_p7, %p14652_p6  ;;  %p12877_p12 = por %p12876_p11, %p12875_p10 }
 0xe80   : > { %v9748_v21 = vadd.f32 %v9738_v20, %v14418_v14  ;;  %v9874_v20 = vrot.slane %v9865_v47, %v13105_v32 }
 0xe81   : > { %p12871_p9 = pneg %p12870_p8 }
 0xe82   : > { %v9759_v39 = vrot.slane %v9748_v21, %v13020_v9  ;;  %v9752_v25 = vcombine.high %v9748_v21, %v9748_v21 }
 0xe83   : > { %p12878_p13 = pnand %p12877_p12, %p12871_p9 }
 0xe84   : > { %v9767_v28 = vcombine.high %v9759_v39, %v9759_v39  ;;  %v9766_v8 = vrot.slane %v9752_v25, %v13020_v9  ;;  %v9781_v41 = vsel %vm399_vm1, %v9759_v39, 0.0  ;;  %v9882_v39 = vrot.slane %v9865_v47, %v13111_v36 }
 0xe85   : > { %v9927_v25 = vrot.slane %v9918_v18, %v13105_v32 }
 0xe86   : > { %v9782_v62 = vsel %vm399_vm1, %v9767_v28, 0.0  ;;  %v9768_v55 = vcombine.high %v9766_v8, %v9766_v8  ;;  %v9784_v38 = vsel %vm399_vm1, %v9766_v8, 0.0  ;;  %v9923_v28 = vrot.slane %v9918_v18, %v13100_v26 }
 0xe87   : > { %v9783_v7 = vadd.f32 %v9782_v62, %v9781_v41  ;;  %v9935_v62 = vrot.slane %v9918_v18, %v13111_v36  ;;  %v9887_v8 = vcombine.low %v9870_v12, %v9874_v20 }
 0xe88   : > { %v9786_v40 = vsel %vm399_vm1, %v9768_v55, 0.0 }
 0xe89   : > { %v9785_v27 = vadd.f32 %v9784_v38, %v9783_v7 }
 0xe8b   : > { %v9787_v31 = vadd.f32 %v9786_v40, %v9785_v27 }
 0xe96   : > { %v9711_v61 = vpop.f32.mrb[72].mxu0 }
 0xe97   : > { %v9712_v35 = vadd.f32 %v9711_v61, %v9381_v43  ;;  %v11426_v48 = vpop.f32.mrb[73].mxu0  ;;  %v9931_v43 = vrot.slane %v9918_v18, %v13108_v33  ;;  %v9940_v61 = vcombine.low %v9923_v28, %v9927_v25 }
 0xe98   : > { %v9714_v10 = vpop.f32.mrb[74].mxu0  ;;  %v9895_v48 = vrot.slane %v9887_v8, %v13020_v9 }
 0xe99   : > { %v9745_v29 = vrot.slane %v9712_v35, %v13020_v9  ;;  %v11427_v14 = vpop.f32.mrb[75].mxu0  ;;  %v9941_v7 = vcombine.low %v9931_v43, %v9935_v62  ;;  %v9886_v35 = vrot.slane %v9865_v47, %v13132_v13  ;;  %v9948_v26 = vrot.slane %v9940_v61, %v13020_v9 }
 0xe9b   : > { %v9749_v44 = vadd.f32 %v9745_v29, %v14432_v24  ;;  %v9939_v29 = vrot.slane %v9918_v18, %v13132_v13  ;;  %v9955_v32 = vrot.slane %v9941_v7, %v13020_v9  ;;  %v9910_v55 = vrot.slane %v9886_v35, %v13020_v9 }
 0xe9d   : > { %v9775_v1 = vrot.slane %v9749_v44, %v13020_v9 }
 0xe9f   : > { %v9788_v46 = vsel %vm407_vm2, %v9775_v1, 0.0  ;;  %v9963_v1 = vrot.slane %v9939_v29, %v13020_v9 }
 0xea0   : > { %v9789_v50 = vadd.f32 %v9788_v46, %v9787_v31 }
 0xea2   : > { %9790 = vadd.xlane.f32.xlu0 %v9789_v50 }
 0xf2f   : > { %v9791_v3 = vpop.xlane.xlu0 %9790 }
 0xf30   : > { %v9792_v52 = vmul.f32 0.001633987, %v9791_v3 }
 0xf32   : > { %v9800_v53 = vrot.slane %v9792_v52, %v13045_v30 }
 0xf34   : > { %v9802_v54 = vsub.f32 %v9748_v21, %v9800_v53  ;;  %v9803_v49 = vsub.f32 %v9749_v44, %v9800_v53  ;;  %v9878_v21 = vrot.slane %v9865_v47, %v13108_v33  ;;  %v9956_v44 = vcombine.low %v9948_v26, %v9955_v32 }
 0xf36   : > { %v9804_v56 = vmul.f32 %v9802_v54, %v9802_v54  ;;  %v9805_v24 = vmul.f32 %v9803_v49, %v9803_v49  ;;  %v9888_v41 = vcombine.low %v9878_v21, %v9882_v39 }
 0xf38   : > { %v9808_v57 = vcombine.high %v9804_v56, %v9804_v56  ;;  %v9815_v22 = vrot.slane %v9804_v56, %v13020_v9  ;;  %v9831_v63 = vrot.slane %v9805_v24, %v13020_v9  ;;  %v9902_v10 = vrot.slane %v9888_v41, %v13020_v9 }
 0xf3a   : > { %v9823_v42 = vcombine.high %v9815_v22, %v9815_v22  ;;  %v9822_v58 = vrot.slane %v9808_v57, %v13020_v9  ;;  %v9837_v51 = vsel %vm399_vm1, %v9815_v22, 0.0  ;;  %v9844_v34 = vsel %vm407_vm2, %v9831_v63, 0.0 }
 0xf3b   : > { %v9903_v14 = vcombine.low %v9895_v48, %v9902_v10 }
 0xf3c   : > { %v9824_v59 = vcombine.high %v9822_v58, %v9822_v58  ;;  %v9838_v45 = vsel %vm399_vm1, %v9823_v42, 0.0  ;;  %v9840_v0 = vsel %vm399_vm1, %v9822_v58, 0.0 }
 0xf3d   : > { %v9839_v60 = vadd.f32 %v9838_v45, %v9837_v51 }
 0xf3e   : > { %v9842_v37 = vsel %vm399_vm1, %v9824_v59, 0.0 }
 0xf3f   : > { %v9841_v5 = vadd.f32 %v9840_v0, %v9839_v60 }
 0xf41   : > { %v9843_v11 = vadd.f32 %v9842_v37, %v9841_v5 }
 0xf43   : > { %v9845_v15 = vadd.f32 %v9844_v34, %v9843_v11 }
 0xf45   : > { %9846 = vadd.xlane.f32.xlu1 %v9845_v15 }
 0xfd2   : > { %v9847_v6 = vpop.xlane.xlu1 %9846 }
 0xfd3   : > { %v9848_v17 = vmul.f32 0.001633987, %v9847_v6 }
 0xfd5   : > { %v9849_v19 = vadd.f32 1e-05, %v9848_v17 }
 0xfd7   : > { %12866 = vrsqrt.f32 %v9849_v19 }
 0xfe1   : > { %v12867_v33 = vpop.eup %12866 }
 0xfe2   : > { %v9858_v36 = vrot.slane %v12867_v33, %v13045_v30 }
 0xfe4   : > { %v9860_v38 = vmul.f32 %v9858_v36, %v9802_v54  ;;  %v9861_v27 = vmul.f32 %v9858_v36, %v9803_v49 }
 0xfe6   : > { %v9913_v40 = vmul.f32 %v9903_v14, %v9860_v38  ;;  %v9914_v31 = vmul.f32 %v9910_v55, %v9861_v27 }
 0xfe8   : > { %v9966_v13 = vadd.f32 %v9956_v44, %v9913_v40  ;;  %v9967_v30 = vadd.f32 %v9963_v1, %v9914_v31 }
 0xfea   : > { %9968 = vst [vmem:[#allocation2] sm:$0xff] %v9966_v13  ;;  %9969 = vst.msk [vmem:[#allocation2 + $0x8] sm:$0x3] %vm407_vm2, %v9967_v30 }
 0xfeb   : > { %12881 = shalt.err (!%p12878_p13)
}
 0xfec   : > { %s12882_s21 = scalar_lea.hbm %s14697_s9, 160 }
 0xfed   : > { %p12883_p0 = scmp.ne.s32.totalorder %s14697_s9, %s12882_s21  ;;  %p12888_p3 = scmp.lt.u32.totalorder %s12882_s21, %s14697_s9 }
 0xfef   : > { %p12884_p1 = pnand %p12883_p0, %p14652_p6 }
 0xff1   : > { %p12885_p2 = pneg %p12884_p1 }
 0xff3   : > { %p12890_p4 = pnand %p12888_p3, %p12885_p2 }
 0xff5   : > { %12893 = shalt.err (!%p12890_p4)
}
 0xff6   : > { %11462 = dma.vmem_to_hbm [thread:$0]  (%p14652_p6), %s9981_s18, 160, %s14697_s9, [#allocation3]  }
 0xff7   : > { %12907 = dma.done.wait (%p14652_p6), [#allocation3], 160  }
 0xff8   : > { %12909 = vsyncadd (%p14652_p6), [#allocation3], 4294967136 }
 0xff9 PF: > { %s20_s11 = sadd.s32 1, %s12920_s11   ;;  %s14699_s30 = smov %s12916_s10 }
 0xffa   : > { %p17_p5 = scmp.ge.s32.totalorder %s20_s11, 6   ;;  %s14700_s10 = smov %s14702_s13 }
 0xffc   :  { %19 = sbr.rel (!%p17_p5) target bundleno = 2 (0x2), region = 115 }
0x1003   :  { %9993 = vsyncpa [#allocation3], 1 }
0x1004   :  { %9995 = vsyncpa [#allocation3 + $0x1], 1 }

</bundles_post_ra>
